<compile_context>
chip_gen: v7x
topology: tpu7x:2x2x1
jax: 0.10.0
libtpu: 0.0.40
codegen_flags: <defaults>
</compile_context>

<pallas_src>
import functools

import jax
import jax.numpy as jnp
from jax.experimental import pallas as pl
from jax.experimental.pallas import tpu as pltpu

LANE = 128
SUBLANE = 8


def _round_up(x, m):
    return (x + m - 1) // m * m


def _conv3x3_acc(pad_ref, w_ref, *, H, W, Wp2, Cp):
    """3x3 'SAME' conv read from a zero-haloed (H+2, Wp2, Cp) VMEM scratch.

    Per-tap accumulation: 9 MXU matmuls of K=Cp each (no im2col slab).  For
    each dh one aligned row block is loaded; the dw taps are sublane shifts of
    that in-register block (XLU work that overlaps the MXU), cast to bf16.
    """
    hw = H * W
    acc = jnp.zeros((hw, Cp), jnp.float32)
    for dh in range(3):
        rows = pad_ref[dh:dh + H, :, :]              # aligned (H, Wp2, Cp) load
        for dw in range(3):
            # In-register shift of the already-loaded row block (equivalent to
            # a pltpu.roll on the sublane axis); [.. :W ..] keeps the slice
            # lane/sublane dense, and the reshape is layout-free when W % 8 == 0.
            tap = rows[:, dw:dw + W, :].reshape(hw, Cp).astype(jnp.bfloat16)
            acc = acc + jnp.dot(tap, w_ref[3 * dh + dw],
                                preferred_element_type=jnp.float32)
    return acc


def _resnet_block_kernel(x_ref, w1_ref, b1_ref, w2_ref, b2_ref, o_ref,
                         xpad_ref, midpad_ref, *, H, W, Wp2, Cp):
    hw = H * W

    # Zero only the 1-pixel halo strips; the interior is fully overwritten
    # below.  (Done every step, not once, so it is correct when the batch
    # axis is sharded across TensorCores.)
    for ref in (xpad_ref, midpad_ref):
        ref[0:1, :, :] = jnp.zeros((1, Wp2, Cp), jnp.float32)
        ref[H + 1:H + 2, :, :] = jnp.zeros((1, Wp2, Cp), jnp.float32)
        ref[1:H + 1, 0:1, :] = jnp.zeros((H, 1, Cp), jnp.float32)
        ref[1:H + 1, W + 1:Wp2, :] = jnp.zeros((H, Wp2 - W - 1, Cp), jnp.float32)

    x = x_ref[0]                                         # (H*W, Cp) f32
    xpad_ref[1:H + 1, 1:W + 1, :] = x.reshape(H, W, Cp)

    # Stage 1: conv1 (per-tap MXU accumulation) + folded-BN bias + ReLU.
    mid = _conv3x3_acc(xpad_ref, w1_ref, H=H, W=W, Wp2=Wp2, Cp=Cp)
    mid = jnp.maximum(mid + b1_ref[...], 0.0)            # bias hoisted, fused epilogue
    midpad_ref[1:H + 1, 1:W + 1, :] = mid.reshape(H, W, Cp)

    # Stage 2: conv2 + bias + identity skip (x already VMEM resident) + ReLU.
    out = _conv3x3_acc(midpad_ref, w2_ref, H=H, W=W, Wp2=Wp2, Cp=Cp)
    out = out + b2_ref[...] + x
    o_ref[0] = jnp.maximum(out, 0.0)                      # lane-dense, unmasked store


def _prep_weight(w, C, Cp):
    """HWIO (3,3,C,C) -> channel-padded (9, Cp, Cp) bf16 per-tap weights."""
    w = jnp.pad(w, ((0, 0), (0, 0), (0, Cp - C), (0, Cp - C)))
    return w.reshape(9, Cp, Cp).astype(jnp.bfloat16)


def resnet_block(x_nchw, w1, b1, w2, b2):
    """x_nchw: (N, C, H, W) f32; w*: (3,3,C,C) HWIO (BN-folded); b*: (1, C)."""
    N, C, H, W = x_nchw.shape
    Cp = _round_up(max(C, LANE), LANE)
    Wp2 = _round_up(W + 2, SUBLANE)
    HW = H * W

    # XLA-side layout glue: NCHW -> NHWC, lane-padded channels, flat spatial.
    x = jnp.transpose(x_nchw, (0, 2, 3, 1))
    x = jnp.pad(x, ((0, 0), (0, 0), (0, 0), (0, Cp - C))).reshape(N, HW, Cp)
    w1p = _prep_weight(w1, C, Cp)
    w2p = _prep_weight(w2, C, Cp)
    b1p = jnp.pad(b1, ((0, 0), (0, Cp - C)))
    b2p = jnp.pad(b2, ((0, 0), (0, Cp - C)))

    flops = 2 * 2 * N * HW * (9 * Cp) * Cp                # two conv stages
    bytes_accessed = (4 * 2 * N * HW * Cp                 # x in + out (f32)
                      + 2 * 2 * 9 * Cp * Cp               # two bf16 weights
                      + 4 * 2 * Cp)                       # biases

    out = pl.pallas_call(
        functools.partial(_resnet_block_kernel, H=H, W=W, Wp2=Wp2, Cp=Cp),
        out_shape=jax.ShapeDtypeStruct((N, HW, Cp), jnp.float32),
        grid_spec=pltpu.PrefetchScalarGridSpec(
            num_scalar_prefetch=0,
            grid=(N,),
            in_specs=[
                pl.BlockSpec((1, HW, Cp), lambda n: (n, 0, 0)),
                pl.BlockSpec((9, Cp, Cp), lambda n: (0, 0, 0)),
                pl.BlockSpec((1, Cp), lambda n: (0, 0)),
                pl.BlockSpec((9, Cp, Cp), lambda n: (0, 0, 0)),
                pl.BlockSpec((1, Cp), lambda n: (0, 0)),
            ],
            out_specs=pl.BlockSpec((1, HW, Cp), lambda n: (n, 0, 0)),
            scratch_shapes=[
                pltpu.VMEM((H + 2, Wp2, Cp), jnp.float32),   # zero-haloed x
                pltpu.VMEM((H + 2, Wp2, Cp), jnp.float32),   # zero-haloed mid
            ],
        ),
        compiler_params=pltpu.CompilerParams(
            dimension_semantics=("parallel",),
            vmem_limit_bytes=32 * 1024 * 1024),
        cost_estimate=pl.CostEstimate(
            flops=flops, transcendentals=0, bytes_accessed=bytes_accessed),
    )(x, w1p, b1p, w2p, b2p)

    out = out.reshape(N, H, W, Cp)[:, :, :, :C]
    return jnp.transpose(out, (0, 3, 1, 2))               # back to NCHW


def _fold_bn(w, gamma, beta, mean, var, eps=1e-5):
    """Fold inference BatchNorm into conv weights (HWIO) + bias."""
    s = gamma / jnp.sqrt(var + eps)
    return w * s[None, None, None, :], (beta - mean * s)[None, :]


def _reference(x_nchw, w1, b1, w2, b2):
    """Pure-JAX reference (lax conv) with matching bf16 operand / f32 accum."""
    x = jnp.transpose(x_nchw, (0, 2, 3, 1))
    dn = jax.lax.conv_dimension_numbers(x.shape, w1.shape,
                                        ("NHWC", "HWIO", "NHWC"))

    def conv(a, w):
        return jax.lax.conv_general_dilated(
            a.astype(jnp.bfloat16), w.astype(jnp.bfloat16), (1, 1), "SAME",
            dimension_numbers=dn, preferred_element_type=jnp.float32)

    c1 = jnp.maximum(conv(x, w1) + b1, 0.0)
    c2 = conv(c1, w2) + b2
    y = jnp.maximum(c2 + x, 0.0)
    return jnp.transpose(y, (0, 3, 1, 2))


if __name__ == "__main__":
    N, C, H, W = 2, 4, 16, 16
    key = jax.random.PRNGKey(0)
    kx, kw1, kw2, kg1, kb1, kg2, kb2 = jax.random.split(key, 7)

    x = jax.random.normal(kx, (N, C, H, W), jnp.float32)
    w1 = jax.random.normal(kw1, (3, 3, C, C), jnp.float32) * 0.2
    w2 = jax.random.normal(kw2, (3, 3, C, C), jnp.float32) * 0.2
    gamma1 = 1.0 + 0.1 * jax.random.normal(kg1, (C,), jnp.float32)
    beta1 = 0.1 * jax.random.normal(kb1, (C,), jnp.float32)
    gamma2 = 1.0 + 0.1 * jax.random.normal(kg2, (C,), jnp.float32)
    beta2 = 0.1 * jax.random.normal(kb2, (C,), jnp.float32)
    running_mean = jnp.zeros((C,), jnp.float32)
    running_var = jnp.ones((C,), jnp.float32)

    w1f, b1f = _fold_bn(w1, gamma1, beta1, running_mean, running_var)
    w2f, b2f = _fold_bn(w2, gamma2, beta2, running_mean, running_var)

    out = jax.block_until_ready(resnet_block(x, w1f, b1f, w2f, b2f))
    ref = _reference(x, w1f, b1f, w2f, b2f)

    assert out.shape == (N, C, H, W), out.shape
    max_err = float(jnp.max(jnp.abs(out - ref)))
    assert jnp.allclose(out, ref, atol=5e-3, rtol=5e-3), max_err
    print("KERNEL_OK")
</pallas_src>

<mosaic_0001>
module attributes {stable_mosaic.version = 11 : i64} {
  func.func @_resnet_block_kernel(%arg0: i32, %arg1: memref<1x256x128xf32, #tpu.memory_space<vmem>>, %arg2: memref<9x128x128xbf16, #tpu.memory_space<vmem>>, %arg3: memref<1x128xf32, #tpu.memory_space<vmem>>, %arg4: memref<9x128x128xbf16, #tpu.memory_space<vmem>>, %arg5: memref<1x128xf32, #tpu.memory_space<vmem>>, %arg6: memref<1x256x128xf32, #tpu.memory_space<vmem>>, %arg7: memref<18x24x128xf32, #tpu.memory_space<vmem>>, %arg8: memref<18x24x128xf32, #tpu.memory_space<vmem>>) attributes {dimension_semantics = [#tpu.dimension_semantics<parallel>], iteration_bounds = array<i64: 2>, scalar_prefetch = 0 : i64, scratch_operands = 2 : i64, tpu.core_type = #tpu.core_type<tc>, window_params = [{transform_indices = @transform_0, window_bounds = array<i64: 1, 256, 128>}, {pipeline_mode = #tpu.pipeline_mode<synchronous>, transform_indices = @transform_1, window_bounds = array<i64: 9, 128, 128>}, {pipeline_mode = #tpu.pipeline_mode<synchronous>, transform_indices = @transform_2, window_bounds = array<i64: 1, 128>}, {pipeline_mode = #tpu.pipeline_mode<synchronous>, transform_indices = @transform_3, window_bounds = array<i64: 9, 128, 128>}, {pipeline_mode = #tpu.pipeline_mode<synchronous>, transform_indices = @transform_4, window_bounds = array<i64: 1, 128>}, {transform_indices = @transform_5, window_bounds = array<i64: 1, 256, 128>}]} {
    %cst = arith.constant 0.000000e+00 : f32
    %0 = vector.broadcast %cst : f32 to vector<1x24x128xf32>
    %c0 = arith.constant 0 : index
    %c0_0 = arith.constant 0 : index
    %c0_1 = arith.constant 0 : index
    %1 = vector.load %arg7[%c0, %c0_0, %c0_1] : memref<18x24x128xf32, #tpu.memory_space<vmem>>, vector<1x24x128xf32>
    tpu.vector_store %arg7[%c0, %c0_0, %c0_1], %0 {strides = array<i32>} : memref<18x24x128xf32, #tpu.memory_space<vmem>>, vector<1x24x128xf32>,
    %cst_2 = arith.constant 0.000000e+00 : f32
    %2 = vector.broadcast %cst_2 : f32 to vector<1x24x128xf32>
    %c17 = arith.constant 17 : index
    %c0_3 = arith.constant 0 : index
    %c0_4 = arith.constant 0 : index
    %3 = vector.load %arg7[%c17, %c0_3, %c0_4] : memref<18x24x128xf32, #tpu.memory_space<vmem>>, vector<1x24x128xf32>
    tpu.vector_store %arg7[%c17, %c0_3, %c0_4], %2 {strides = array<i32>} : memref<18x24x128xf32, #tpu.memory_space<vmem>>, vector<1x24x128xf32>,
    %cst_5 = arith.constant 0.000000e+00 : f32
    %4 = vector.broadcast %cst_5 : f32 to vector<16x1x128xf32>
    %c1 = arith.constant 1 : index
    %c0_6 = arith.constant 0 : index
    %c0_7 = arith.constant 0 : index
    %5 = vector.load %arg7[%c1, %c0_6, %c0_7] : memref<18x24x128xf32, #tpu.memory_space<vmem>>, vector<16x1x128xf32>
    tpu.vector_store %arg7[%c1, %c0_6, %c0_7], %4 {strides = array<i32>} : memref<18x24x128xf32, #tpu.memory_space<vmem>>, vector<16x1x128xf32>,
    %cst_8 = arith.constant 0.000000e+00 : f32
    %6 = vector.broadcast %cst_8 : f32 to vector<16x7x128xf32>
    %c1_9 = arith.constant 1 : index
    %c17_10 = arith.constant 17 : index
    %c0_11 = arith.constant 0 : index
    %7 = vector.load %arg7[%c1_9, %c17_10, %c0_11] : memref<18x24x128xf32, #tpu.memory_space<vmem>>, vector<16x7x128xf32>
    tpu.vector_store %arg7[%c1_9, %c17_10, %c0_11], %6 {strides = array<i32>} : memref<18x24x128xf32, #tpu.memory_space<vmem>>, vector<16x7x128xf32>,
    %cst_12 = arith.constant 0.000000e+00 : f32
    %8 = vector.broadcast %cst_12 : f32 to vector<1x24x128xf32>
    %c0_13 = arith.constant 0 : index
    %c0_14 = arith.constant 0 : index
    %c0_15 = arith.constant 0 : index
    %9 = vector.load %arg8[%c0_13, %c0_14, %c0_15] : memref<18x24x128xf32, #tpu.memory_space<vmem>>, vector<1x24x128xf32>
    tpu.vector_store %arg8[%c0_13, %c0_14, %c0_15], %8 {strides = array<i32>} : memref<18x24x128xf32, #tpu.memory_space<vmem>>, vector<1x24x128xf32>,
    %cst_16 = arith.constant 0.000000e+00 : f32
    %10 = vector.broadcast %cst_16 : f32 to vector<1x24x128xf32>
    %c17_17 = arith.constant 17 : index
    %c0_18 = arith.constant 0 : index
    %c0_19 = arith.constant 0 : index
    %11 = vector.load %arg8[%c17_17, %c0_18, %c0_19] : memref<18x24x128xf32, #tpu.memory_space<vmem>>, vector<1x24x128xf32>
    tpu.vector_store %arg8[%c17_17, %c0_18, %c0_19], %10 {strides = array<i32>} : memref<18x24x128xf32, #tpu.memory_space<vmem>>, vector<1x24x128xf32>,
    %cst_20 = arith.constant 0.000000e+00 : f32
    %12 = vector.broadcast %cst_20 : f32 to vector<16x1x128xf32>
    %c1_21 = arith.constant 1 : index
    %c0_22 = arith.constant 0 : index
    %c0_23 = arith.constant 0 : index
    %13 = vector.load %arg8[%c1_21, %c0_22, %c0_23] : memref<18x24x128xf32, #tpu.memory_space<vmem>>, vector<16x1x128xf32>
    tpu.vector_store %arg8[%c1_21, %c0_22, %c0_23], %12 {strides = array<i32>} : memref<18x24x128xf32, #tpu.memory_space<vmem>>, vector<16x1x128xf32>,
    %cst_24 = arith.constant 0.000000e+00 : f32
    %14 = vector.broadcast %cst_24 : f32 to vector<16x7x128xf32>
    %c1_25 = arith.constant 1 : index
    %c17_26 = arith.constant 17 : index
    %c0_27 = arith.constant 0 : index
    %15 = vector.load %arg8[%c1_25, %c17_26, %c0_27] : memref<18x24x128xf32, #tpu.memory_space<vmem>>, vector<16x7x128xf32>
    tpu.vector_store %arg8[%c1_25, %c17_26, %c0_27], %14 {strides = array<i32>} : memref<18x24x128xf32, #tpu.memory_space<vmem>>, vector<16x7x128xf32>,
    %c0_28 = arith.constant 0 : index
    %c0_29 = arith.constant 0 : index
    %c0_30 = arith.constant 0 : index
    %16 = vector.load %arg1[%c0_28, %c0_29, %c0_30] : memref<1x256x128xf32, #tpu.memory_space<vmem>>, vector<1x256x128xf32>
    %17 = vector.shape_cast %16 : vector<1x256x128xf32> to vector<256x128xf32>
    %18 = vector.shape_cast %17 : vector<256x128xf32> to vector<16x16x128xf32>
    %c1_31 = arith.constant 1 : index
    %c1_32 = arith.constant 1 : index
    %c0_33 = arith.constant 0 : index
    %19 = vector.load %arg7[%c1_31, %c1_32, %c0_33] : memref<18x24x128xf32, #tpu.memory_space<vmem>>, vector<16x16x128xf32>
    tpu.vector_store %arg7[%c1_31, %c1_32, %c0_33], %18 {strides = array<i32>} : memref<18x24x128xf32, #tpu.memory_space<vmem>>, vector<16x16x128xf32>,
    %cst_34 = arith.constant 0.000000e+00 : f32
    %20 = vector.broadcast %cst_34 : f32 to vector<256x128xf32>
    %c0_35 = arith.constant 0 : index
    %c0_36 = arith.constant 0 : index
    %c0_37 = arith.constant 0 : index
    %21 = vector.load %arg7[%c0_35, %c0_36, %c0_37] : memref<18x24x128xf32, #tpu.memory_space<vmem>>, vector<16x24x128xf32>
    %22 = vector.extract_strided_slice %21 {offsets = [0, 0, 0], sizes = [16, 16, 128], strides = [1, 1, 1]} : vector<16x24x128xf32> to vector<16x16x128xf32>
    %23 = vector.shape_cast %22 : vector<16x16x128xf32> to vector<256x128xf32>
    %24 = arith.truncf %23 : vector<256x128xf32> to vector<256x128xbf16>
    %c0_38 = arith.constant 0 : index
    %c0_39 = arith.constant 0 : index
    %c0_40 = arith.constant 0 : index
    %25 = vector.load %arg2[%c0_38, %c0_39, %c0_40] : memref<9x128x128xbf16, #tpu.memory_space<vmem>>, vector<1x128x128xbf16>
    %26 = vector.shape_cast %25 : vector<1x128x128xbf16> to vector<128x128xbf16>
    %cst_41 = arith.constant dense<0.000000e+00> : vector<256x128xf32>
    %27 = tpu.matmul %24, %26, %cst_41 {dimension_numbers = #tpu.dot_dimension_numbers<[1], [0], [0], [1], [0, 0, 1, 1], [], []>} : vector<256x128xbf16>, vector<128x128xbf16>, vector<256x128xf32> -> vector<256x128xf32>
    %28 = arith.addf %20, %27 : vector<256x128xf32>
    %29 = vector.extract_strided_slice %21 {offsets = [0, 1, 0], sizes = [16, 16, 128], strides = [1, 1, 1]} : vector<16x24x128xf32> to vector<16x16x128xf32>
    %30 = vector.shape_cast %29 : vector<16x16x128xf32> to vector<256x128xf32>
    %31 = arith.truncf %30 : vector<256x128xf32> to vector<256x128xbf16>
    %c1_42 = arith.constant 1 : index
    %c0_43 = arith.constant 0 : index
    %c0_44 = arith.constant 0 : index
    %32 = vector.load %arg2[%c1_42, %c0_43, %c0_44] : memref<9x128x128xbf16, #tpu.memory_space<vmem>>, vector<1x128x128xbf16>
    %33 = vector.shape_cast %32 : vector<1x128x128xbf16> to vector<128x128xbf16>
    %cst_45 = arith.constant dense<0.000000e+00> : vector<256x128xf32>
    %34 = tpu.matmul %31, %33, %cst_45 {dimension_numbers = #tpu.dot_dimension_numbers<[1], [0], [0], [1], [0, 0, 1, 1], [], []>} : vector<256x128xbf16>, vector<128x128xbf16>, vector<256x128xf32> -> vector<256x128xf32>
    %35 = arith.addf %28, %34 : vector<256x128xf32>
    %36 = vector.extract_strided_slice %21 {offsets = [0, 2, 0], sizes = [16, 16, 128], strides = [1, 1, 1]} : vector<16x24x128xf32> to vector<16x16x128xf32>
    %37 = vector.shape_cast %36 : vector<16x16x128xf32> to vector<256x128xf32>
    %38 = arith.truncf %37 : vector<256x128xf32> to vector<256x128xbf16>
    %c2 = arith.constant 2 : index
    %c0_46 = arith.constant 0 : index
    %c0_47 = arith.constant 0 : index
    %39 = vector.load %arg2[%c2, %c0_46, %c0_47] : memref<9x128x128xbf16, #tpu.memory_space<vmem>>, vector<1x128x128xbf16>
    %40 = vector.shape_cast %39 : vector<1x128x128xbf16> to vector<128x128xbf16>
    %cst_48 = arith.constant dense<0.000000e+00> : vector<256x128xf32>
    %41 = tpu.matmul %38, %40, %cst_48 {dimension_numbers = #tpu.dot_dimension_numbers<[1], [0], [0], [1], [0, 0, 1, 1], [], []>} : vector<256x128xbf16>, vector<128x128xbf16>, vector<256x128xf32> -> vector<256x128xf32>
    %42 = arith.addf %35, %41 : vector<256x128xf32>
    %c1_49 = arith.constant 1 : index
    %c0_50 = arith.constant 0 : index
    %c0_51 = arith.constant 0 : index
    %43 = vector.load %arg7[%c1_49, %c0_50, %c0_51] : memref<18x24x128xf32, #tpu.memory_space<vmem>>, vector<16x24x128xf32>
    %44 = vector.extract_strided_slice %43 {offsets = [0, 0, 0], sizes = [16, 16, 128], strides = [1, 1, 1]} : vector<16x24x128xf32> to vector<16x16x128xf32>
    %45 = vector.shape_cast %44 : vector<16x16x128xf32> to vector<256x128xf32>
    %46 = arith.truncf %45 : vector<256x128xf32> to vector<256x128xbf16>
    %c3 = arith.constant 3 : index
    %c0_52 = arith.constant 0 : index
    %c0_53 = arith.constant 0 : index
    %47 = vector.load %arg2[%c3, %c0_52, %c0_53] : memref<9x128x128xbf16, #tpu.memory_space<vmem>>, vector<1x128x128xbf16>
    %48 = vector.shape_cast %47 : vector<1x128x128xbf16> to vector<128x128xbf16>
    %cst_54 = arith.constant dense<0.000000e+00> : vector<256x128xf32>
    %49 = tpu.matmul %46, %48, %cst_54 {dimension_numbers = #tpu.dot_dimension_numbers<[1], [0], [0], [1], [0, 0, 1, 1], [], []>} : vector<256x128xbf16>, vector<128x128xbf16>, vector<256x128xf32> -> vector<256x128xf32>
    %50 = arith.addf %42, %49 : vector<256x128xf32>
    %51 = vector.extract_strided_slice %43 {offsets = [0, 1, 0], sizes = [16, 16, 128], strides = [1, 1, 1]} : vector<16x24x128xf32> to vector<16x16x128xf32>
    %52 = vector.shape_cast %51 : vector<16x16x128xf32> to vector<256x128xf32>
    %53 = arith.truncf %52 : vector<256x128xf32> to vector<256x128xbf16>
    %c4 = arith.constant 4 : index
    %c0_55 = arith.constant 0 : index
    %c0_56 = arith.constant 0 : index
    %54 = vector.load %arg2[%c4, %c0_55, %c0_56] : memref<9x128x128xbf16, #tpu.memory_space<vmem>>, vector<1x128x128xbf16>
    %55 = vector.shape_cast %54 : vector<1x128x128xbf16> to vector<128x128xbf16>
    %cst_57 = arith.constant dense<0.000000e+00> : vector<256x128xf32>
    %56 = tpu.matmul %53, %55, %cst_57 {dimension_numbers = #tpu.dot_dimension_numbers<[1], [0], [0], [1], [0, 0, 1, 1], [], []>} : vector<256x128xbf16>, vector<128x128xbf16>, vector<256x128xf32> -> vector<256x128xf32>
    %57 = arith.addf %50, %56 : vector<256x128xf32>
    %58 = vector.extract_strided_slice %43 {offsets = [0, 2, 0], sizes = [16, 16, 128], strides = [1, 1, 1]} : vector<16x24x128xf32> to vector<16x16x128xf32>
    %59 = vector.shape_cast %58 : vector<16x16x128xf32> to vector<256x128xf32>
    %60 = arith.truncf %59 : vector<256x128xf32> to vector<256x128xbf16>
    %c5 = arith.constant 5 : index
    %c0_58 = arith.constant 0 : index
    %c0_59 = arith.constant 0 : index
    %61 = vector.load %arg2[%c5, %c0_58, %c0_59] : memref<9x128x128xbf16, #tpu.memory_space<vmem>>, vector<1x128x128xbf16>
    %62 = vector.shape_cast %61 : vector<1x128x128xbf16> to vector<128x128xbf16>
    %cst_60 = arith.constant dense<0.000000e+00> : vector<256x128xf32>
    %63 = tpu.matmul %60, %62, %cst_60 {dimension_numbers = #tpu.dot_dimension_numbers<[1], [0], [0], [1], [0, 0, 1, 1], [], []>} : vector<256x128xbf16>, vector<128x128xbf16>, vector<256x128xf32> -> vector<256x128xf32>
    %64 = arith.addf %57, %63 : vector<256x128xf32>
    %c2_61 = arith.constant 2 : index
    %c0_62 = arith.constant 0 : index
    %c0_63 = arith.constant 0 : index
    %65 = vector.load %arg7[%c2_61, %c0_62, %c0_63] : memref<18x24x128xf32, #tpu.memory_space<vmem>>, vector<16x24x128xf32>
    %66 = vector.extract_strided_slice %65 {offsets = [0, 0, 0], sizes = [16, 16, 128], strides = [1, 1, 1]} : vector<16x24x128xf32> to vector<16x16x128xf32>
    %67 = vector.shape_cast %66 : vector<16x16x128xf32> to vector<256x128xf32>
    %68 = arith.truncf %67 : vector<256x128xf32> to vector<256x128xbf16>
    %c6 = arith.constant 6 : index
    %c0_64 = arith.constant 0 : index
    %c0_65 = arith.constant 0 : index
    %69 = vector.load %arg2[%c6, %c0_64, %c0_65] : memref<9x128x128xbf16, #tpu.memory_space<vmem>>, vector<1x128x128xbf16>
    %70 = vector.shape_cast %69 : vector<1x128x128xbf16> to vector<128x128xbf16>
    %cst_66 = arith.constant dense<0.000000e+00> : vector<256x128xf32>
    %71 = tpu.matmul %68, %70, %cst_66 {dimension_numbers = #tpu.dot_dimension_numbers<[1], [0], [0], [1], [0, 0, 1, 1], [], []>} : vector<256x128xbf16>, vector<128x128xbf16>, vector<256x128xf32> -> vector<256x128xf32>
    %72 = arith.addf %64, %71 : vector<256x128xf32>
    %73 = vector.extract_strided_slice %65 {offsets = [0, 1, 0], sizes = [16, 16, 128], strides = [1, 1, 1]} : vector<16x24x128xf32> to vector<16x16x128xf32>
    %74 = vector.shape_cast %73 : vector<16x16x128xf32> to vector<256x128xf32>
    %75 = arith.truncf %74 : vector<256x128xf32> to vector<256x128xbf16>
    %c7 = arith.constant 7 : index
    %c0_67 = arith.constant 0 : index
    %c0_68 = arith.constant 0 : index
    %76 = vector.load %arg2[%c7, %c0_67, %c0_68] : memref<9x128x128xbf16, #tpu.memory_space<vmem>>, vector<1x128x128xbf16>
    %77 = vector.shape_cast %76 : vector<1x128x128xbf16> to vector<128x128xbf16>
    %cst_69 = arith.constant dense<0.000000e+00> : vector<256x128xf32>
    %78 = tpu.matmul %75, %77, %cst_69 {dimension_numbers = #tpu.dot_dimension_numbers<[1], [0], [0], [1], [0, 0, 1, 1], [], []>} : vector<256x128xbf16>, vector<128x128xbf16>, vector<256x128xf32> -> vector<256x128xf32>
    %79 = arith.addf %72, %78 : vector<256x128xf32>
    %80 = vector.extract_strided_slice %65 {offsets = [0, 2, 0], sizes = [16, 16, 128], strides = [1, 1, 1]} : vector<16x24x128xf32> to vector<16x16x128xf32>
    %81 = vector.shape_cast %80 : vector<16x16x128xf32> to vector<256x128xf32>
    %82 = arith.truncf %81 : vector<256x128xf32> to vector<256x128xbf16>
    %c8 = arith.constant 8 : index
    %c0_70 = arith.constant 0 : index
    %c0_71 = arith.constant 0 : index
    %83 = vector.load %arg2[%c8, %c0_70, %c0_71] : memref<9x128x128xbf16, #tpu.memory_space<vmem>>, vector<1x128x128xbf16>
    %84 = vector.shape_cast %83 : vector<1x128x128xbf16> to vector<128x128xbf16>
    %cst_72 = arith.constant dense<0.000000e+00> : vector<256x128xf32>
    %85 = tpu.matmul %82, %84, %cst_72 {dimension_numbers = #tpu.dot_dimension_numbers<[1], [0], [0], [1], [0, 0, 1, 1], [], []>} : vector<256x128xbf16>, vector<128x128xbf16>, vector<256x128xf32> -> vector<256x128xf32>
    %86 = arith.addf %79, %85 : vector<256x128xf32>
    %c0_73 = arith.constant 0 : index
    %c0_74 = arith.constant 0 : index
    %87 = vector.load %arg3[%c0_73, %c0_74] : memref<1x128xf32, #tpu.memory_space<vmem>>, vector<1x128xf32>
    %88 = vector.broadcast %87 : vector<1x128xf32> to vector<256x128xf32>
    %89 = arith.addf %86, %88 : vector<256x128xf32>
    %cst_75 = arith.constant 0.000000e+00 : f32
    %90 = vector.broadcast %cst_75 : f32 to vector<256x128xf32>
    %91 = arith.maximumf %89, %90 : vector<256x128xf32>
    %92 = vector.shape_cast %91 : vector<256x128xf32> to vector<16x16x128xf32>
    %c1_76 = arith.constant 1 : index
    %c1_77 = arith.constant 1 : index
    %c0_78 = arith.constant 0 : index
    %93 = vector.load %arg8[%c1_76, %c1_77, %c0_78] : memref<18x24x128xf32, #tpu.memory_space<vmem>>, vector<16x16x128xf32>
    tpu.vector_store %arg8[%c1_76, %c1_77, %c0_78], %92 {strides = array<i32>} : memref<18x24x128xf32, #tpu.memory_space<vmem>>, vector<16x16x128xf32>,
    %cst_79 = arith.constant 0.000000e+00 : f32
    %94 = vector.broadcast %cst_79 : f32 to vector<256x128xf32>
    %c0_80 = arith.constant 0 : index
    %c0_81 = arith.constant 0 : index
    %c0_82 = arith.constant 0 : index
    %95 = vector.load %arg8[%c0_80, %c0_81, %c0_82] : memref<18x24x128xf32, #tpu.memory_space<vmem>>, vector<16x24x128xf32>
    %96 = vector.extract_strided_slice %95 {offsets = [0, 0, 0], sizes = [16, 16, 128], strides = [1, 1, 1]} : vector<16x24x128xf32> to vector<16x16x128xf32>
    %97 = vector.shape_cast %96 : vector<16x16x128xf32> to vector<256x128xf32>
    %98 = arith.truncf %97 : vector<256x128xf32> to vector<256x128xbf16>
    %c0_83 = arith.constant 0 : index
    %c0_84 = arith.constant 0 : index
    %c0_85 = arith.constant 0 : index
    %99 = vector.load %arg4[%c0_83, %c0_84, %c0_85] : memref<9x128x128xbf16, #tpu.memory_space<vmem>>, vector<1x128x128xbf16>
    %100 = vector.shape_cast %99 : vector<1x128x128xbf16> to vector<128x128xbf16>
    %cst_86 = arith.constant dense<0.000000e+00> : vector<256x128xf32>
    %101 = tpu.matmul %98, %100, %cst_86 {dimension_numbers = #tpu.dot_dimension_numbers<[1], [0], [0], [1], [0, 0, 1, 1], [], []>} : vector<256x128xbf16>, vector<128x128xbf16>, vector<256x128xf32> -> vector<256x128xf32>
    %102 = arith.addf %94, %101 : vector<256x128xf32>
    %103 = vector.extract_strided_slice %95 {offsets = [0, 1, 0], sizes = [16, 16, 128], strides = [1, 1, 1]} : vector<16x24x128xf32> to vector<16x16x128xf32>
    %104 = vector.shape_cast %103 : vector<16x16x128xf32> to vector<256x128xf32>
    %105 = arith.truncf %104 : vector<256x128xf32> to vector<256x128xbf16>
    %c1_87 = arith.constant 1 : index
    %c0_88 = arith.constant 0 : index
    %c0_89 = arith.constant 0 : index
    %106 = vector.load %arg4[%c1_87, %c0_88, %c0_89] : memref<9x128x128xbf16, #tpu.memory_space<vmem>>, vector<1x128x128xbf16>
    %107 = vector.shape_cast %106 : vector<1x128x128xbf16> to vector<128x128xbf16>
    %cst_90 = arith.constant dense<0.000000e+00> : vector<256x128xf32>
    %108 = tpu.matmul %105, %107, %cst_90 {dimension_numbers = #tpu.dot_dimension_numbers<[1], [0], [0], [1], [0, 0, 1, 1], [], []>} : vector<256x128xbf16>, vector<128x128xbf16>, vector<256x128xf32> -> vector<256x128xf32>
    %109 = arith.addf %102, %108 : vector<256x128xf32>
    %110 = vector.extract_strided_slice %95 {offsets = [0, 2, 0], sizes = [16, 16, 128], strides = [1, 1, 1]} : vector<16x24x128xf32> to vector<16x16x128xf32>
    %111 = vector.shape_cast %110 : vector<16x16x128xf32> to vector<256x128xf32>
    %112 = arith.truncf %111 : vector<256x128xf32> to vector<256x128xbf16>
    %c2_91 = arith.constant 2 : index
    %c0_92 = arith.constant 0 : index
    %c0_93 = arith.constant 0 : index
    %113 = vector.load %arg4[%c2_91, %c0_92, %c0_93] : memref<9x128x128xbf16, #tpu.memory_space<vmem>>, vector<1x128x128xbf16>
    %114 = vector.shape_cast %113 : vector<1x128x128xbf16> to vector<128x128xbf16>
    %cst_94 = arith.constant dense<0.000000e+00> : vector<256x128xf32>
    %115 = tpu.matmul %112, %114, %cst_94 {dimension_numbers = #tpu.dot_dimension_numbers<[1], [0], [0], [1], [0, 0, 1, 1], [], []>} : vector<256x128xbf16>, vector<128x128xbf16>, vector<256x128xf32> -> vector<256x128xf32>
    %116 = arith.addf %109, %115 : vector<256x128xf32>
    %c1_95 = arith.constant 1 : index
    %c0_96 = arith.constant 0 : index
    %c0_97 = arith.constant 0 : index
    %117 = vector.load %arg8[%c1_95, %c0_96, %c0_97] : memref<18x24x128xf32, #tpu.memory_space<vmem>>, vector<16x24x128xf32>
    %118 = vector.extract_strided_slice %117 {offsets = [0, 0, 0], sizes = [16, 16, 128], strides = [1, 1, 1]} : vector<16x24x128xf32> to vector<16x16x128xf32>
    %119 = vector.shape_cast %118 : vector<16x16x128xf32> to vector<256x128xf32>
    %120 = arith.truncf %119 : vector<256x128xf32> to vector<256x128xbf16>
    %c3_98 = arith.constant 3 : index
    %c0_99 = arith.constant 0 : index
    %c0_100 = arith.constant 0 : index
    %121 = vector.load %arg4[%c3_98, %c0_99, %c0_100] : memref<9x128x128xbf16, #tpu.memory_space<vmem>>, vector<1x128x128xbf16>
    %122 = vector.shape_cast %121 : vector<1x128x128xbf16> to vector<128x128xbf16>
    %cst_101 = arith.constant dense<0.000000e+00> : vector<256x128xf32>
    %123 = tpu.matmul %120, %122, %cst_101 {dimension_numbers = #tpu.dot_dimension_numbers<[1], [0], [0], [1], [0, 0, 1, 1], [], []>} : vector<256x128xbf16>, vector<128x128xbf16>, vector<256x128xf32> -> vector<256x128xf32>
    %124 = arith.addf %116, %123 : vector<256x128xf32>
    %125 = vector.extract_strided_slice %117 {offsets = [0, 1, 0], sizes = [16, 16, 128], strides = [1, 1, 1]} : vector<16x24x128xf32> to vector<16x16x128xf32>
    %126 = vector.shape_cast %125 : vector<16x16x128xf32> to vector<256x128xf32>
    %127 = arith.truncf %126 : vector<256x128xf32> to vector<256x128xbf16>
    %c4_102 = arith.constant 4 : index
    %c0_103 = arith.constant 0 : index
    %c0_104 = arith.constant 0 : index
    %128 = vector.load %arg4[%c4_102, %c0_103, %c0_104] : memref<9x128x128xbf16, #tpu.memory_space<vmem>>, vector<1x128x128xbf16>
    %129 = vector.shape_cast %128 : vector<1x128x128xbf16> to vector<128x128xbf16>
    %cst_105 = arith.constant dense<0.000000e+00> : vector<256x128xf32>
    %130 = tpu.matmul %127, %129, %cst_105 {dimension_numbers = #tpu.dot_dimension_numbers<[1], [0], [0], [1], [0, 0, 1, 1], [], []>} : vector<256x128xbf16>, vector<128x128xbf16>, vector<256x128xf32> -> vector<256x128xf32>
    %131 = arith.addf %124, %130 : vector<256x128xf32>
    %132 = vector.extract_strided_slice %117 {offsets = [0, 2, 0], sizes = [16, 16, 128], strides = [1, 1, 1]} : vector<16x24x128xf32> to vector<16x16x128xf32>
    %133 = vector.shape_cast %132 : vector<16x16x128xf32> to vector<256x128xf32>
    %134 = arith.truncf %133 : vector<256x128xf32> to vector<256x128xbf16>
    %c5_106 = arith.constant 5 : index
    %c0_107 = arith.constant 0 : index
    %c0_108 = arith.constant 0 : index
    %135 = vector.load %arg4[%c5_106, %c0_107, %c0_108] : memref<9x128x128xbf16, #tpu.memory_space<vmem>>, vector<1x128x128xbf16>
    %136 = vector.shape_cast %135 : vector<1x128x128xbf16> to vector<128x128xbf16>
    %cst_109 = arith.constant dense<0.000000e+00> : vector<256x128xf32>
    %137 = tpu.matmul %134, %136, %cst_109 {dimension_numbers = #tpu.dot_dimension_numbers<[1], [0], [0], [1], [0, 0, 1, 1], [], []>} : vector<256x128xbf16>, vector<128x128xbf16>, vector<256x128xf32> -> vector<256x128xf32>
    %138 = arith.addf %131, %137 : vector<256x128xf32>
    %c2_110 = arith.constant 2 : index
    %c0_111 = arith.constant 0 : index
    %c0_112 = arith.constant 0 : index
    %139 = vector.load %arg8[%c2_110, %c0_111, %c0_112] : memref<18x24x128xf32, #tpu.memory_space<vmem>>, vector<16x24x128xf32>
    %140 = vector.extract_strided_slice %139 {offsets = [0, 0, 0], sizes = [16, 16, 128], strides = [1, 1, 1]} : vector<16x24x128xf32> to vector<16x16x128xf32>
    %141 = vector.shape_cast %140 : vector<16x16x128xf32> to vector<256x128xf32>
    %142 = arith.truncf %141 : vector<256x128xf32> to vector<256x128xbf16>
    %c6_113 = arith.constant 6 : index
    %c0_114 = arith.constant 0 : index
    %c0_115 = arith.constant 0 : index
    %143 = vector.load %arg4[%c6_113, %c0_114, %c0_115] : memref<9x128x128xbf16, #tpu.memory_space<vmem>>, vector<1x128x128xbf16>
    %144 = vector.shape_cast %143 : vector<1x128x128xbf16> to vector<128x128xbf16>
    %cst_116 = arith.constant dense<0.000000e+00> : vector<256x128xf32>
    %145 = tpu.matmul %142, %144, %cst_116 {dimension_numbers = #tpu.dot_dimension_numbers<[1], [0], [0], [1], [0, 0, 1, 1], [], []>} : vector<256x128xbf16>, vector<128x128xbf16>, vector<256x128xf32> -> vector<256x128xf32>
    %146 = arith.addf %138, %145 : vector<256x128xf32>
    %147 = vector.extract_strided_slice %139 {offsets = [0, 1, 0], sizes = [16, 16, 128], strides = [1, 1, 1]} : vector<16x24x128xf32> to vector<16x16x128xf32>
    %148 = vector.shape_cast %147 : vector<16x16x128xf32> to vector<256x128xf32>
    %149 = arith.truncf %148 : vector<256x128xf32> to vector<256x128xbf16>
    %c7_117 = arith.constant 7 : index
    %c0_118 = arith.constant 0 : index
    %c0_119 = arith.constant 0 : index
    %150 = vector.load %arg4[%c7_117, %c0_118, %c0_119] : memref<9x128x128xbf16, #tpu.memory_space<vmem>>, vector<1x128x128xbf16>
    %151 = vector.shape_cast %150 : vector<1x128x128xbf16> to vector<128x128xbf16>
    %cst_120 = arith.constant dense<0.000000e+00> : vector<256x128xf32>
    %152 = tpu.matmul %149, %151, %cst_120 {dimension_numbers = #tpu.dot_dimension_numbers<[1], [0], [0], [1], [0, 0, 1, 1], [], []>} : vector<256x128xbf16>, vector<128x128xbf16>, vector<256x128xf32> -> vector<256x128xf32>
    %153 = arith.addf %146, %152 : vector<256x128xf32>
    %154 = vector.extract_strided_slice %139 {offsets = [0, 2, 0], sizes = [16, 16, 128], strides = [1, 1, 1]} : vector<16x24x128xf32> to vector<16x16x128xf32>
    %155 = vector.shape_cast %154 : vector<16x16x128xf32> to vector<256x128xf32>
    %156 = arith.truncf %155 : vector<256x128xf32> to vector<256x128xbf16>
    %c8_121 = arith.constant 8 : index
    %c0_122 = arith.constant 0 : index
    %c0_123 = arith.constant 0 : index
    %157 = vector.load %arg4[%c8_121, %c0_122, %c0_123] : memref<9x128x128xbf16, #tpu.memory_space<vmem>>, vector<1x128x128xbf16>
    %158 = vector.shape_cast %157 : vector<1x128x128xbf16> to vector<128x128xbf16>
    %cst_124 = arith.constant dense<0.000000e+00> : vector<256x128xf32>
    %159 = tpu.matmul %156, %158, %cst_124 {dimension_numbers = #tpu.dot_dimension_numbers<[1], [0], [0], [1], [0, 0, 1, 1], [], []>} : vector<256x128xbf16>, vector<128x128xbf16>, vector<256x128xf32> -> vector<256x128xf32>
    %160 = arith.addf %153, %159 : vector<256x128xf32>
    %c0_125 = arith.constant 0 : index
    %c0_126 = arith.constant 0 : index
    %161 = vector.load %arg5[%c0_125, %c0_126] : memref<1x128xf32, #tpu.memory_space<vmem>>, vector<1x128xf32>
    %162 = vector.broadcast %161 : vector<1x128xf32> to vector<256x128xf32>
    %163 = arith.addf %160, %162 : vector<256x128xf32>
    %164 = arith.addf %163, %17 : vector<256x128xf32>
    %cst_127 = arith.constant 0.000000e+00 : f32
    %165 = vector.broadcast %cst_127 : f32 to vector<256x128xf32>
    %166 = arith.maximumf %164, %165 : vector<256x128xf32>
    %c0_128 = arith.constant 0 : index
    %c0_129 = arith.constant 0 : index
    %c0_130 = arith.constant 0 : index
    %167 = vector.load %arg6[%c0_128, %c0_129, %c0_130] : memref<1x256x128xf32, #tpu.memory_space<vmem>>, vector<1x256x128xf32>
    %168 = vector.shape_cast %167 : vector<1x256x128xf32> to vector<256x128xf32>
    %169 = vector.shape_cast %166 : vector<256x128xf32> to vector<1x256x128xf32>
    tpu.vector_store %arg6[%c0_128, %c0_129, %c0_130], %169 {strides = array<i32>} : memref<1x256x128xf32, #tpu.memory_space<vmem>>, vector<1x256x128xf32>,
    return
  }
  func.func @transform_0(%arg0: i32) -> (i32, i32, i32) {
    %c0_i32 = arith.constant 0 : i32
    %c0_i32_0 = arith.constant 0 : i32
    %c0_i32_1 = arith.constant 0 : i32
    return %arg0, %c0_i32, %c0_i32_0 : i32, i32, i32
  }
  func.func @transform_1(%arg0: i32) -> (i32, i32, i32) {
    %c0_i32 = arith.constant 0 : i32
    %c0_i32_0 = arith.constant 0 : i32
    %c0_i32_1 = arith.constant 0 : i32
    %c0_i32_2 = arith.constant 0 : i32
    return %c0_i32, %c0_i32_0, %c0_i32_1 : i32, i32, i32
  }
  func.func @transform_2(%arg0: i32) -> (i32, i32) {
    %c0_i32 = arith.constant 0 : i32
    %c0_i32_0 = arith.constant 0 : i32
    %c0_i32_1 = arith.constant 0 : i32
    return %c0_i32, %c0_i32_0 : i32, i32
  }
  func.func @transform_3(%arg0: i32) -> (i32, i32, i32) {
    %c0_i32 = arith.constant 0 : i32
    %c0_i32_0 = arith.constant 0 : i32
    %c0_i32_1 = arith.constant 0 : i32
    %c0_i32_2 = arith.constant 0 : i32
    return %c0_i32, %c0_i32_0, %c0_i32_1 : i32, i32, i32
  }
  func.func @transform_4(%arg0: i32) -> (i32, i32) {
    %c0_i32 = arith.constant 0 : i32
    %c0_i32_0 = arith.constant 0 : i32
    %c0_i32_1 = arith.constant 0 : i32
    return %c0_i32, %c0_i32_0 : i32, i32
  }
  func.func @transform_5(%arg0: i32) -> (i32, i32, i32) {
    %c0_i32 = arith.constant 0 : i32
    %c0_i32_0 = arith.constant 0 : i32
    %c0_i32_1 = arith.constant 0 : i32
    return %arg0, %c0_i32, %c0_i32_0 : i32, i32, i32
  }
}

</mosaic_0001>

<bundles_post_ra>
// kernel: tpu_custom_call.1
= control target key start
LH: loop header
LB: loop body
LE: loop exit
PB: predicated region body
PF: predicated region fallthrough
CT: control target
= control target key end

     0   :  { %10 = vsyncpa [#allocation5], 0  ;;  %s12839_s0 = inlined_call_operand.hbm [shape: f32[2,256,128], index: 0, kind: input, shape index: {}]   ;;  %s12840_s1 = inlined_call_operand.hbm [shape: bf16[9,128,128], index: 1, kind: input, shape index: {}]   ;;  %s12841_s2 = inlined_call_operand.vmem [shape: f32[1,128], index: 2, kind: input, shape index: {}]   ;;  %s12842_s3 = inlined_call_operand.hbm [shape: bf16[9,128,128], index: 3, kind: input, shape index: {}]   ;;  %s12843_s4 = inlined_call_operand.vmem [shape: f32[1,128], index: 4, kind: input, shape index: {}]   ;;  %s12844_s5 = inlined_call_operand.hbm [shape: f32[2,256,128], index: 5, kind: output, shape index: {}]  }
   0x1   :  { %12 = vsyncpa [#allocation5 + $0x1], 0 }
   0x2   :  { %13 = vsyncpa [#allocation8], 0 }
   0x3   :  { %14 = vsyncpa [#allocation6], 0 }
   0x4   :  { %16 = vsyncpa [#allocation6 + $0x1], 0  ;;  %s9949_s18 = smov 0   ;;  %s9951_s19 = smov 0  }
   0x5   :  { %s9953_s20 = smov 0   ;;  %s9955_s21 = smov 0  }
   0x6 LB: > { %s9970_s22 = sadd.s32 4294967295, %s9905_s21   ;;  %s7487_s23 = sadd.s32 4294967294, %s9905_s21   ;;  %s9905_s21 = sphi %s9955_s21, %s13648_s21   ;;  %s9901_s20 = sphi %s9953_s20, %s13647_s20   ;;  %s9897_s19 = sphi %s9951_s19, %s13646_s19   ;;  %s9893_s18 = sphi %s9949_s18, %s13645_s18  }
   0x7   : > { %p42_p0 = scmp.ne.s32.totalorder %s9897_s19, %s9893_s18  ;;  %p12845_p1 = scmp.eq.s32.totalorder %s9970_s22, 0 }
   0x8   : > { %p156_p3 = scmp.eq.s32.totalorder %s7487_s23, 1  ;;  %p7488_p5 = scmp.ge.s32.totalorder %s9905_s21, 1 }
   0x9   : > { %p9979_p4 = por %p12845_p1, %p42_p0  ;;  %p163_p7 = scmp.lt.s32.totalorder %s9905_s21, 3 }
   0xa   : > { %p9984_p6 = por %p156_p3, %p42_p0  ;;  %s9907_s27 = smov [#allocation7]  }
   0xb   : > { %s13112_s24 = scalar_select %p9979_p4, 1, 0 }
   0xc   : > { %s13113_s25 = scalar_select %p9984_p6, 1, 0 }
   0xd   : > { %p9989_p8 = pnand %p7488_p5, %p163_p7  ;;  %s175_s28 = sshll.u32 %s9907_s27, 4  ;;  %s9993_s28 = int_to_ptr.vmem [resolvable:$true] %s175_s28 }
   0xe   : > { %s9908_s30 = smov [#allocation9]   ;;  %s9749_s9 = scalar_lea.hbm %s12840_s1, 9216 }
   0xf   : > { %p9473_p9 = pneg %p9989_p8  ;;  %s191_s6 = sshll.u32 %s9908_s30, 4  ;;  %s10004_s6 = int_to_ptr.vmem [resolvable:$true] %s191_s6 }
  0x10   : > { %p9750_p12 = scmp.ne.s32.totalorder %s12840_s1, %s9749_s9  ;;  %p9756_p5 = scmp.lt.u32.totalorder %s9749_s9, %s12840_s1 }
  0x11   : > { %p10000_p11 = pnand %p9473_p9, %p12845_p1 }
  0x13   : > { %p9751_p13 = pneg %p10000_p11 }
  0x15   : > { %p9752_p0 = pnand %p9751_p13, %p9750_p12 }
  0x17   : > { %p9753_p3 = pneg %p9752_p0 }
  0x19   : > { %p9758_p7 = pnand %p9756_p5, %p9753_p3 }
  0x1b   : > { %9761 = shalt.err (!%p9758_p7)
}
  0x1c   : > { %s9762_s14 = scalar_lea.vmem %s9993_s28, 9216  ;;  %p9770_p2 = scmp.lt.s32.totalorder %s9993_s28, %s9993_s28 }
  0x1d   : > { %p9763_p9 = scmp.ne.s32.totalorder %s9993_s28, %s9762_s14  ;;  %p9771_p12 = scmp.lt.s32.totalorder %s9762_s14, %s9762_s14 }
  0x1f   : > { %p9765_p10 = pnand %p9763_p9, %p9751_p13  ;;  %p9772_p0 = por %p9771_p12, %p9770_p2 }
  0x21   : > { %p9766_p1 = pneg %p9765_p10 }
  0x23   : > { %p9773_p6 = pnand %p9772_p0, %p9766_p1 }
  0x25   : > { %9776 = shalt.err (!%p9773_p6)
}
  0x26   : > { %s9909_s15 = smov 64   ;;  %s9910_s16 = smov 4  }
  0x27   : > { %9476 = dma.hbm_to_vmem [thread:$0]  (!%p10000_p11), %s12840_s1, 9216, %s9993_s28, [#allocation8], %s9909_s15, %s9909_s15, %s9910_s16  }
  0x28   : > { %s9777_s7 = scalar_lea.hbm %s12842_s3, 9216 }
  0x29   : > { %p9778_p2 = scmp.ne.s32.totalorder %s12842_s3, %s9777_s7  ;;  %p9784_p10 = scmp.lt.u32.totalorder %s9777_s7, %s12842_s3 }
  0x2b   : > { %p9780_p1 = pnand %p9778_p2, %p9751_p13 }
  0x2d   : > { %p9781_p6 = pneg %p9780_p1 }
  0x2f   : > { %p9786_p3 = pnand %p9784_p10, %p9781_p6 }
  0x31   : > { %9789 = shalt.err (!%p9786_p3)
}
  0x32   : > { %s9790_s28 = scalar_lea.vmem %s10004_s6, 9216  ;;  %p9798_p12 = scmp.lt.s32.totalorder %s10004_s6, %s10004_s6 }
  0x33   : > { %p9791_p5 = scmp.ne.s32.totalorder %s10004_s6, %s9790_s28  ;;  %p9799_p0 = scmp.lt.s32.totalorder %s9790_s28, %s9790_s28 }
  0x35   : > { %p9793_p7 = pnand %p9791_p5, %p9751_p13  ;;  %p9800_p2 = por %p9799_p0, %p9798_p12 }
  0x37   : > { %p9794_p9 = pneg %p9793_p7 }
  0x39   : > { %p9801_p1 = pnand %p9800_p2, %p9794_p9 }
  0x3b   : > { %9804 = shalt.err (!%p9801_p1)
}
  0x3c   : > { %9479 = dma.hbm_to_vmem [thread:$0]  (!%p10000_p11), %s12842_s3, 9216, %s10004_s6, [#allocation8], %s9909_s15, %s9909_s15, %s9910_s16  }
  0x3d   : > { %s10059_s14 = sadd.s32 1, %s9905_s21   ;;  %s29_s29 = sadd.s32 1, %s9901_s20 }
  0x3e   : > { %s26_s17 = ssub.s32 %s9905_s21, %s10059_s14  ;;  %p36_p13 = scmp.ne.s32.totalorder %s9901_s20, %s9897_s19 }
  0x3f   : > { %p27_p6 = scmp.eq.s32.totalorder %s26_s17, 0  ;;  %p37_p10 = scmp.eq.s32.totalorder %s9905_s21, 0 }
  0x40   : > { %p13116_p3 = scmp.eq.s32.totalorder %s9970_s22, 1  ;;  %p9490_p7 = scmp.lt.s32.totalorder %s9905_s21, 2 }
  0x41   : > { %s10075_s27 = scalar_select %p27_p6, %s9901_s20, %s29_s29  }
  0x42   : > { %p10069_p5 = por %p13116_p3, %p36_p13  ;;  %p38_p9 = por %p37_p10, %p36_p13 }
  0x43   : > { %s208_s30 = sand.u32 1, %s9901_s20   ;;  %s7651_s6 = sshll.u32 %s9905_s21, 12 }
  0x44   : > { %s13117_s23 = scalar_select %p10069_p5, 1, 0 }
  0x45   : > { %s7492_s7 = sshll.u32 %s208_s30, 8  ;;  %s10082_s8 = scalar_lea.hbm %s12839_s0, %s7651_s6 }
  0x46   : > { %s212_s9 = scalar_lea.vmem [#allocation4], %s7492_s7  ;;  %p10086_p11 = pnand %p9490_p7, %p38_p9 }
  0x47   : > { %s219_s10 = sshll.u32 %s212_s9, 4  ;;  %s10090_s28 = scalar_lea.sflag [#allocation5], %s208_s30  ;;  %s10084_s10 = int_to_ptr.vmem [resolvable:$true] %s219_s10 }
  0x48   : > { %s9805_s12 = scalar_lea.hbm %s10082_s8, 4096  ;;  %p9807_p0 = pneg %p10086_p11 }
  0x49   : > { %p9806_p12 = scmp.ne.s32.totalorder %s10082_s8, %s9805_s12  ;;  %s9810_s17 = scalar_lea.hbm %s12839_s0, 8192 }
  0x4a   : > { %p9811_p13 = scmp.lt.u32.totalorder %s10082_s8, %s12839_s0  ;;  %p9812_p6 = scmp.lt.u32.totalorder %s9810_s17, %s9805_s12 }
  0x4b   : > { %p9808_p2 = pnand %p9807_p0, %p9806_p12  ;;  %p9814_p3 = scmp.lt.u32.totalorder %s9805_s12, %s10082_s8 }
  0x4c   : > { %p9813_p10 = por %p9812_p6, %p9811_p13 }
  0x4d   : > { %p9809_p1 = pneg %p9808_p2 }
  0x4e   : > { %p9815_p7 = por %p9814_p3, %p9813_p10 }
  0x50   : > { %p9816_p9 = pnand %p9815_p7, %p9809_p1 }
  0x52   : > { %9819 = shalt.err (!%p9816_p9)
}
  0x53   : > { %s9820_s30 = scalar_lea.vmem %s10084_s10, 4096  ;;  %s9911_s15 = smov [#allocation4]  }
  0x54   : > { %p9821_p12 = scmp.ne.s32.totalorder %s10084_s10, %s9820_s30  ;;  %s9825_s16 = sshll.u32 %s9911_s15, 4  ;;  %s9826_s16 = int_to_ptr.vmem [resolvable:$false] %s9825_s16 }
  0x55   : > { %s9827_s9 = scalar_lea.vmem %s9826_s16, 8192  ;;  %p9828_p4 = scmp.lt.s32.totalorder %s10084_s10, %s9826_s16 }
  0x56   : > { %p9823_p2 = pnand %p9821_p12, %p9807_p0  ;;  %p9829_p13 = scmp.lt.s32.totalorder %s9827_s9, %s9820_s30 }
  0x58   : > { %p9824_p5 = pneg %p9823_p2  ;;  %p9830_p6 = por %p9829_p13, %p9828_p4 }
  0x5a   : > { %p9831_p10 = pnand %p9830_p6, %p9824_p5 }
  0x5c   : > { %9834 = shalt.err (!%p9831_p10)
}
  0x5d   : > { %s9912_s12 = smov 128   ;;  %s9913_s13 = smov 8  }
  0x5e   : > { %9483 = dma.hbm_to_vmem [thread:$0]  (!%p10086_p11), %s10082_s8, 4096, %s10084_s10, %s10090_s28, %s9912_s12, %s9912_s12, %s9913_s13  }
  0x5f   : > { %231 = sbr.rel (%p9989_p8) target bundleno = 1705 (0x6a9), region = 40 }
  0x66   : > { %s10121_s29 = sand.u32 1, %s9897_s19   ;;  %p13119_p4 = scmp.ne.s32.totalorder %s13112_s24, 0 }
  0x67   : > { %s7496_s17 = sshll.u32 %s10121_s29, 8  ;;  %s234_s7 = scalar_lea.sflag [#allocation5], %s10121_s29 }
  0x68   : > { %s10127_s6 = scalar_lea.vmem [#allocation4], %s7496_s17 }
  0x69   : > { %9880 = dma.done.wait (%p13119_p4), %s234_s7, 4096  }
  0x6a   : > { %9882 = vsyncadd (%p13119_p4), %s234_s7, 4294963200  ;;  %p13120_p5 = scmp.eq.s32.totalorder %s9970_s22, 0 }
  0x6c   : > { %9884 = dma.done.wait (%p13120_p5), [#allocation8], 18432   ;;  %p13121_p8 = pmov %p13120_p5 }
  0x6d   : > { %vm545_vm0 = vcmask 1046528   ;;  %v9914_v0 = vmov 0.0   ;;  %v9535_v3 = vld [vmem:[#allocation7 + $0x40] sm:$0xff]   ;;  %v9536_v4 = vld [vmem:[#allocation7 + $0x48] sm:$0xff]   ;;  %v9537_v5 = vld [vmem:[#allocation7 + $0x50] sm:$0xff]   ;;  %vm1109_vm1 = vcmask 1045504  }
  0x6e   : > { %9886 = vsyncadd (%p13121_p8), [#allocation8], 4294948864  ;;  %273 = vst [vmem:[#allocation2] sm:$0xff] %v9914_v0  ;;  %v10139_v1 = vrot.slane %v9914_v0, 1  ;;  %8085 = vmatprep.subr.bf16.mxu0 %v9535_v3  ;;  %v9538_v6 = vld [vmem:[#allocation7 + $0x58] sm:$0xff]   ;;  %v353_v7 = vld [vmem:[%s10127_s6] sm:$0xff] }
  0x6f   : > { %281 = vst [vmem:[#allocation2 + $0x18] sm:$0x1] %v9914_v0  ;;  %282 = vst [vmem:[#allocation2 + $0x30] sm:$0x1] %v9914_v0  ;;  %8086 = vmatpush3.bf16.msra.mxu0 %v9535_v3  ;;  %v354_v8 = vld [vmem:[%s10127_s6 + $0x8] sm:$0xff]  ;;  %v355_v9 = vld [vmem:[%s10127_s6 + $0x10] sm:$0xff] }
  0x70   : > { %283 = vst [vmem:[#allocation2 + $0x48] sm:$0x1] %v9914_v0  ;;  %284 = vst [vmem:[#allocation2 + $0x60] sm:$0x1] %v9914_v0  ;;  %v658_v2 = vpack.c.bf16 %v10139_v1, %v10139_v1  ;;  %8087 = vmatprep.subr.bf16.mxu0 %v9536_v4  ;;  %v356_v10 = vld [vmem:[%s10127_s6 + $0x18] sm:$0xff]  ;;  %v357_v11 = vld [vmem:[%s10127_s6 + $0x20] sm:$0xff] }
  0x71   : > { %285 = vst [vmem:[#allocation2 + $0x78] sm:$0x1] %v9914_v0  ;;  %286 = vst [vmem:[#allocation2 + $0x90] sm:$0x1] %v9914_v0  ;;  %v358_v12 = vld [vmem:[%s10127_s6 + $0x28] sm:$0xff]  ;;  %v9539_v13 = vld [vmem:[#allocation7 + $0x60] sm:$0xff]  }
  0x72   : > { %287 = vst [vmem:[#allocation2 + $0xa8] sm:$0x1] %v9914_v0  ;;  %288 = vst [vmem:[#allocation2 + $0xc0] sm:$0x1] %v9914_v0  ;;  %8101 = vmatprep.mubr.bf16.mxu0 %v658_v2  ;;  %v359_v14 = vld [vmem:[%s10127_s6 + $0x30] sm:$0xff]  ;;  %v360_v15 = vld [vmem:[%s10127_s6 + $0x38] sm:$0xff] }
  0x73   : > { %289 = vst [vmem:[#allocation2 + $0xd8] sm:$0x1] %v9914_v0  ;;  %290 = vst [vmem:[#allocation2 + $0xf0] sm:$0x1] %v9914_v0  ;;  %8088 = vmatpush3.bf16.msra.mxu0 %v9536_v4  ;;  %v361_v16 = vld [vmem:[%s10127_s6 + $0x40] sm:$0xff]  ;;  %v362_v17 = vld [vmem:[%s10127_s6 + $0x48] sm:$0xff] }
  0x74   : > { %291 = vst [vmem:[#allocation2 + $0x108] sm:$0x1] %v9914_v0  ;;  %292 = vst [vmem:[#allocation2 + $0x120] sm:$0x1] %v9914_v0  ;;  %8089 = vmatprep.subr.bf16.mxu0 %v9537_v5  ;;  %v363_v18 = vld [vmem:[%s10127_s6 + $0x50] sm:$0xff]  ;;  %v364_v19 = vld [vmem:[%s10127_s6 + $0x58] sm:$0xff] }
  0x75   : > { %293 = vst [vmem:[#allocation2 + $0x138] sm:$0x1] %v9914_v0  ;;  %294 = vst [vmem:[#allocation2 + $0x150] sm:$0x1] %v9914_v0  ;;  %v365_v20 = vld [vmem:[%s10127_s6 + $0x60] sm:$0xff]  ;;  %v366_v21 = vld [vmem:[%s10127_s6 + $0x68] sm:$0xff] }
  0x76   : > { %295 = vst [vmem:[#allocation2 + $0x168] sm:$0x1] %v9914_v0  ;;  %296 = vst [vmem:[#allocation2 + $0x180] sm:$0x1] %v9914_v0  ;;  %v9540_v22 = vld [vmem:[#allocation7 + $0x68] sm:$0xff]   ;;  %v9541_v26 = vld [vmem:[#allocation7 + $0x70] sm:$0xff]  }
  0x77   : > { %297 = vst [vmem:[#allocation2 + $0x29] sm:$0x7f] %v9914_v0  ;;  %298 = vst [vmem:[#allocation2 + $0x41] sm:$0x7f] %v9914_v0  ;;  %8090 = vmatpush3.bf16.msra.mxu0 %v9537_v5  ;;  %v9542_v31 = vld [vmem:[#allocation7 + $0x78] sm:$0xff]   ;;  %v367_v40 = vld [vmem:[%s10127_s6 + $0x70] sm:$0xff] }
  0x78   : > { %299 = vst [vmem:[#allocation2 + $0x59] sm:$0x7f] %v9914_v0  ;;  %300 = vst [vmem:[#allocation2 + $0x71] sm:$0x7f] %v9914_v0  ;;  %8091 = vmatprep.subr.bf16.mxu0 %v9538_v6  ;;  %v368_v41 = vld [vmem:[%s10127_s6 + $0x78] sm:$0xff]  ;;  %v369_v42 = vld [vmem:[%s10127_s6 + $0x80] sm:$0xff] }
  0x79   : > { %301 = vst [vmem:[#allocation2 + $0x89] sm:$0x7f] %v9914_v0  ;;  %302 = vst [vmem:[#allocation2 + $0xa1] sm:$0x7f] %v9914_v0  ;;  %v370_v45 = vld [vmem:[%s10127_s6 + $0x88] sm:$0xff]  ;;  %v9543_v46 = vld [vmem:[#allocation7] sm:$0xff]  }
  0x7a   : > { %303 = vst [vmem:[#allocation2 + $0xb9] sm:$0x7f] %v9914_v0  ;;  %304 = vst [vmem:[#allocation2 + $0xd1] sm:$0x7f] %v9914_v0  ;;  %v371_v53 = vld [vmem:[%s10127_s6 + $0x90] sm:$0xff]  ;;  %v372_v54 = vld [vmem:[%s10127_s6 + $0x98] sm:$0xff] }
  0x7b   : > { %305 = vst [vmem:[#allocation2 + $0xe9] sm:$0x7f] %v9914_v0  ;;  %306 = vst [vmem:[#allocation2 + $0x101] sm:$0x7f] %v9914_v0  ;;  %8092 = vmatpush3.bf16.msra.mxu0 %v9538_v6  ;;  %v373_v58 = vld [vmem:[%s10127_s6 + $0xa0] sm:$0xff]  ;;  %v374_v59 = vld [vmem:[%s10127_s6 + $0xa8] sm:$0xff] }
  0x7c   : > { %307 = vst [vmem:[#allocation2 + $0x119] sm:$0x7f] %v9914_v0  ;;  %308 = vst [vmem:[#allocation2 + $0x131] sm:$0x7f] %v9914_v0  ;;  %8093 = vmatprep.subr.bf16.mxu0 %v9539_v13  ;;  %v375_v1 = vld [vmem:[%s10127_s6 + $0xb0] sm:$0xff]  ;;  %v376_v3 = vld [vmem:[%s10127_s6 + $0xb8] sm:$0xff] }
  0x7d   : > { %309 = vst [vmem:[#allocation2 + $0x149] sm:$0x7f] %v9914_v0  ;;  %310 = vst [vmem:[#allocation2 + $0x161] sm:$0x7f] %v9914_v0  ;;  %v377_v4 = vld [vmem:[%s10127_s6 + $0xc0] sm:$0xff]  ;;  %v378_v5 = vld [vmem:[%s10127_s6 + $0xc8] sm:$0xff] }
  0x7e   : > { %311 = vst [vmem:[#allocation2 + $0x179] sm:$0x7f] %v9914_v0  ;;  %312 = vst [vmem:[#allocation2 + $0x191] sm:$0x7f] %v9914_v0  ;;  %s12726_s11 = scalar_lea.vmem [#allocation10], %s7496_s17  ;;  %s7652_s28 = sshll.u32 %s9970_s22, 12 }
  0x7f   : > { %321 = vst [vmem:[#allocation3 + $0x18] sm:$0x1] %v9914_v0  ;;  %322 = vst [vmem:[#allocation3 + $0x30] sm:$0x1] %v9914_v0  ;;  %8094 = vmatpush3.bf16.msra.mxu0 %v9539_v13  ;;  %s7395_s30 = sshll.u32 %s12726_s11, 4  ;;  %s12790_s9 = scalar_lea.hbm %s12844_s5, %s7652_s28  ;;  %s12792_s30 = int_to_ptr.vmem [resolvable:$true] %s7395_s30 }
  0x80   : > { %323 = vst [vmem:[#allocation3 + $0x48] sm:$0x1] %v9914_v0  ;;  %324 = vst [vmem:[#allocation3 + $0x60] sm:$0x1] %v9914_v0  ;;  %8095 = vmatprep.subr.bf16.mxu0 %v9540_v22  ;;  %s7382_s22 = scalar_lea.sflag [#allocation6], %s10121_s29  ;;  %s9835_s12 = scalar_lea.vmem %s12792_s30, 4096 }
  0x81   : > { %325 = vst [vmem:[#allocation3 + $0x78] sm:$0x1] %v9914_v0  ;;  %326 = vst [vmem:[#allocation3 + $0x90] sm:$0x1] %v9914_v0  ;;  %p9836_p11 = scmp.ne.s32.totalorder %s12792_s30, %s9835_s12  ;;  %p13642_p0 = scmp.ne.s32.totalorder %s13117_s23, 0 }
  0x82   : > { %327 = vst [vmem:[#allocation3 + $0xa8] sm:$0x1] %v9914_v0  ;;  %328 = vst [vmem:[#allocation3 + $0xc0] sm:$0x1] %v9914_v0  ;;  %s9916_s13 = smov [#allocation10]  }
  0x83   : > { %329 = vst [vmem:[#allocation3 + $0xd8] sm:$0x1] %v9914_v0  ;;  %330 = vst [vmem:[#allocation3 + $0xf0] sm:$0x1] %v9914_v0  ;;  %8096 = vmatpush3.bf16.msra.mxu0 %v9540_v22  ;;  %p9837_p1 = pnand %p9836_p11, %p13642_p0  ;;  %s9839_s17 = sshll.u32 %s9916_s13, 4  ;;  %s9840_s17 = int_to_ptr.vmem [resolvable:$false] %s9839_s17 }
  0x84   : > { %331 = vst [vmem:[#allocation3 + $0x108] sm:$0x1] %v9914_v0  ;;  %332 = vst [vmem:[#allocation3 + $0x120] sm:$0x1] %v9914_v0  ;;  %8097 = vmatprep.subr.bf16.mxu0 %v9541_v26  ;;  %s9841_s7 = scalar_lea.vmem %s9840_s17, 8192  ;;  %p9842_p7 = scmp.lt.s32.totalorder %s12792_s30, %s9840_s17 }
  0x85   : > { %333 = vst [vmem:[#allocation3 + $0x138] sm:$0x1] %v9914_v0  ;;  %334 = vst [vmem:[#allocation3 + $0x150] sm:$0x1] %v9914_v0  ;;  %p9838_p3 = pneg %p9837_p1  ;;  %p9843_p9 = scmp.lt.s32.totalorder %s9841_s7, %s9835_s12 }
  0x86   : > { %335 = vst [vmem:[#allocation3 + $0x168] sm:$0x1] %v9914_v0  ;;  %336 = vst [vmem:[#allocation3 + $0x180] sm:$0x1] %v9914_v0 }
  0x87   : > { %337 = vst [vmem:[#allocation3 + $0x29] sm:$0x7f] %v9914_v0  ;;  %338 = vst [vmem:[#allocation3 + $0x41] sm:$0x7f] %v9914_v0  ;;  %8098 = vmatpush3.bf16.msra.mxu0 %v9541_v26  ;;  %p9844_p12 = por %p9843_p9, %p9842_p7 }
  0x88   : > { %339 = vst [vmem:[#allocation3 + $0x59] sm:$0x7f] %v9914_v0  ;;  %340 = vst [vmem:[#allocation3 + $0x71] sm:$0x7f] %v9914_v0  ;;  %8099 = vmatprep.subr.bf16.mxu0 %v9542_v31 }
  0x89   : > { %341 = vst [vmem:[#allocation3 + $0x89] sm:$0x7f] %v9914_v0  ;;  %342 = vst [vmem:[#allocation3 + $0xa1] sm:$0x7f] %v9914_v0  ;;  %p9845_p2 = pnand %p9844_p12, %p9838_p3 }
  0x8a   : > { %343 = vst [vmem:[#allocation3 + $0xb9] sm:$0x7f] %v9914_v0  ;;  %344 = vst [vmem:[#allocation3 + $0xd1] sm:$0x7f] %v9914_v0 }
  0x8b   : > { %345 = vst [vmem:[#allocation3 + $0xe9] sm:$0x7f] %v9914_v0  ;;  %346 = vst [vmem:[#allocation3 + $0x101] sm:$0x7f] %v9914_v0  ;;  %8100 = vmatpush3.bf16.msra.mxu0 %v9542_v31 }
  0x8c   : > { %347 = vst [vmem:[#allocation3 + $0x119] sm:$0x7f] %v9914_v0  ;;  %348 = vst [vmem:[#allocation3 + $0x131] sm:$0x7f] %v9914_v0  ;;  %8133 = vmatprep.subr.bf16.mxu0 %v9543_v46 }
  0x8d   : > { %349 = vst [vmem:[#allocation3 + $0x149] sm:$0x7f] %v9914_v0  ;;  %350 = vst [vmem:[#allocation3 + $0x161] sm:$0x7f] %v9914_v0 }
  0x8e   : > { %351 = vst [vmem:[#allocation3 + $0x179] sm:$0x7f] %v9914_v0  ;;  %352 = vst [vmem:[#allocation3 + $0x191] sm:$0x7f] %v9914_v0 }
  0x8f   : > { %385 = vst [vmem:[#allocation2 + $0x19] sm:$0xff] %v353_v7  ;;  %386 = vst [vmem:[#allocation2 + $0x21] sm:$0xff] %v354_v8 }
  0x90   : > { %387 = vst [vmem:[#allocation2 + $0x31] sm:$0xff] %v355_v9  ;;  %388 = vst [vmem:[#allocation2 + $0x39] sm:$0xff] %v356_v10 }
  0x91   : > { %389 = vst [vmem:[#allocation2 + $0x49] sm:$0xff] %v357_v11  ;;  %390 = vst [vmem:[#allocation2 + $0x51] sm:$0xff] %v358_v12 }
  0x92   : > { %391 = vst [vmem:[#allocation2 + $0x61] sm:$0xff] %v359_v14  ;;  %392 = vst [vmem:[#allocation2 + $0x69] sm:$0xff] %v360_v15  ;;  %v379_v14 = vld [vmem:[%s10127_s6 + $0xd0] sm:$0xff]  ;;  %v380_v15 = vld [vmem:[%s10127_s6 + $0xd8] sm:$0xff] }
  0x93   : > { %393 = vst [vmem:[#allocation2 + $0x79] sm:$0xff] %v361_v16  ;;  %394 = vst [vmem:[#allocation2 + $0x81] sm:$0xff] %v362_v17  ;;  %v381_v16 = vld [vmem:[%s10127_s6 + $0xe0] sm:$0xff]  ;;  %v9544_v17 = vld [vmem:[#allocation7 + $0x8] sm:$0xff]  }
  0x94   : > { %395 = vst [vmem:[#allocation2 + $0x91] sm:$0xff] %v363_v18  ;;  %396 = vst [vmem:[#allocation2 + $0x99] sm:$0xff] %v364_v19 }
  0x95   : > { %397 = vst [vmem:[#allocation2 + $0xa9] sm:$0xff] %v365_v20  ;;  %398 = vst [vmem:[#allocation2 + $0xb1] sm:$0xff] %v366_v21 }
  0x96   : > { %v420_v23 = vld [vmem:[#allocation2 + $0x18] sm:$0xff]  ;;  %v421_v24 = vld [vmem:[#allocation2 + $0x20] sm:$0xff]  ;;  %v422_v27 = vld [vmem:[#allocation2 + $0x28] sm:$0xff]  ;;  %399 = vst [vmem:[#allocation2 + $0xc1] sm:$0xff] %v367_v40 }
  0x97   : > { %v10221_v25 = vpack.c.bf16 %v421_v24, %v420_v23  ;;  %v423_v28 = vld [vmem:[#allocation2 + $0x30] sm:$0xff]  ;;  %v424_v29 = vld [vmem:[#allocation2 + $0x38] sm:$0xff]  ;;  %v425_v30 = vld [vmem:[#allocation2 + $0x40] sm:$0xff]  ;;  %v551_v32 = vrot.slane %v420_v23, 1  ;;  %v10223_v33 = vrot.slane %v421_v24, 1  ;;  %v554_v34 = vrot.slane %v422_v27, 1 }
  0x98   : > { %v556_v35 = vrot.slane %v423_v28, 1  ;;  %v10225_v36 = vrot.slane %v424_v29, 1  ;;  %v559_v37 = vrot.slane %v425_v30, 1  ;;  %v10227_v38 = vld [vmem:[#allocation2 + $0x48] sm:$0xff]  ;;  %v427_v39 = vld [vmem:[#allocation2 + $0x50] sm:$0xff]  ;;  %400 = vst [vmem:[#allocation2 + $0xc9] sm:$0xff] %v368_v41  ;;  %v10257_v60 = vpack.c.bf16 %v424_v29, %v423_v28 }
  0x99   : > { %v10232_v43 = vld [vmem:[#allocation2 + $0x60] sm:$0xff]  ;;  %v430_v44 = vld [vmem:[#allocation2 + $0x68] sm:$0xff]  ;;  %401 = vst [vmem:[#allocation2 + $0xd9] sm:$0xff] %v369_v42  ;;  %v10235_v47 = vld [vmem:[#allocation2 + $0x58] sm:$0xff]  ;;  %v10251_v55 = vsel %vm545_vm0, %v551_v32, %v10223_v33  ;;  %v555_v56 = vsel %vm545_vm0, %v10223_v33, %v554_v34  ;;  %v10260_v61 = vpack.c.bf16 %v427_v39, %v10227_v38  ;;  %v561_v11 = vrot.slane %v10227_v38, 1 }
  0x9a   : > { %v10237_v48 = vld [vmem:[#allocation2 + $0x78] sm:$0xff]  ;;  %v10239_v49 = vld [vmem:[#allocation2 + $0x80] sm:$0xff]  ;;  %402 = vst [vmem:[#allocation2 + $0xe1] sm:$0xff] %v370_v45  ;;  %v431_v57 = vld [vmem:[#allocation2 + $0x70] sm:$0xff]  ;;  %v10264_v62 = vsel %vm545_vm0, %v556_v35, %v10225_v36  ;;  %v560_v63 = vsel %vm545_vm0, %v10225_v36, %v559_v37  ;;  %v10272_v2 = vpack.c.bf16 %v430_v44, %v10232_v43  ;;  %v659_v9 = vpack.c.bf16 %v555_v56, %v10251_v55 }
  0x9b   : > { %v10241_v50 = vld [vmem:[#allocation2 + $0x90] sm:$0xff]  ;;  %v10243_v51 = vld [vmem:[#allocation2 + $0x98] sm:$0xff]  ;;  %403 = vst [vmem:[#allocation2 + $0xf1] sm:$0xff] %v371_v53  ;;  %404 = vst [vmem:[#allocation2 + $0xf9] sm:$0xff] %v372_v54  ;;  %v10279_v6 = vpack.c.bf16 %v10239_v49, %v10237_v48  ;;  %v660_v10 = vpack.c.bf16 %v560_v63, %v10264_v62  ;;  %v10292_v12 = vrot.slane %v427_v39, 1  ;;  %v564_v13 = vrot.slane %v10235_v47, 1 }
  0x9c   : > { %v10245_v52 = vld [vmem:[#allocation2 + $0xa8] sm:$0xff]  ;;  %v10268_v0 = vld [vmem:[#allocation2 + $0xb0] sm:$0xff]  ;;  %405 = vst [vmem:[#allocation2 + $0x109] sm:$0xff] %v373_v58  ;;  %406 = vst [vmem:[#allocation2 + $0x111] sm:$0xff] %v374_v59  ;;  %v10283_v7 = vpack.c.bf16 %v10243_v51, %v10241_v50  ;;  %v566_v18 = vrot.slane %v10232_v43, 1  ;;  %v10299_v19 = vrot.slane %v430_v44, 1  ;;  %8102 = vmatmul.mubr.bf16.vlgmr.msra.gmra.mrb[0].mxu0 %v659_v9 }
  0x9d   : > { %407 = vst [vmem:[#allocation2 + $0x121] sm:$0xff] %v375_v1  ;;  %v10287_v8 = vpack.c.bf16 %v10268_v0, %v10245_v52  ;;  %408 = vst [vmem:[#allocation2 + $0x129] sm:$0xff] %v376_v3  ;;  %v569_v20 = vrot.slane %v431_v57, 1  ;;  %v10301_v21 = vld [vmem:[#allocation2 + $0xc0] sm:$0xff]  ;;  %8134 = vmatpush3.bf16.msra.mxu0 %v9543_v46  ;;  %8105 = vmatprep.mubr.bf16.mxu0 %v660_v10  ;;  %v10319_v28 = vsel %vm545_vm0, %v561_v11, %v10292_v12  ;;  %v9545_v30 = vld [vmem:[#allocation7 + $0x10] sm:$0xff]  }
  0x9e   : > { %409 = vst [vmem:[#allocation2 + $0x139] sm:$0xff] %v377_v4  ;;  %410 = vst [vmem:[#allocation2 + $0x141] sm:$0xff] %v378_v5  ;;  %v565_v29 = vsel %vm545_vm0, %v10292_v12, %v564_v13  ;;  %8135 = vmatprep.subr.bf16.mxu0 %v9544_v17  ;;  %v10325_v31 = vsel %vm545_vm0, %v566_v18, %v10299_v19  ;;  %v10329_v34 = vld [vmem:[#allocation2 + $0x88] sm:$0xff]  ;;  %v10332_v37 = vld [vmem:[#allocation2 + $0xa0] sm:$0xff]  ;;  %v571_v39 = vrot.slane %v10237_v48, 1  ;;  %v10337_v40 = vrot.slane %v10239_v49, 1 }
  0x9f   : > { %v10303_v22 = vld [vmem:[#allocation2 + $0xc8] sm:$0xff]  ;;  %411 = vst [vmem:[#allocation2 + $0x151] sm:$0xff] %v379_v14  ;;  %412 = vst [vmem:[#allocation2 + $0x159] sm:$0xff] %v380_v15  ;;  %v570_v32 = vsel %vm545_vm0, %v10299_v19, %v569_v20  ;;  %v661_v38 = vpack.c.bf16 %v565_v29, %v10319_v28  ;;  %v574_v42 = vrot.slane %v10329_v34, 1  ;;  %v576_v43 = vrot.slane %v10241_v50, 1  ;;  %v9546_v45 = vld [vmem:[#allocation7 + $0x18] sm:$0xff]  }
  0xa0   : > { %413 = vst [vmem:[#allocation2 + $0x169] sm:$0xff] %v381_v16  ;;  %v10305_v23 = vld [vmem:[#allocation2 + $0xd8] sm:$0xff]  ;;  %v10311_v26 = vpack.c.bf16 %v10303_v22, %v10301_v21  ;;  %13122 = vst [vmem:[#allocation14_spill] sm:$0xff] %v10325_v31  ;;  %v382_v35 = vld [vmem:[%s10127_s6 + $0xe8] sm:$0xff]  ;;  %v662_v41 = vpack.c.bf16 %v570_v32, %v10325_v31  ;;  %v10343_v44 = vrot.slane %v10243_v51, 1  ;;  %v579_v46 = vrot.slane %v10332_v37, 1 }
  0xa1   : > { %v10307_v24 = vld [vmem:[#allocation2 + $0xe0] sm:$0xff]  ;;  %414 = vst [vmem:[#allocation2 + $0x171] sm:$0xff] %v382_v35  ;;  %13123 = vst [vmem:[#allocation15_spill] sm:$0xff] %v10337_v40  ;;  %8136 = vmatpush3.bf16.msra.mxu0 %v9544_v17  ;;  %v10346_v47 = vld [vmem:[#allocation2 + $0xb8] sm:$0xff]  ;;  %v10362_v51 = vsel %vm545_vm0, %v571_v39, %v10337_v40  ;;  %v575_v59 = vsel %vm545_vm0, %v10337_v40, %v574_v42  ;;  %v581_v1 = vrot.slane %v10245_v52, 1  ;;  %v10400_v15 = vrot.slane %v10268_v0, 1 }
  0xa2   : > { %v10315_v27 = vpack.c.bf16 %v10307_v24, %v10305_v23  ;;  %13124 = vst [vmem:[#allocation16_spill] sm:$0xff] %v10343_v44  ;;  %8137 = vmatprep.subr.bf16.mxu0 %v9545_v30  ;;  %v10348_v48 = vld [vmem:[#allocation2 + $0xf0] sm:$0xff]  ;;  %v10350_v49 = vld [vmem:[#allocation2 + $0xf8] sm:$0xff]  ;;  %13125 = vst [vmem:[#allocation17_spill] sm:$0xff] %v10362_v51  ;;  %v10370_v63 = vsel %vm545_vm0, %v576_v43, %v10343_v44  ;;  %v580_v9 = vsel %vm545_vm0, %v10343_v44, %v579_v46 }
  0xa3   : > { %v10352_v53 = vld [vmem:[#allocation2 + $0x108] sm:$0xff]  ;;  %v10354_v54 = vld [vmem:[#allocation2 + $0x110] sm:$0xff]  ;;  %v9547_v57 = vld [vmem:[#allocation7 + $0x20] sm:$0xff]   ;;  %13126 = vst [vmem:[#allocation18_spill] sm:$0xff] %v10370_v63  ;;  %v10379_v5 = vpack.c.bf16 %v10350_v49, %v10348_v48  ;;  %v584_v16 = vrot.slane %v10346_v47, 1  ;;  %v663_v29 = vpack.c.bf16 %v575_v59, %v10362_v51  ;;  %v664_v32 = vpack.c.bf16 %v580_v9, %v10370_v63 }
  0xa4   : > { %v10356_v56 = vld [vmem:[#allocation2 + $0x120] sm:$0xff]  ;;  %v10358_v50 = vld [vmem:[#allocation2 + $0x128] sm:$0xff]  ;;  %8106 = vmatmul.mubr.bf16.gmra.mrb[4].mxu0 %v661_v38  ;;  %v10373_v3 = vld [vmem:[#allocation2 + $0xd0] sm:$0xff]  ;;  %v10389_v13 = vpack.c.bf16 %v10354_v54, %v10352_v53  ;;  %13127 = vst [vmem:[#allocation19_spill] sm:$0xff] %v10400_v15  ;;  %v586_v0 = vrot.slane %v10301_v21, 1  ;;  %v10419_v38 = vrot.slane %v10303_v22, 1 }
  0xa5   : > { %v10364_v58 = vld [vmem:[#allocation2 + $0x138] sm:$0xff]  ;;  %8109 = vmatprep.mubr.bf16.mxu0 %v662_v41  ;;  %8138 = vmatpush3.bf16.msra.mxu0 %v9545_v30  ;;  %v10375_v4 = vld [vmem:[#allocation2 + $0x140] sm:$0xff]  ;;  %v10393_v52 = vpack.c.bf16 %v10358_v50, %v10356_v56  ;;  %v9548_v35 = vld [vmem:[#allocation7 + $0x28] sm:$0xff]   ;;  %v589_v39 = vrot.slane %v10373_v3, 1  ;;  %v10424_v41 = vsel %vm545_vm0, %v581_v1, %v10400_v15  ;;  %v585_v42 = vsel %vm545_vm0, %v10400_v15, %v584_v16 }
  0xa6   : > { %8139 = vmatprep.subr.bf16.mxu0 %v9546_v45  ;;  %v10383_v10 = vld [vmem:[#allocation2 + $0x150] sm:$0xff]  ;;  %v10385_v11 = vld [vmem:[#allocation2 + $0x158] sm:$0xff]  ;;  %v10397_v14 = vpack.c.bf16 %v10375_v4, %v10364_v58  ;;  %13128 = vst [vmem:[#allocation20_spill] sm:$0xff] %v10419_v38  ;;  %13129 = vst [vmem:[#allocation21_spill] sm:$0xff] %v10424_v41  ;;  %v10432_v21 = vsel %vm545_vm0, %v586_v0, %v10419_v38  ;;  %v665_v46 = vpack.c.bf16 %v585_v42, %v10424_v41 }
  0xa7   : > { %v10403_v17 = vld [vmem:[#allocation2 + $0x168] sm:$0xff]  ;;  %v10409_v20 = vpack.c.bf16 %v10385_v11, %v10383_v10  ;;  %13130 = vst [vmem:[#allocation22_spill] sm:$0xff] %v10432_v21  ;;  %v590_v22 = vsel %vm545_vm0, %v10419_v38, %v589_v39  ;;  %v10437_v59 = vld [vmem:[#allocation2 + $0x100] sm:$0xff]  ;;  %v591_v1 = vrot.slane %v10305_v23, 1  ;;  %v10441_v9 = vrot.slane %v10307_v24, 1  ;;  %v10449_v0 = vld [vmem:[#allocation2 + $0x118] sm:$0xff] }
  0xa8   : > { %v10405_v18 = vld [vmem:[#allocation2 + $0x170] sm:$0xff]  ;;  %v10428_v43 = vld [vmem:[#allocation2 + $0xe8] sm:$0xff]  ;;  %v596_v16 = vrot.slane %v10348_v48, 1  ;;  %v599_v39 = vrot.slane %v10437_v59, 1  ;;  %v9550_v42 = vld [vmem:[#allocation7 + $0x38] sm:$0xff]   ;;  %v10462_v38 = vrot.slane %v10354_v54, 1 }
  0xa9   : > { %v10414_v30 = vpack.c.bf16 %v10405_v18, %v10403_v17  ;;  %8140 = vmatpush3.bf16.msra.mxu0 %v9546_v45  ;;  %v9549_v45 = vld [vmem:[#allocation7 + $0x30] sm:$0xff]   ;;  %13131 = vst [vmem:[#allocation23_spill] sm:$0xff] %v10441_v9  ;;  %v10456_v24 = vsel %vm545_vm0, %v591_v1, %v10441_v9  ;;  %v606_v41 = vrot.slane %v10356_v56, 1  ;;  %v10467_v63 = vrot.slane %v10358_v50, 1  ;;  %v10477_v15 = vld [vmem:[#allocation2 + $0x148] sm:$0xff]  ;;  %v10479_v56 = vld [vmem:[#allocation2 + $0x160] sm:$0xff] }
  0xaa   : > { %8141 = vmatprep.subr.bf16.mxu0 %v9547_v57  ;;  %v10452_v23 = vld [vmem:[#allocation2 + $0x130] sm:$0xff]  ;;  %13133 = vst [vmem:[#allocation25_spill] sm:$0xff] %v10456_v24  ;;  %13134 = vst [vmem:[#allocation26_spill] sm:$0xff] %v10462_v38  ;;  %v10516_v44 = vrot.slane %v10405_v18, 1  ;;  %v9690_v51 = vld [vmem:[#allocation2 + $0x68] sm:$0xff] }
  0xab   : > { %13135 = vst [vmem:[#allocation27_spill] sm:$0xff] %v10467_v63  ;;  %v9691_v31 = vld [vmem:[#allocation2 + $0x70] sm:$0xff] }
  0xac   : > { %8110 = vmatmul.mubr.bf16.gmra.mrb[8].mxu0 %v663_v29  ;;  %v666_v29 = vpack.c.bf16 %v590_v22, %v10432_v21  ;;  %v601_v21 = vrot.slane %v10352_v53, 1  ;;  %13142 = vst [vmem:[#allocation34_spill] sm:$0xff] %v10516_v44  ;;  %v1133_v40 = vrot.slane %v9691_v31, 2 }
  0xad   : > { %8113 = vmatprep.mubr.bf16.mxu0 %v664_v32  ;;  %8142 = vmatpush3.bf16.msra.mxu0 %v9547_v57  ;;  %v594_v57 = vrot.slane %v10428_v43, 1  ;;  %v10447_v32 = vrot.slane %v10350_v49, 1 }
  0xae   : > { %8143 = vmatprep.subr.bf16.mxu0 %v9548_v35 }
  0xaf   : > { %13132 = vst [vmem:[#allocation24_spill] sm:$0xff] %v10447_v32  ;;  %v595_v22 = vsel %vm545_vm0, %v10441_v9, %v594_v57  ;;  %v600_v1 = vsel %vm545_vm0, %v10447_v32, %v599_v39  ;;  %v609_v57 = vrot.slane %v10452_v23, 1  ;;  %v611_v39 = vrot.slane %v10364_v58, 1 }
  0xb0   : > { %v667_v9 = vpack.c.bf16 %v595_v22, %v10456_v24  ;;  %v10490_v22 = vrot.slane %v10375_v4, 1 }
  0xb1   : > { %8144 = vmatpush3.bf16.msra.mxu0 %v9548_v35  ;;  %v604_v35 = vrot.slane %v10449_v0, 1  ;;  %v610_v58 = vsel %vm545_vm0, %v10467_v63, %v609_v57 }
  0xb2   : > { %8145 = vmatprep.subr.bf16.mxu0 %v9549_v45  ;;  %13138 = vst [vmem:[#allocation30_spill] sm:$0xff] %v10490_v22 }
  0xb4   : > { %8114 = vmatmul.mubr.bf16.gmra.mrb[12].mxu0 %v665_v46  ;;  %v10471_v46 = vsel %vm545_vm0, %v596_v16, %v10447_v32  ;;  %v605_v16 = vsel %vm545_vm0, %v10462_v38, %v604_v35  ;;  %v614_v32 = vrot.slane %v10477_v15, 1 }
  0xb5   : > { %8117 = vmatprep.mubr.bf16.mxu0 %v666_v29  ;;  %8146 = vmatpush3.bf16.msra.mxu0 %v9549_v45  ;;  %13136 = vst [vmem:[#allocation28_spill] sm:$0xff] %v10471_v46  ;;  %v9551_v29 = vld [vmem:[#allocation7 + $0x80] sm:$0xff]   ;;  %v668_v50 = vpack.c.bf16 %v600_v1, %v10471_v46  ;;  %v10484_v45 = vsel %vm545_vm0, %v601_v21, %v10462_v38  ;;  %v616_v1 = vrot.slane %v10383_v10, 1  ;;  %v10505_v46 = vld [vmem:[#allocation2 + $0x178] sm:$0xff] }
  0xb6   : > { %8147 = vmatprep.subr.bf16.mxu0 %v9550_v42  ;;  %13137 = vst [vmem:[#allocation29_spill] sm:$0xff] %v10484_v45  ;;  %v10500_v21 = vsel %vm545_vm0, %v606_v41, %v10467_v63  ;;  %v669_v35 = vpack.c.bf16 %v605_v16, %v10484_v45  ;;  %v10510_v38 = vsel %vm545_vm0, %v611_v39, %v10490_v22  ;;  %v621_v41 = vrot.slane %v10403_v17, 1  ;;  %v9560_v45 = vld [vmem:[#allocation7 + $0xc8] sm:$0xff]  }
  0xb7   : > { %13140 = vst [vmem:[#allocation32_spill] sm:$0xff] %v10500_v21  ;;  %13141 = vst [vmem:[#allocation33_spill] sm:$0xff] %v10510_v38  ;;  %v615_v24 = vsel %vm545_vm0, %v10490_v22, %v614_v32  ;;  %v624_v57 = vrot.slane %v10505_v46, 1  ;;  %v9552_v22 = vld [vmem:[#allocation7 + $0x88] sm:$0xff]  }
  0xb8   : > { %v671_v39 = vpack.c.bf16 %v615_v24, %v10510_v38  ;;  %v10529_v32 = vsel %vm545_vm0, %v621_v41, %v10516_v44  ;;  %v9553_v24 = vld [vmem:[#allocation7 + $0x90] sm:$0xff]   ;;  %v9555_v41 = vld [vmem:[#allocation7 + $0xa0] sm:$0xff]  }
  0xb9   : > { %8148 = vmatpush3.bf16.msra.mxu0 %v9550_v42  ;;  %v10495_v42 = vrot.slane %v10385_v11, 1  ;;  %13144 = vst [vmem:[#allocation36_spill] sm:$0xff] %v10529_v32 }
  0xba   : > { %8181 = vmatprep.subr.bf16.mxu0 %v9551_v29 }
  0xbb   : > { %13139 = vst [vmem:[#allocation31_spill] sm:$0xff] %v10495_v42  ;;  %v10521_v16 = vsel %vm545_vm0, %v616_v1, %v10495_v42  ;;  %v9915_v1 = vmov 0.0|0.0  }
  0xbc   : > { %8118 = vmatmul.mubr.bf16.gmra.mrb[16].mxu0 %v667_v9  ;;  %v619_v9 = vrot.slane %v10479_v56, 1  ;;  %13143 = vst [vmem:[#allocation35_spill] sm:$0xff] %v10521_v16 }
  0xbd   : > { %8121 = vmatprep.mubr.bf16.mxu0 %v668_v50  ;;  %v670_v50 = vpack.c.bf16 %v610_v58, %v10500_v21 }
  0xbe   : > { %v620_v58 = vsel %vm545_vm0, %v10495_v42, %v619_v9  ;;  %v9554_v9 = vld [vmem:[#allocation7 + $0x98] sm:$0xff]  }
  0xc4   : > { %8122 = vmatmul.mubr.bf16.gmra.mrb[20].mxu0 %v669_v35  ;;  %v672_v35 = vpack.c.bf16 %v620_v58, %v10521_v16  ;;  %v383_v58 = vld [vmem:[%s10127_s6 + $0xf0] sm:$0xff] }
  0xc5   : > { %8125 = vmatprep.mubr.bf16.mxu0 %v670_v50  ;;  %v625_v50 = vsel %vm545_vm0, %v10516_v44, %v624_v57  ;;  %v9557_v57 = vld [vmem:[#allocation7 + $0xb0] sm:$0xff]   ;;  %415 = vst [vmem:[#allocation2 + $0x181] sm:$0xff] %v383_v58  ;;  %v9684_v44 = vld [vmem:[#allocation2 + $0x38] sm:$0xff]  ;;  %v9685_v58 = vld [vmem:[#allocation2 + $0x40] sm:$0xff] }
  0xc6   : > { %v673_v21 = vpack.c.bf16 %v625_v50, %v10529_v32  ;;  %v9683_v32 = vld [vmem:[#allocation2 + $0x30] sm:$0xff]  ;;  %v10555_v42 = vrot.slane %v9684_v44, 2 }
  0xc7   : > { %v1120_v16 = vrot.slane %v9683_v32, 2 }
  0xcc   : > { %8126 = vmatmul.mubr.bf16.gmra.mrb[24].mxu0 %v671_v39  ;;  %v384_v39 = vld [vmem:[%s10127_s6 + $0xf8] sm:$0xff] }
  0xcd   : > { %8129 = vmatprep.mubr.bf16.mxu0 %v672_v35  ;;  %v10548_v35 = vld [vmem:[#allocation2] sm:$0xff]  ;;  %416 = vst [vmem:[#allocation2 + $0x189] sm:$0xff] %v384_v39  ;;  %v1123_v39 = vrot.slane %v9685_v58, 2  ;;  %v9687_v58 = vld [vmem:[#allocation2 + $0x50] sm:$0xff] }
  0xce   : > { %13145 = vst [vmem:[#allocation37_spill] sm:$0xff] %v10548_v35  ;;  %v1113_v50 = vrot.slane %v10548_v35, 2  ;;  %v10572_v38 = vrot.slane %v9687_v58, 2 }
  0xcf   : > { %v1124_v44 = vsel %vm1109_vm1, %v10555_v42, %v1123_v39 }
  0xd4   : > { %8130 = vmatmul.mubr.bf16.gmra.mrb[28].mxu0 %v673_v21  ;;  %v9556_v21 = vld [vmem:[#allocation7 + $0xa8] sm:$0xff]  }
  0xd5   : > { %8149 = vmatprep.mubr.bf16.mxu0 %v9915_v1  ;;  %v9680_v1 = vld [vmem:[#allocation2 + $0x18] sm:$0xff] }
  0xdc   : > { %8150 = vmatmul.mubr.bf16.vlgmr.msra.gmra.mrb[0].mxu0 %v10221_v25 }
  0xdd   : > { %8182 = vmatpush3.bf16.msra.mxu0 %v9551_v29  ;;  %8153 = vmatprep.mubr.bf16.mxu0 %v10257_v60  ;;  %v9558_v29 = vld [vmem:[#allocation7 + $0xb8] sm:$0xff]  }
  0xde   : > { %8183 = vmatprep.subr.bf16.mxu0 %v9552_v22 }
  0xe1   : > { %8184 = vmatpush3.bf16.msra.mxu0 %v9552_v22  ;;  %v9559_v22 = vld [vmem:[#allocation7 + $0xc0] sm:$0xff]  }
  0xe2   : > { %8185 = vmatprep.subr.bf16.mxu0 %v9553_v24 }
  0xe4   : > { %8154 = vmatmul.mubr.bf16.gmra.mrb[4].mxu0 %v10260_v61 }
  0xe5   : > { %8157 = vmatprep.mubr.bf16.mxu0 %v10272_v2  ;;  %8186 = vmatpush3.bf16.msra.mxu0 %v9553_v24  ;;  %v1115_v24 = vrot.slane %v9680_v1, 2 }
  0xe6   : > { %8187 = vmatprep.subr.bf16.mxu0 %v9554_v9 }
  0xe9   : > { %8188 = vmatpush3.bf16.msra.mxu0 %v9554_v9  ;;  %v9681_v9 = vld [vmem:[#allocation2 + $0x20] sm:$0xff] }
  0xea   : > { %8189 = vmatprep.subr.bf16.mxu0 %v9555_v41 }
  0xec   : > { %8158 = vmatmul.mubr.bf16.gmra.mrb[8].mxu0 %v10279_v6 }
  0xed   : > { %8161 = vmatprep.mubr.bf16.mxu0 %v10283_v7  ;;  %8190 = vmatpush3.bf16.msra.mxu0 %v9555_v41  ;;  %v10553_v41 = vrot.slane %v9681_v9, 2 }
  0xee   : > { %8191 = vmatprep.subr.bf16.mxu0 %v9556_v21 }
  0xef   : > { %13146 = vst [vmem:[#allocation38_spill] sm:$0xff] %v10553_v41  ;;  %v10560_v35 = vsel %vm1109_vm1, %v1115_v24, %v10553_v41  ;;  %v9688_v24 = vld [vmem:[#allocation2 + $0x58] sm:$0xff] }
  0xf0   : > { %v1128_v63 = vrot.slane %v9688_v24, 2  ;;  %v9694_v24 = vld [vmem:[#allocation2 + $0x90] sm:$0xff] }
  0xf1   : > { %8192 = vmatpush3.bf16.msra.mxu0 %v9556_v21  ;;  %v9682_v21 = vld [vmem:[#allocation2 + $0x28] sm:$0xff] }
  0xf2   : > { %8193 = vmatprep.subr.bf16.mxu0 %v9557_v57 }
  0xf4   : > { %8162 = vmatmul.mubr.bf16.gmra.mrb[12].mxu0 %v10287_v8 }
  0xf5   : > { %8165 = vmatprep.mubr.bf16.mxu0 %v10311_v26  ;;  %8194 = vmatpush3.bf16.msra.mxu0 %v9557_v57  ;;  %v1118_v57 = vrot.slane %v9682_v21, 2  ;;  %v9686_v21 = vld [vmem:[#allocation2 + $0x48] sm:$0xff] }
  0xf6   : > { %8195 = vmatprep.subr.bf16.mxu0 %v9558_v29 }
  0xf7   : > { %v1119_v1 = vsel %vm1109_vm1, %v10553_v41, %v1118_v57  ;;  %v9689_v57 = vld [vmem:[#allocation2 + $0x60] sm:$0xff] }
  0xf8   : > { %v1223_v32 = vpack.c.bf16 %v1119_v1, %v10560_v35  ;;  %v1130_v41 = vrot.slane %v9689_v57, 2  ;;  %v1129_v1 = vsel %vm1109_vm1, %v10572_v38, %v1128_v63  ;;  %v1138_v63 = vrot.slane %v10329_v34, 2  ;;  %v9695_v57 = vld [vmem:[#allocation2 + $0x98] sm:$0xff] }
  0xf9   : > { %8196 = vmatpush3.bf16.msra.mxu0 %v9558_v29  ;;  %v1222_v29 = vpack.c.bf16 %v1113_v50, %v1113_v50  ;;  %v10566_v50 = vsel %vm1109_vm1, %v1120_v16, %v10555_v42  ;;  %v10574_v16 = vrot.slane %v9690_v51, 2 }
  0xfa   : > { %8229 = vmatprep.subr.bf16.mxu0 %v9559_v22  ;;  %13147 = vst [vmem:[#allocation39_spill] sm:$0xff] %v10566_v50  ;;  %v1224_v9 = vpack.c.bf16 %v1124_v44, %v10566_v50  ;;  %v10593_v50 = vrot.slane %v9695_v57, 2  ;;  %v9699_v57 = vld [vmem:[#allocation2 + $0xc8] sm:$0xff] }
  0xfb   : > { %13148 = vst [vmem:[#allocation40_spill] sm:$0xff] %v10574_v16  ;;  %v10584_v44 = vsel %vm1109_vm1, %v1130_v41, %v10574_v16  ;;  %v1134_v51 = vsel %vm1109_vm1, %v10574_v16, %v1133_v40  ;;  %v1140_v41 = vrot.slane %v9694_v24, 2  ;;  %v1143_v40 = vrot.slane %v10332_v37, 2  ;;  %v9562_v16 = vld [vmem:[#allocation7 + $0xd8] sm:$0xff]   ;;  %v9563_v37 = vld [vmem:[#allocation7 + $0xe0] sm:$0xff]  }
  0xfc   : > { %8166 = vmatmul.mubr.bf16.gmra.mrb[16].mxu0 %v10315_v27  ;;  %13149 = vst [vmem:[#allocation41_spill] sm:$0xff] %v10584_v44  ;;  %13150 = vst [vmem:[#allocation42_spill] sm:$0xff] %v10593_v50 }
  0xfd   : > { %8169 = vmatprep.mubr.bf16.mxu0 %v10379_v5  ;;  %v10604_v34 = vsel %vm1109_vm1, %v1140_v41, %v10593_v50 }
 0x104   : > { %8170 = vmatmul.mubr.bf16.gmra.mrb[20].mxu0 %v10389_v13 }
 0x105   : > { %8173 = vmatprep.mubr.bf16.mxu0 %v10393_v52 }
 0x10c   : > { %8174 = vmatmul.mubr.bf16.gmra.mrb[24].mxu0 %v10397_v14 }
 0x10d   : > { %8177 = vmatprep.mubr.bf16.mxu0 %v10409_v20 }
 0x114   : > { %8178 = vmatmul.mubr.bf16.gmra.mrb[28].mxu0 %v10414_v30 }
 0x115   : > { %8197 = vmatprep.mubr.bf16.mxu0 %v1222_v29  ;;  %v1125_v29 = vrot.slane %v9686_v21, 2  ;;  %v9561_v21 = vld [vmem:[#allocation7 + $0xd0] sm:$0xff]  }
 0x117   : > { %v10578_v39 = vsel %vm1109_vm1, %v1125_v29, %v10572_v38  ;;  %v9693_v29 = vld [vmem:[#allocation2 + $0x80] sm:$0xff] }
 0x118   : > { %v1225_v31 = vpack.c.bf16 %v1129_v1, %v10578_v39  ;;  %v10590_v58 = vrot.slane %v9693_v29, 2  ;;  %v9697_v29 = vld [vmem:[#allocation2 + $0xb0] sm:$0xff] }
 0x119   : > { %v10610_v24 = vrot.slane %v9697_v29, 2  ;;  %v9701_v29 = vld [vmem:[#allocation2 + $0xe0] sm:$0xff] }
 0x11a   : > { %v1139_v1 = vsel %vm1109_vm1, %v10590_v58, %v1138_v63  ;;  %v9698_v63 = vld [vmem:[#allocation2 + $0xc0] sm:$0xff] }
 0x11b   : > { %v1150_v41 = vrot.slane %v9698_v63, 2  ;;  %v10630_v63 = vrot.slane %v9701_v29, 2  ;;  %v9703_v29 = vld [vmem:[#allocation2 + $0x128] sm:$0xff] }
 0x11c   : > { %8198 = vmatmul.mubr.bf16.vlgmr.msra.gmra.mrb[0].mxu0 %v1223_v32  ;;  %v9692_v32 = vld [vmem:[#allocation2 + $0x78] sm:$0xff] }
 0x11d   : > { %8230 = vmatpush3.bf16.msra.mxu0 %v9559_v22  ;;  %8201 = vmatprep.mubr.bf16.mxu0 %v1224_v9  ;;  %v1226_v22 = vpack.c.bf16 %v1134_v51, %v10584_v44  ;;  %v1135_v9 = vrot.slane %v9692_v32, 2  ;;  %v1144_v51 = vsel %vm1109_vm1, %v10593_v50, %v1143_v40  ;;  %v9696_v32 = vld [vmem:[#allocation2 + $0xa8] sm:$0xff]  ;;  %v10613_v44 = vrot.slane %v9699_v57, 2 }
 0x11e   : > { %8231 = vmatprep.subr.bf16.mxu0 %v9560_v45  ;;  %v1153_v40 = vrot.slane %v10373_v3, 2  ;;  %v9564_v50 = vld [vmem:[#allocation7 + $0xe8] sm:$0xff]   ;;  %v9565_v3 = vld [vmem:[#allocation7 + $0xf0] sm:$0xff]   ;;  %v1163_v57 = vrot.slane %v10437_v59, 2 }
 0x121   : > { %8232 = vmatpush3.bf16.msra.mxu0 %v9560_v45  ;;  %v10598_v45 = vsel %vm1109_vm1, %v1135_v9, %v10590_v58  ;;  %v1145_v9 = vrot.slane %v9696_v32, 2  ;;  %v9700_v32 = vld [vmem:[#allocation2 + $0xd8] sm:$0xff] }
 0x122   : > { %8233 = vmatprep.subr.bf16.mxu0 %v9561_v21 }
 0x124   : > { %8202 = vmatmul.mubr.bf16.gmra.mrb[4].mxu0 %v1225_v31  ;;  %v1227_v31 = vpack.c.bf16 %v1139_v1, %v10598_v45  ;;  %v10618_v1 = vsel %vm1109_vm1, %v1145_v9, %v10610_v24  ;;  %v1155_v9 = vrot.slane %v9700_v32, 2  ;;  %v9702_v32 = vld [vmem:[#allocation2 + $0x120] sm:$0xff] }
 0x125   : > { %8205 = vmatprep.mubr.bf16.mxu0 %v1226_v22  ;;  %8234 = vmatpush3.bf16.msra.mxu0 %v9561_v21  ;;  %v1228_v22 = vpack.c.bf16 %v1144_v51, %v10604_v34  ;;  %v1148_v21 = vrot.slane %v10346_v47, 2  ;;  %v10624_v47 = vsel %vm1109_vm1, %v1150_v41, %v10613_v44  ;;  %v10635_v41 = vrot.slane %v10350_v49, 2 }
 0x126   : > { %8235 = vmatprep.subr.bf16.mxu0 %v9562_v16 }
 0x127   : > { %v1149_v51 = vsel %vm1109_vm1, %v10610_v24, %v1148_v21  ;;  %v1160_v21 = vrot.slane %v10348_v48, 2  ;;  %v1164_v49 = vsel %vm1109_vm1, %v10635_v41, %v1163_v57 }
 0x129   : > { %8236 = vmatpush3.bf16.msra.mxu0 %v9562_v16  ;;  %v1154_v16 = vsel %vm1109_vm1, %v10613_v44, %v1153_v40  ;;  %v9566_v40 = vld [vmem:[#allocation7 + $0xf8] sm:$0xff]   ;;  %v10646_v48 = vsel %vm1109_vm1, %v1160_v21, %v10635_v41  ;;  %v1173_v21 = vrot.slane %v10452_v23, 2 }
 0x12a   : > { %8237 = vmatprep.subr.bf16.mxu0 %v9563_v37 }
 0x12c   : > { %8206 = vmatmul.mubr.bf16.gmra.mrb[8].mxu0 %v1227_v31  ;;  %v1229_v31 = vpack.c.bf16 %v1149_v51, %v10618_v1  ;;  %v10640_v51 = vsel %vm1109_vm1, %v1155_v9, %v10630_v63  ;;  %v1170_v9 = vrot.slane %v9702_v32, 2  ;;  %v1183_v32 = vrot.slane %v10479_v56, 2 }
 0x12d   : > { %8209 = vmatprep.mubr.bf16.mxu0 %v1228_v22  ;;  %8238 = vmatpush3.bf16.msra.mxu0 %v9563_v37  ;;  %v1230_v22 = vpack.c.bf16 %v1154_v16, %v10624_v47  ;;  %v1158_v37 = vrot.slane %v10428_v43, 2  ;;  %v9567_v43 = vld [vmem:[#allocation7 + $0x100] sm:$0xff]   ;;  %v1185_v56 = vrot.slane %v10403_v17, 2  ;;  %v9568_v17 = vld [vmem:[#allocation7 + $0x108] sm:$0xff]  }
 0x12e   : > { %8239 = vmatprep.subr.bf16.mxu0 %v9564_v50 }
 0x12f   : > { %v1159_v16 = vsel %vm1109_vm1, %v10630_v63, %v1158_v37  ;;  %v10657_v37 = vrot.slane %v9703_v29, 2 }
 0x130   : > { %v1231_v59 = vpack.c.bf16 %v1159_v16, %v10640_v51  ;;  %v9704_v16 = vld [vmem:[#allocation2 + $0x138] sm:$0xff] }
 0x131   : > { %8240 = vmatpush3.bf16.msra.mxu0 %v9564_v50  ;;  %v1232_v50 = vpack.c.bf16 %v1164_v49, %v10646_v48  ;;  %v1175_v49 = vrot.slane %v9704_v16, 2  ;;  %v9571_v16 = vld [vmem:[#allocation7 + $0x120] sm:$0xff]  }
 0x132   : > { %8241 = vmatprep.subr.bf16.mxu0 %v9565_v3 }
 0x134   : > { %8210 = vmatmul.mubr.bf16.gmra.mrb[12].mxu0 %v1229_v31  ;;  %v1165_v31 = vrot.slane %v10352_v53, 2 }
 0x135   : > { %8213 = vmatprep.mubr.bf16.mxu0 %v1230_v22  ;;  %8242 = vmatpush3.bf16.msra.mxu0 %v9565_v3  ;;  %v10654_v22 = vrot.slane %v10354_v54, 2  ;;  %v1168_v3 = vrot.slane %v10449_v0, 2  ;;  %v10668_v54 = vsel %vm1109_vm1, %v1170_v9, %v10657_v37  ;;  %v1174_v0 = vsel %vm1109_vm1, %v10657_v37, %v1173_v21 }
 0x136   : > { %8243 = vmatprep.subr.bf16.mxu0 %v9566_v40  ;;  %v1234_v23 = vpack.c.bf16 %v1174_v0, %v10668_v54  ;;  %v10699_v21 = vrot.slane %v10405_v18, 2  ;;  %v9569_v18 = vld [vmem:[#allocation7 + $0x110] sm:$0xff]  }
 0x137   : > { %v10662_v57 = vsel %vm1109_vm1, %v1165_v31, %v10654_v22  ;;  %v1169_v53 = vsel %vm1109_vm1, %v10654_v22, %v1168_v3  ;;  %v1180_v31 = vrot.slane %v10383_v10, 2  ;;  %v10680_v3 = vrot.slane %v10385_v11, 2 }
 0x138   : > { %v10704_v0 = vsel %vm1109_vm1, %v1185_v56, %v10699_v21 }
 0x139   : > { %8244 = vmatpush3.bf16.msra.mxu0 %v9566_v40  ;;  %v1233_v40 = vpack.c.bf16 %v1169_v53, %v10662_v57  ;;  %v1184_v10 = vsel %vm1109_vm1, %v10680_v3, %v1183_v32  ;;  %v1188_v53 = vrot.slane %v10505_v46, 2  ;;  %v9570_v46 = vld [vmem:[#allocation7 + $0x118] sm:$0xff]  }
 0x13a   : > { %8277 = vmatprep.subr.bf16.mxu0 %v9567_v43 }
 0x13c   : > { %8214 = vmatmul.mubr.bf16.gmra.mrb[16].mxu0 %v1231_v59  ;;  %v10675_v59 = vrot.slane %v10375_v4, 2  ;;  %v10691_v4 = vsel %vm1109_vm1, %v1180_v31, %v10680_v3 }
 0x13d   : > { %8217 = vmatprep.mubr.bf16.mxu0 %v1232_v50  ;;  %v1178_v50 = vrot.slane %v10477_v15, 2  ;;  %v1236_v15 = vpack.c.bf16 %v1184_v10, %v10691_v4 }
 0x13e   : > { %v10685_v9 = vsel %vm1109_vm1, %v1175_v49, %v10675_v59  ;;  %v10739_v49 = vld [vmem:[#allocation2 + $0x40] sm:$0xff] }
 0x13f   : > { %v1179_v29 = vsel %vm1109_vm1, %v10675_v59, %v1178_v50  ;;  %v10741_v50 = vld [vmem:[#allocation2 + $0x58] sm:$0xff] }
 0x140   : > { %v1235_v11 = vpack.c.bf16 %v1179_v29, %v10685_v9  ;;  %v12890_v29 = vrot.slane %v10739_v49, 1  ;;  %v12889_v10 = vrot.slane %v10741_v50, 1 }
 0x144   : > { %8218 = vmatmul.mubr.bf16.gmra.mrb[20].mxu0 %v1233_v40  ;;  %v1189_v40 = vsel %vm1109_vm1, %v10699_v21, %v1188_v53 }
 0x145   : > { %8221 = vmatprep.mubr.bf16.mxu0 %v1234_v23  ;;  %v1237_v23 = vpack.c.bf16 %v1189_v40, %v10704_v0 }
 0x14c   : > { %8222 = vmatmul.mubr.bf16.gmra.mrb[24].mxu0 %v1235_v11  ;;  %v1880_v11 = vsel %vm545_vm0, %v10292_v12, %v12889_v10  ;;  %v13152_v12 = vld [vmem:[#allocation15_spill] sm:$0xff] }
 0x14d   : > { %8225 = vmatprep.mubr.bf16.mxu0 %v1236_v15  ;;  %v10762_v15 = vld [vmem:[#allocation2 + $0x70] sm:$0xff]  ;;  %v1980_v53 = vpack.c.bf16 %v1880_v11, %v10319_v28  ;;  %v10778_v28 = vld [vmem:[#allocation2 + $0xa0] sm:$0xff] }
 0x14e   : > { %v12888_v40 = vrot.slane %v10762_v15, 1 }
 0x154   : > { %8226 = vmatmul.mubr.bf16.gmra.mrb[28].mxu0 %v1237_v23  ;;  %v9576_v23 = vld [vmem:[#allocation7 + $0x148] sm:$0xff]  }
 0x155   : > { %8245 = vmatprep.mubr.bf16.mxu0 %v10221_v25  ;;  %v9572_v25 = vld [vmem:[#allocation7 + $0x128] sm:$0xff]  }
 0x15c   : > { %8246 = vmatmul.mubr.bf16.vlgmr.msra.gmra.mrb[0].mxu0 %v10257_v60  ;;  %v9573_v60 = vld [vmem:[#allocation7 + $0x130] sm:$0xff]  }
 0x15d   : > { %8278 = vmatpush3.bf16.msra.mxu0 %v9567_v43  ;;  %8249 = vmatprep.mubr.bf16.mxu0 %v10260_v61  ;;  %v9574_v61 = vld [vmem:[#allocation7 + $0x138] sm:$0xff]  }
 0x15e   : > { %8279 = vmatprep.subr.bf16.mxu0 %v9568_v17 }
 0x161   : > { %8280 = vmatpush3.bf16.msra.mxu0 %v9568_v17 }
 0x162   : > { %8281 = vmatprep.subr.bf16.mxu0 %v9569_v18 }
 0x164   : > { %8250 = vmatmul.mubr.bf16.gmra.mrb[4].mxu0 %v10272_v2  ;;  %v9575_v2 = vld [vmem:[#allocation7 + $0x140] sm:$0xff]  }
 0x165   : > { %8253 = vmatprep.mubr.bf16.mxu0 %v10279_v6  ;;  %8282 = vmatpush3.bf16.msra.mxu0 %v9569_v18  ;;  %v10722_v6 = vld [vmem:[#allocation2 + $0x28] sm:$0xff]  ;;  %v9577_v18 = vld [vmem:[#allocation7 + $0x150] sm:$0xff]  }
 0x166   : > { %8283 = vmatprep.subr.bf16.mxu0 %v9570_v46  ;;  %v1869_v43 = vrot.slane %v10722_v6, 1 }
 0x169   : > { %8284 = vmatpush3.bf16.msra.mxu0 %v9570_v46  ;;  %v10780_v46 = vld [vmem:[#allocation2 + $0xb8] sm:$0xff] }
 0x16a   : > { %8285 = vmatprep.subr.bf16.mxu0 %v9571_v16 }
 0x16c   : > { %8254 = vmatmul.mubr.bf16.gmra.mrb[8].mxu0 %v10283_v7  ;;  %v10724_v7 = vld [vmem:[#allocation2 + $0x180] sm:$0xff] }
 0x16d   : > { %8257 = vmatprep.mubr.bf16.mxu0 %v10287_v8  ;;  %8286 = vmatpush3.bf16.msra.mxu0 %v9571_v16  ;;  %v10726_v8 = vld [vmem:[#allocation2 + $0x188] sm:$0xff]  ;;  %v13153_v16 = vld [vmem:[#allocation14_spill] sm:$0xff] }
 0x16e   : > { %8287 = vmatprep.subr.bf16.mxu0 %v9572_v25 }
 0x171   : > { %8288 = vmatpush3.bf16.msra.mxu0 %v9572_v25 }
 0x172   : > { %8289 = vmatprep.subr.bf16.mxu0 %v9573_v60 }
 0x174   : > { %8258 = vmatmul.mubr.bf16.gmra.mrb[12].mxu0 %v10311_v26  ;;  %v2327_v26 = vrot.slane %v10724_v7, 2 }
 0x175   : > { %8261 = vmatprep.mubr.bf16.mxu0 %v10315_v27  ;;  %8290 = vmatpush3.bf16.msra.mxu0 %v9573_v60  ;;  %v2328_v27 = vrot.slane %v10726_v8, 2  ;;  %v13154_v60 = vld [vmem:[#allocation17_spill] sm:$0xff] }
 0x176   : > { %8291 = vmatprep.subr.bf16.mxu0 %v9574_v61 }
 0x179   : > { %8292 = vmatpush3.bf16.msra.mxu0 %v9574_v61 }
 0x17a   : > { %8325 = vmatprep.subr.bf16.mxu0 %v9575_v2 }
 0x17c   : > { %8262 = vmatmul.mubr.bf16.gmra.mrb[16].mxu0 %v10379_v5  ;;  %v10732_v5 = vld [vmem:[#allocation2 + $0x190] sm:$0xff] }
 0x17d   : > { %8265 = vmatprep.mubr.bf16.mxu0 %v10389_v13  ;;  %v2329_v13 = vsel %vm1109_vm1, %v2327_v26, %v2328_v27  ;;  %v9578_v26 = vld [vmem:[#allocation7 + $0x158] sm:$0xff]  }
 0x184   : > { %8266 = vmatmul.mubr.bf16.gmra.mrb[20].mxu0 %v10393_v52  ;;  %v2330_v52 = vrot.slane %v10732_v5, 2 }
 0x185   : > { %8269 = vmatprep.mubr.bf16.mxu0 %v10397_v14  ;;  %v1870_v14 = vsel %vm545_vm0, %v10223_v33, %v1869_v43  ;;  %v1875_v33 = vsel %vm545_vm0, %v10225_v36, %v12890_v29  ;;  %v1885_v36 = vsel %vm545_vm0, %v10299_v19, %v12888_v40  ;;  %v12883_v19 = vrot.slane %v10780_v46, 1 }
 0x186   : > { %v2331_v31 = vsel %vm1109_vm1, %v2328_v27, %v2330_v52  ;;  %v1979_v56 = vpack.c.bf16 %v1875_v33, %v10264_v62  ;;  %v1981_v25 = vpack.c.bf16 %v1885_v36, %v13153_v16  ;;  %v13155_v27 = vld [vmem:[#allocation16_spill] sm:$0xff]  ;;  %v13157_v33 = vld [vmem:[#allocation18_spill] sm:$0xff]  ;;  %v13160_v16 = vld [vmem:[#allocation23_spill] sm:$0xff] }
 0x187   : > { %v10748_v32 = vpack.c.bf16 %v2331_v31, %v2329_v13  ;;  %v13156_v13 = vld [vmem:[#allocation19_spill] sm:$0xff]  ;;  %v9579_v31 = vld [vmem:[#allocation7 + $0x160] sm:$0xff]  }
 0x188   : > { %v1900_v52 = vsel %vm545_vm0, %v13156_v13, %v12883_v19  ;;  %v13162_v13 = vld [vmem:[#allocation25_spill] sm:$0xff]  ;;  %v13173_v19 = vld [vmem:[#allocation35_spill] sm:$0xff] }
 0x189   : > { %13151 = vst [vmem:[#allocation43_spill] sm:$0xff] %v10748_v32 }
 0x18c   : > { %8270 = vmatmul.mubr.bf16.gmra.mrb[24].mxu0 %v10409_v20  ;;  %v10746_v20 = vpack.c.bf16 %v10726_v8, %v10724_v7 }
 0x18d   : > { %8273 = vmatprep.mubr.bf16.mxu0 %v10414_v30  ;;  %v1978_v30 = vpack.c.bf16 %v1870_v14, %v10251_v55  ;;  %v10764_v55 = vld [vmem:[#allocation2 + $0x88] sm:$0xff]  ;;  %v10794_v14 = vld [vmem:[#allocation2 + $0xd0] sm:$0xff] }
 0x18e   : > { %v12886_v17 = vrot.slane %v10764_v55, 1 }
 0x190   : > { %v1890_v62 = vsel %vm545_vm0, %v13152_v12, %v12886_v17  ;;  %v9580_v12 = vld [vmem:[#allocation7 + $0x168] sm:$0xff]   ;;  %v13175_v17 = vld [vmem:[#allocation38_spill] sm:$0xff] }
 0x191   : > { %v1982_v61 = vpack.c.bf16 %v1890_v62, %v13154_v60  ;;  %v13159_v62 = vld [vmem:[#allocation20_spill] sm:$0xff]  ;;  %v10810_v60 = vld [vmem:[#allocation2 + $0x100] sm:$0xff] }
 0x194   : > { %8274 = vmatmul.mubr.bf16.gmra.mrb[28].mxu0 %v10746_v20 }
 0x195   : > { %8293 = vmatprep.mubr.bf16.mxu0 %v1978_v30  ;;  %v10796_v30 = vld [vmem:[#allocation2 + $0xe8] sm:$0xff] }
 0x196   : > { %v12877_v36 = vrot.slane %v10796_v30, 1 }
 0x19c   : > { %8294 = vmatmul.mubr.bf16.vlgmr.msra.gmra.mrb[0].mxu0 %v1979_v56  ;;  %v13158_v56 = vld [vmem:[#allocation21_spill] sm:$0xff] }
 0x19d   : > { %8326 = vmatpush3.bf16.msra.mxu0 %v9575_v2  ;;  %8297 = vmatprep.mubr.bf16.mxu0 %v1980_v53  ;;  %v12884_v2 = vrot.slane %v10778_v28, 1  ;;  %v1984_v53 = vpack.c.bf16 %v1900_v52, %v13158_v56  ;;  %v13163_v56 = vld [vmem:[#allocation24_spill] sm:$0xff] }
 0x19e   : > { %8327 = vmatprep.subr.bf16.mxu0 %v9576_v23 }
 0x19f   : > { %v1895_v43 = vsel %vm545_vm0, %v13155_v27, %v12884_v2  ;;  %v13161_v27 = vld [vmem:[#allocation22_spill] sm:$0xff] }
 0x1a0   : > { %v1983_v11 = vpack.c.bf16 %v1895_v43, %v13157_v33  ;;  %v12879_v33 = vrot.slane %v10810_v60, 1 }
 0x1a1   : > { %8328 = vmatpush3.bf16.msra.mxu0 %v9576_v23  ;;  %v12880_v23 = vrot.slane %v10794_v14, 1 }
 0x1a2   : > { %8329 = vmatprep.subr.bf16.mxu0 %v9577_v18 }
 0x1a4   : > { %8298 = vmatmul.mubr.bf16.gmra.mrb[4].mxu0 %v1981_v25  ;;  %v1910_v25 = vsel %vm545_vm0, %v13160_v16, %v12877_v36  ;;  %v10826_v16 = vld [vmem:[#allocation2 + $0x130] sm:$0xff] }
 0x1a5   : > { %8301 = vmatprep.mubr.bf16.mxu0 %v1982_v61  ;;  %8330 = vmatpush3.bf16.msra.mxu0 %v9577_v18  ;;  %v1905_v18 = vsel %vm545_vm0, %v13159_v62, %v12880_v23  ;;  %v9581_v61 = vld [vmem:[#allocation7 + $0x170] sm:$0xff]   ;;  %v1986_v52 = vpack.c.bf16 %v1910_v25, %v13162_v13  ;;  %v13164_v62 = vld [vmem:[#allocation26_spill] sm:$0xff]  ;;  %v10828_v25 = vld [vmem:[#allocation2 + $0x148] sm:$0xff]  ;;  %v12881_v36 = vrot.slane %v10826_v16, 1 }
 0x1a6   : > { %8331 = vmatprep.subr.bf16.mxu0 %v9578_v26  ;;  %v1985_v43 = vpack.c.bf16 %v1905_v18, %v13161_v27  ;;  %v13165_v27 = vld [vmem:[#allocation28_spill] sm:$0xff]  ;;  %v13166_v13 = vld [vmem:[#allocation29_spill] sm:$0xff] }
 0x1a9   : > { %8332 = vmatpush3.bf16.msra.mxu0 %v9578_v26  ;;  %v10812_v26 = vld [vmem:[#allocation2 + $0x118] sm:$0xff] }
 0x1aa   : > { %8333 = vmatprep.subr.bf16.mxu0 %v9579_v31 }
 0x1ac   : > { %8302 = vmatmul.mubr.bf16.gmra.mrb[8].mxu0 %v1983_v11  ;;  %v9582_v11 = vld [vmem:[#allocation7 + $0x178] sm:$0xff]  }
 0x1ad   : > { %8305 = vmatprep.mubr.bf16.mxu0 %v1984_v53  ;;  %8334 = vmatpush3.bf16.msra.mxu0 %v9579_v31  ;;  %v12878_v31 = vrot.slane %v10812_v26, 1  ;;  %v1915_v53 = vsel %vm545_vm0, %v13163_v56, %v12879_v33  ;;  %v13167_v56 = vld [vmem:[#allocation27_spill] sm:$0xff]  ;;  %v13170_v33 = vld [vmem:[#allocation33_spill] sm:$0xff] }
 0x1ae   : > { %8335 = vmatprep.subr.bf16.mxu0 %v9580_v12 }
 0x1af   : > { %v1920_v18 = vsel %vm545_vm0, %v13164_v62, %v12878_v31  ;;  %v1925_v62 = vsel %vm545_vm0, %v13167_v56, %v12881_v36  ;;  %v13168_v31 = vld [vmem:[#allocation30_spill] sm:$0xff]  ;;  %v13171_v56 = vld [vmem:[#allocation31_spill] sm:$0xff] }
 0x1b1   : > { %8336 = vmatpush3.bf16.msra.mxu0 %v9580_v12  ;;  %v9583_v12 = vld [vmem:[#allocation7 + $0x180] sm:$0xff]  }
 0x1b2   : > { %8337 = vmatprep.subr.bf16.mxu0 %v9581_v61 }
 0x1b4   : > { %8306 = vmatmul.mubr.bf16.gmra.mrb[12].mxu0 %v1985_v43  ;;  %v1987_v43 = vpack.c.bf16 %v1915_v53, %v13165_v27  ;;  %v10842_v27 = vld [vmem:[#allocation2 + $0x160] sm:$0xff] }
 0x1b5   : > { %8309 = vmatprep.mubr.bf16.mxu0 %v1986_v52  ;;  %8338 = vmatpush3.bf16.msra.mxu0 %v9581_v61  ;;  %v1988_v52 = vpack.c.bf16 %v1920_v18, %v13166_v13  ;;  %v12882_v61 = vrot.slane %v10828_v25, 1  ;;  %v10844_v18 = vld [vmem:[#allocation2 + $0x178] sm:$0xff] }
 0x1b6   : > { %8339 = vmatprep.subr.bf16.mxu0 %v9582_v11 }
 0x1b7   : > { %v1930_v53 = vsel %vm545_vm0, %v13168_v31, %v12882_v61  ;;  %v13172_v31 = vld [vmem:[#allocation34_spill] sm:$0xff] }
 0x1b8   : > { %v1990_v23 = vpack.c.bf16 %v1930_v53, %v13170_v33  ;;  %v1941_v33 = vrot.slane %v10724_v7, 1  ;;  %v1942_v53 = vrot.slane %v10726_v8, 1  ;;  %v2260_v8 = vrot.slane %v10739_v49, 2 }
 0x1b9   : > { %8340 = vmatpush3.bf16.msra.mxu0 %v9582_v11  ;;  %v13169_v11 = vld [vmem:[#allocation32_spill] sm:$0xff] }
 0x1ba   : > { %8373 = vmatprep.subr.bf16.mxu0 %v9583_v12  ;;  %v1989_v13 = vpack.c.bf16 %v1925_v62, %v13169_v11  ;;  %v13174_v11 = vld [vmem:[#allocation36_spill] sm:$0xff] }
 0x1bc   : > { %8310 = vmatmul.mubr.bf16.gmra.mrb[16].mxu0 %v1987_v43  ;;  %v12885_v43 = vrot.slane %v10842_v27, 1 }
 0x1bd   : > { %8313 = vmatprep.mubr.bf16.mxu0 %v1988_v52  ;;  %v12887_v52 = vrot.slane %v10844_v18, 1 }
 0x1be   : > { %v1935_v36 = vsel %vm545_vm0, %v13171_v56, %v12885_v43  ;;  %v1943_v56 = vsel %vm545_vm0, %v1941_v33, %v1942_v53 }
 0x1bf   : > { %v1940_v61 = vsel %vm545_vm0, %v13172_v31, %v12887_v52  ;;  %v1991_v62 = vpack.c.bf16 %v1935_v36, %v13173_v19  ;;  %v2265_v36 = vrot.slane %v10741_v50, 2  ;;  %v11067_v52 = vld [vmem:[#allocation2 + $0xc8] sm:$0xff] }
 0x1c0   : > { %v1992_v2 = vpack.c.bf16 %v1940_v61, %v13174_v11  ;;  %v2270_v61 = vrot.slane %v10762_v15, 2 }
 0x1c4   : > { %8314 = vmatmul.mubr.bf16.gmra.mrb[20].mxu0 %v1989_v13  ;;  %v2255_v13 = vrot.slane %v10722_v6, 2  ;;  %v2261_v6 = vsel %vm1109_vm1, %v10555_v42, %v2260_v8  ;;  %v13177_v42 = vld [vmem:[#allocation40_spill] sm:$0xff] }
 0x1c5   : > { %8317 = vmatprep.mubr.bf16.mxu0 %v1990_v23  ;;  %v1944_v23 = vrot.slane %v10732_v5, 1  ;;  %v2266_v5 = vsel %vm1109_vm1, %v10572_v38, %v2265_v36  ;;  %v2271_v33 = vsel %vm1109_vm1, %v13177_v42, %v2270_v61 }
 0x1c6   : > { %v2256_v31 = vsel %vm1109_vm1, %v13175_v17, %v2255_v13  ;;  %v13176_v17 = vld [vmem:[#allocation39_spill] sm:$0xff]  ;;  %v2285_v13 = vrot.slane %v10780_v46, 2 }
 0x1c7   : > { %v1945_v43 = vsel %vm545_vm0, %v1942_v53, %v1944_v23  ;;  %v2364_v7 = vpack.c.bf16 %v2256_v31, %v10560_v35  ;;  %v2366_v35 = vpack.c.bf16 %v2266_v5, %v10578_v39  ;;  %v9585_v39 = vld [vmem:[#allocation7 + $0x190] sm:$0xff]   ;;  %v13178_v53 = vld [vmem:[#allocation41_spill] sm:$0xff]  ;;  %v13179_v31 = vld [vmem:[#allocation42_spill] sm:$0xff] }
 0x1c8   : > { %v10868_v19 = vpack.c.bf16 %v1945_v43, %v1943_v56  ;;  %v9584_v43 = vld [vmem:[#allocation7 + $0x188] sm:$0xff]   ;;  %v2367_v11 = vpack.c.bf16 %v2271_v33, %v13178_v53  ;;  %v9586_v56 = vld [vmem:[#allocation7 + $0x198] sm:$0xff]   ;;  %v12896_v33 = vrot.slane %v10810_v60, 2 }
 0x1cc   : > { %8318 = vmatmul.mubr.bf16.gmra.mrb[24].mxu0 %v1991_v62  ;;  %v2275_v62 = vrot.slane %v10764_v55, 2 }
 0x1cd   : > { %8321 = vmatprep.mubr.bf16.mxu0 %v1992_v2  ;;  %v2365_v2 = vpack.c.bf16 %v2261_v6, %v13176_v17  ;;  %v2290_v17 = vrot.slane %v10794_v14, 2 }
 0x1ce   : > { %v2276_v38 = vsel %vm1109_vm1, %v10590_v58, %v2275_v62  ;;  %v2286_v58 = vsel %vm1109_vm1, %v10610_v24, %v2285_v13 }
 0x1cf   : > { %v2368_v23 = vpack.c.bf16 %v2276_v38, %v10598_v45  ;;  %v9587_v45 = vld [vmem:[#allocation7 + $0x1a0] sm:$0xff]   ;;  %v2370_v5 = vpack.c.bf16 %v2286_v58, %v10618_v1  ;;  %v2291_v24 = vsel %vm1109_vm1, %v10613_v44, %v2290_v17  ;;  %v9589_v1 = vld [vmem:[#allocation7 + $0x1b0] sm:$0xff]   ;;  %v12895_v38 = vrot.slane %v10812_v26, 2 }
 0x1d0   : > { %v2301_v44 = vsel %vm1109_vm1, %v10635_v41, %v12896_v33 }
 0x1d4   : > { %8322 = vmatmul.mubr.bf16.gmra.mrb[28].mxu0 %v10868_v19 }
 0x1d5   : > { %8341 = vmatprep.mubr.bf16.mxu0 %v2364_v7 }
 0x1dc   : > { %8342 = vmatmul.mubr.bf16.vlgmr.msra.gmra.mrb[0].mxu0 %v2365_v2  ;;  %v2295_v2 = vrot.slane %v10796_v30, 2 }
 0x1dd   : > { %8374 = vmatpush3.bf16.msra.mxu0 %v9583_v12  ;;  %8345 = vmatprep.mubr.bf16.mxu0 %v2366_v35  ;;  %v2280_v12 = vrot.slane %v10778_v28, 2  ;;  %v9588_v35 = vld [vmem:[#allocation7 + $0x1a8] sm:$0xff]  }
 0x1de   : > { %8375 = vmatprep.subr.bf16.mxu0 %v9584_v43 }
 0x1df   : > { %v2281_v7 = vsel %vm1109_vm1, %v13179_v31, %v2280_v12  ;;  %v12891_v31 = vrot.slane %v10844_v18, 2 }
 0x1e0   : > { %v2369_v6 = vpack.c.bf16 %v2281_v7, %v10604_v34  ;;  %v2296_v34 = vsel %vm1109_vm1, %v10630_v63, %v2295_v2  ;;  %v9591_v63 = vld [vmem:[#allocation7 + $0x1c0] sm:$0xff]   ;;  %v13180_v7 = vld [vmem:[#allocation37_spill] sm:$0xff] }
 0x1e1   : > { %8376 = vmatpush3.bf16.msra.mxu0 %v9584_v43  ;;  %v2371_v43 = vpack.c.bf16 %v2291_v24, %v10624_v47  ;;  %v2372_v42 = vpack.c.bf16 %v2296_v34, %v10640_v51  ;;  %v2306_v47 = vsel %vm1109_vm1, %v10654_v22, %v12895_v38  ;;  %v2373_v51 = vpack.c.bf16 %v2301_v44, %v10646_v48  ;;  %v10965_v24 = vld [vmem:[#allocation2 + $0x48] sm:$0xff] }
 0x1e2   : > { %8377 = vmatprep.subr.bf16.mxu0 %v9585_v39  ;;  %v2374_v53 = vpack.c.bf16 %v2306_v47, %v10662_v57  ;;  %v3084_v58 = vrot.slane %v13180_v7, 1  ;;  %v10993_v47 = vld [vmem:[#allocation2 + $0x60] sm:$0xff] }
 0x1e4   : > { %8346 = vmatmul.mubr.bf16.gmra.mrb[4].mxu0 %v2367_v11  ;;  %v12894_v11 = vrot.slane %v10826_v16, 2 }
 0x1e5   : > { %8349 = vmatprep.mubr.bf16.mxu0 %v2368_v23  ;;  %8378 = vmatpush3.bf16.msra.mxu0 %v9585_v39  ;;  %v9590_v39 = vld [vmem:[#allocation7 + $0x1b8] sm:$0xff]   ;;  %v12893_v23 = vrot.slane %v10828_v25, 2 }
 0x1e6   : > { %8379 = vmatprep.subr.bf16.mxu0 %v9586_v56  ;;  %v2311_v41 = vsel %vm1109_vm1, %v10657_v37, %v12894_v11 }
 0x1e7   : > { %v2316_v48 = vsel %vm1109_vm1, %v10675_v59, %v12893_v23  ;;  %v2375_v22 = vpack.c.bf16 %v2311_v41, %v10668_v54  ;;  %v2326_v59 = vsel %vm1109_vm1, %v10699_v21, %v12891_v31  ;;  %v10967_v21 = vld [vmem:[#allocation2 + $0x50] sm:$0xff]  ;;  %v3405_v41 = vrot.slane %v10993_v47, 2 }
 0x1e8   : > { %v2376_v57 = vpack.c.bf16 %v2316_v48, %v10685_v9  ;;  %v2378_v9 = vpack.c.bf16 %v2326_v59, %v10704_v0  ;;  %v3400_v0 = vrot.slane %v10965_v24, 2  ;;  %v3401_v34 = vrot.slane %v10967_v21, 2 }
 0x1e9   : > { %8380 = vmatpush3.bf16.msra.mxu0 %v9586_v56  ;;  %v12892_v56 = vrot.slane %v10842_v27, 2 }
 0x1ea   : > { %8381 = vmatprep.subr.bf16.mxu0 %v9587_v45  ;;  %v10991_v44 = vsel %vm1109_vm1, %v3401_v34, %v2265_v36 }
 0x1eb   : > { %v2321_v37 = vsel %vm1109_vm1, %v10680_v3, %v12892_v56  ;;  %v11111_v56 = vld [vmem:[#allocation2 + $0x108] sm:$0xff] }
 0x1ec   : > { %8350 = vmatmul.mubr.bf16.gmra.mrb[8].mxu0 %v2369_v6  ;;  %v2377_v54 = vpack.c.bf16 %v2321_v37, %v10691_v4  ;;  %v10959_v6 = vld [vmem:[#allocation2 + $0x38] sm:$0xff]  ;;  %v3440_v11 = vrot.slane %v11111_v56, 2 }
 0x1ed   : > { %8353 = vmatprep.mubr.bf16.mxu0 %v2370_v5  ;;  %8382 = vmatpush3.bf16.msra.mxu0 %v9587_v45  ;;  %v10957_v45 = vld [vmem:[#allocation2 + $0x30] sm:$0xff]  ;;  %v10961_v5 = vpack.c.bf16 %v3084_v58, %v3084_v58 }
 0x1ee   : > { %8383 = vmatprep.subr.bf16.mxu0 %v9588_v35  ;;  %v3395_v3 = vrot.slane %v10957_v45, 2  ;;  %v2687_v4 = vpack.c.bf16 %v10959_v6, %v10957_v45 }
 0x1ef   : > { %8533 = vmatprep.mubr.bf16.mxu1 %v10961_v5 }
 0x1f1   : > { %8384 = vmatpush3.bf16.msra.mxu0 %v9588_v35  ;;  %v3396_v35 = vrot.slane %v10959_v6, 2 }
 0x1f2   : > { %8385 = vmatprep.subr.bf16.mxu0 %v9589_v1 }
 0x1f4   : > { %8354 = vmatmul.mubr.bf16.gmra.mrb[12].mxu0 %v2371_v43  ;;  %v10981_v43 = vsel %vm1109_vm1, %v3396_v35, %v2260_v8 }
 0x1f5   : > { %8357 = vmatprep.mubr.bf16.mxu0 %v2372_v42  ;;  %8386 = vmatpush3.bf16.msra.mxu0 %v9589_v1  ;;  %v10976_v1 = vsel %vm1109_vm1, %v3395_v3, %v3396_v35 }
 0x1f6   : > { %8387 = vmatprep.subr.bf16.mxu0 %v9590_v39 }
 0x1f9   : > { %8388 = vmatpush3.bf16.msra.mxu0 %v9590_v39  ;;  %v10986_v39 = vsel %vm1109_vm1, %v3400_v0, %v3401_v34  ;;  %v11031_v0 = vld [vmem:[#allocation2 + $0x98] sm:$0xff] }
 0x1fa   : > { %8421 = vmatprep.subr.bf16.mxu0 %v9591_v63 }
 0x1fc   : > { %8358 = vmatmul.mubr.bf16.gmra.mrb[16].mxu0 %v2373_v51  ;;  %v10995_v51 = vld [vmem:[#allocation2 + $0x68] sm:$0xff] }
 0x1fd   : > { %8361 = vmatprep.mubr.bf16.mxu0 %v2374_v53  ;;  %v2688_v53 = vpack.c.bf16 %v10967_v21, %v10965_v24  ;;  %v3406_v48 = vrot.slane %v10995_v51, 2  ;;  %v2689_v36 = vpack.c.bf16 %v10995_v51, %v10993_v47 }
 0x1ff   : > { %v11017_v7 = vsel %vm1109_vm1, %v3406_v48, %v2270_v61  ;;  %v9593_v61 = vld [vmem:[#allocation7 + $0x1d0] sm:$0xff]  }
 0x204   : > { %8362 = vmatmul.mubr.bf16.gmra.mrb[20].mxu0 %v2375_v22  ;;  %v11003_v22 = vld [vmem:[#allocation2 + $0x78] sm:$0xff] }
 0x205   : > { %8365 = vmatprep.mubr.bf16.mxu0 %v2376_v57  ;;  %v11005_v57 = vld [vmem:[#allocation2 + $0x80] sm:$0xff]  ;;  %v3410_v37 = vrot.slane %v11003_v22, 2 }
 0x206   : > { %v3411_v59 = vrot.slane %v11005_v57, 2  ;;  %v2690_v34 = vpack.c.bf16 %v11005_v57, %v11003_v22 }
 0x208   : > { %v11022_v3 = vsel %vm1109_vm1, %v3410_v37, %v3411_v59  ;;  %v11027_v35 = vsel %vm1109_vm1, %v3411_v59, %v2275_v62  ;;  %v11041_v62 = vld [vmem:[#allocation2 + $0xb0] sm:$0xff] }
 0x209   : > { %13182 = vst [vmem:[#allocation14_spill] sm:$0xff] %v11022_v3  ;;  %13183 = vst [vmem:[#allocation17_spill] sm:$0xff] %v11027_v35  ;;  %v3421_v59 = vrot.slane %v11041_v62, 2  ;;  %v13206_v35 = vrot.slane %v10844_v18, 2 }
 0x20c   : > { %8366 = vmatmul.mubr.bf16.gmra.mrb[24].mxu0 %v2377_v54  ;;  %v9592_v54 = vld [vmem:[#allocation7 + $0x1c8] sm:$0xff]  }
 0x20d   : > { %8369 = vmatprep.mubr.bf16.mxu0 %v2378_v9  ;;  %v11012_v9 = vsel %vm1109_vm1, %v3405_v41, %v3406_v48  ;;  %v3416_v41 = vrot.slane %v11031_v0, 2  ;;  %v11039_v48 = vld [vmem:[#allocation2 + $0xa8] sm:$0xff] }
 0x20e   : > { %13181 = vst [vmem:[#allocation15_spill] sm:$0xff] %v11012_v9  ;;  %v3420_v37 = vrot.slane %v11039_v48, 2 }
 0x20f   : > { %v11053_v8 = vsel %vm1109_vm1, %v3416_v41, %v2280_v12  ;;  %v9595_v12 = vld [vmem:[#allocation7 + $0x1e0] sm:$0xff]  }
 0x210   : > { %13185 = vst [vmem:[#allocation19_spill] sm:$0xff] %v11053_v8  ;;  %v11058_v42 = vsel %vm1109_vm1, %v3420_v37, %v3421_v59  ;;  %v3426_v37 = vrot.slane %v11067_v52, 2  ;;  %v3014_v8 = vrot.slane %v10965_v24, 1  ;;  %v13210_v24 = vrot.slane %v10762_v15, 1 }
 0x211   : > { %13186 = vst [vmem:[#allocation18_spill] sm:$0xff] %v11058_v42  ;;  %v11186_v42 = vld [vmem:[#allocation2 + $0x168] sm:$0xff] }
 0x212   : > { %v11089_v31 = vsel %vm1109_vm1, %v3426_v37, %v2290_v17  ;;  %v9597_v17 = vld [vmem:[#allocation7 + $0x1f0] sm:$0xff]  }
 0x213   : > { %13189 = vst [vmem:[#allocation23_spill] sm:$0xff] %v11089_v31  ;;  %v11139_v31 = vld [vmem:[#allocation2 + $0x128] sm:$0xff] }
 0x214   : > { %8370 = vmatmul.mubr.bf16.gmra.mrb[28].mxu0 %v10748_v32  ;;  %v13193_v32 = vrot.slane %v10810_v60, 2 }
 0x215   : > { %8389 = vmatprep.mubr.bf16.mxu0 %v2687_v4  ;;  %v11029_v4 = vld [vmem:[#allocation2 + $0x90] sm:$0xff] }
 0x21c   : > { %8390 = vmatmul.mubr.bf16.vlgmr.msra.gmra.mrb[0].mxu0 %v2688_v53  ;;  %v3415_v53 = vrot.slane %v11029_v4, 2 }
 0x21d   : > { %8422 = vmatpush3.bf16.msra.mxu0 %v9591_v63  ;;  %8393 = vmatprep.mubr.bf16.mxu0 %v2689_v36  ;;  %v2691_v36 = vpack.c.bf16 %v11031_v0, %v11029_v4  ;;  %v9594_v63 = vld [vmem:[#allocation7 + $0x1d8] sm:$0xff]  }
 0x21e   : > { %8423 = vmatprep.subr.bf16.mxu0 %v9592_v54  ;;  %v11048_v58 = vsel %vm1109_vm1, %v3415_v53, %v3416_v41  ;;  %v11065_v53 = vld [vmem:[#allocation2 + $0xc0] sm:$0xff]  ;;  %v2692_v41 = vpack.c.bf16 %v11041_v62, %v11039_v48 }
 0x21f   : > { %13184 = vst [vmem:[#allocation16_spill] sm:$0xff] %v11048_v58 }
 0x221   : > { %8424 = vmatpush3.bf16.msra.mxu0 %v9592_v54  ;;  %v11075_v54 = vld [vmem:[#allocation2 + $0xd8] sm:$0xff] }
 0x222   : > { %8425 = vmatprep.subr.bf16.mxu0 %v9593_v61  ;;  %v3430_v40 = vrot.slane %v11075_v54, 2 }
 0x224   : > { %8394 = vmatmul.mubr.bf16.gmra.mrb[4].mxu0 %v2690_v34  ;;  %v11063_v34 = vsel %vm1109_vm1, %v3421_v59, %v2285_v13  ;;  %v11077_v13 = vld [vmem:[#allocation2 + $0xe0] sm:$0xff]  ;;  %v2693_v59 = vpack.c.bf16 %v11067_v52, %v11065_v53 }
 0x225   : > { %8397 = vmatprep.mubr.bf16.mxu0 %v2691_v36  ;;  %8426 = vmatpush3.bf16.msra.mxu0 %v9593_v61  ;;  %13187 = vst [vmem:[#allocation21_spill] sm:$0xff] %v11063_v34  ;;  %v3425_v36 = vrot.slane %v11065_v53, 2  ;;  %v3431_v10 = vrot.slane %v11077_v13, 2  ;;  %v9596_v61 = vld [vmem:[#allocation7 + $0x1e8] sm:$0xff]  }
 0x226   : > { %8427 = vmatprep.subr.bf16.mxu0 %v9594_v63 }
 0x227   : > { %v11084_v29 = vsel %vm1109_vm1, %v3425_v36, %v3426_v37  ;;  %v11094_v23 = vsel %vm1109_vm1, %v3430_v40, %v3431_v10  ;;  %v11103_v36 = vld [vmem:[#allocation2 + $0xf8] sm:$0xff]  ;;  %v2694_v37 = vpack.c.bf16 %v11077_v13, %v11075_v54 }
 0x228   : > { %13188 = vst [vmem:[#allocation20_spill] sm:$0xff] %v11084_v29  ;;  %13190 = vst [vmem:[#allocation22_spill] sm:$0xff] %v11094_v23 }
 0x229   : > { %8428 = vmatpush3.bf16.msra.mxu0 %v9594_v63  ;;  %v11099_v63 = vsel %vm1109_vm1, %v3431_v10, %v2295_v2  ;;  %v11113_v10 = vld [vmem:[#allocation2 + $0x110] sm:$0xff] }
 0x22a   : > { %8429 = vmatprep.subr.bf16.mxu0 %v9595_v12  ;;  %13191 = vst [vmem:[#allocation25_spill] sm:$0xff] %v11099_v63  ;;  %v3441_v38 = vrot.slane %v11113_v10, 2  ;;  %v11149_v63 = vld [vmem:[#allocation2 + $0x138] sm:$0xff] }
 0x22c   : > { %8398 = vmatmul.mubr.bf16.gmra.mrb[8].mxu0 %v2692_v41  ;;  %v11101_v41 = vld [vmem:[#allocation2 + $0xf0] sm:$0xff]  ;;  %v11130_v29 = vsel %vm1109_vm1, %v3440_v11, %v3441_v38 }
 0x22d   : > { %8401 = vmatprep.mubr.bf16.mxu0 %v2693_v59  ;;  %8430 = vmatpush3.bf16.msra.mxu0 %v9595_v12  ;;  %v3435_v40 = vrot.slane %v11101_v41, 2  ;;  %v3436_v59 = vrot.slane %v11103_v36, 2  ;;  %v2695_v2 = vpack.c.bf16 %v11103_v36, %v11101_v41  ;;  %v9598_v12 = vld [vmem:[#allocation7 + $0x1f8] sm:$0xff]   ;;  %13195 = vst [vmem:[#allocation28_spill] sm:$0xff] %v11130_v29  ;;  %v13199_v29 = vrot.slane %v10826_v16, 2 }
 0x22e   : > { %8431 = vmatprep.subr.bf16.mxu0 %v9596_v61 }
 0x22f   : > { %v11120_v33 = vsel %vm1109_vm1, %v3435_v40, %v3436_v59  ;;  %v11125_v23 = vsel %vm1109_vm1, %v3436_v59, %v13193_v32  ;;  %v11137_v40 = vld [vmem:[#allocation2 + $0x120] sm:$0xff]  ;;  %v2696_v59 = vpack.c.bf16 %v11113_v10, %v11111_v56 }
 0x230   : > { %13192 = vst [vmem:[#allocation24_spill] sm:$0xff] %v11120_v33  ;;  %13194 = vst [vmem:[#allocation26_spill] sm:$0xff] %v11125_v23  ;;  %v11141_v32 = vld [vmem:[#allocation7 + $0x200] sm:$0xff]   ;;  %v3445_v11 = vrot.slane %v11137_v40, 2  ;;  %v3450_v33 = vrot.slane %v11149_v63, 2 }
 0x231   : > { %8432 = vmatpush3.bf16.msra.mxu0 %v9596_v61  ;;  %v13196_v61 = vrot.slane %v10812_v26, 2 }
 0x232   : > { %8433 = vmatprep.subr.bf16.mxu0 %v9597_v17 }
 0x234   : > { %8402 = vmatmul.mubr.bf16.gmra.mrb[12].mxu0 %v2694_v37  ;;  %v11135_v37 = vsel %vm1109_vm1, %v3441_v38, %v13196_v61  ;;  %v11151_v38 = vld [vmem:[#allocation2 + $0x140] sm:$0xff]  ;;  %v2697_v61 = vpack.c.bf16 %v11139_v31, %v11137_v40 }
 0x235   : > { %8405 = vmatprep.mubr.bf16.mxu0 %v2695_v2  ;;  %8434 = vmatpush3.bf16.msra.mxu0 %v9597_v17  ;;  %13197 = vst [vmem:[#allocation29_spill] sm:$0xff] %v11135_v37  ;;  %v3446_v2 = vrot.slane %v11139_v31, 2  ;;  %v3451_v23 = vrot.slane %v11151_v38, 2 }
 0x236   : > { %8435 = vmatprep.subr.bf16.mxu0 %v9598_v12 }
 0x237   : > { %v11159_v17 = vsel %vm1109_vm1, %v3445_v11, %v3446_v2  ;;  %v11164_v37 = vsel %vm1109_vm1, %v3446_v2, %v13199_v29  ;;  %v11169_v34 = vsel %vm1109_vm1, %v3450_v33, %v3451_v23  ;;  %v11178_v11 = vld [vmem:[#allocation2 + $0x158] sm:$0xff]  ;;  %v2698_v2 = vpack.c.bf16 %v11151_v38, %v11149_v63 }
 0x238   : > { %13198 = vst [vmem:[#allocation27_spill] sm:$0xff] %v11159_v17  ;;  %13200 = vst [vmem:[#allocation30_spill] sm:$0xff] %v11164_v37  ;;  %v3456_v33 = vrot.slane %v11178_v11, 2  ;;  %v11188_v17 = vld [vmem:[#allocation2 + $0x170] sm:$0xff] }
 0x239   : > { %8436 = vmatpush3.bf16.msra.mxu0 %v9598_v12  ;;  %13201 = vst [vmem:[#allocation32_spill] sm:$0xff] %v11169_v34  ;;  %v13202_v12 = vrot.slane %v10828_v25, 2  ;;  %v3461_v37 = vrot.slane %v11188_v17, 2  ;;  %v13204_v34 = vrot.slane %v10842_v27, 2 }
 0x23a   : > { %8469 = vmatprep.subr.bf16.mxu0 %v11141_v32 }
 0x23b   : > { %v11174_v58 = vsel %vm1109_vm1, %v3451_v23, %v13202_v12  ;;  %v3460_v12 = vrot.slane %v11186_v42, 2  ;;  %v11210_v9 = vsel %vm1109_vm1, %v3461_v37, %v13206_v35 }
 0x23c   : > { %8406 = vmatmul.mubr.bf16.gmra.mrb[16].mxu0 %v2696_v59  ;;  %13203 = vst [vmem:[#allocation33_spill] sm:$0xff] %v11174_v58  ;;  %v11176_v59 = vld [vmem:[#allocation2 + $0x150] sm:$0xff]  ;;  %v11200_v58 = vsel %vm1109_vm1, %v3456_v33, %v13204_v34  ;;  %13207 = vst [vmem:[#allocation34_spill] sm:$0xff] %v11210_v9  ;;  %v3009_v34 = vrot.slane %v10957_v45, 1  ;;  %v3015_v45 = vrot.slane %v10967_v21, 1 }
 0x23d   : > { %8409 = vmatprep.mubr.bf16.mxu0 %v2697_v61  ;;  %v3455_v61 = vrot.slane %v11176_v59, 2  ;;  %v2699_v23 = vpack.c.bf16 %v11178_v11, %v11176_v59  ;;  %v11205_v3 = vsel %vm1109_vm1, %v3460_v12, %v3461_v37  ;;  %v13208_v12 = vrot.slane %v10739_v49, 1  ;;  %v11223_v37 = vld [vmem:[#allocation2] sm:$0xff] }
 0x23e   : > { %13205 = vst [vmem:[#allocation31_spill] sm:$0xff] %v11205_v3  ;;  %v3016_v49 = vsel %vm545_vm0, %v3014_v8, %v3015_v45 }
 0x23f   : > { %v11195_v29 = vsel %vm1109_vm1, %v3455_v61, %v3456_v33  ;;  %v2700_v61 = vpack.c.bf16 %v11188_v17, %v11186_v42  ;;  %v3010_v33 = vrot.slane %v10959_v6, 1  ;;  %v3019_v6 = vrot.slane %v10993_v47, 1 }
 0x241   : > { %v3013_v35 = vsel %vm545_vm0, %v3010_v33, %v13208_v12 }
 0x244   : > { %8410 = vmatmul.mubr.bf16.gmra.mrb[20].mxu0 %v2698_v2  ;;  %v2702_v2 = vpack.c.bf16 %v11223_v37, %v11223_v37 }
 0x245   : > { %8413 = vmatprep.mubr.bf16.mxu0 %v2699_v23  ;;  %v3011_v23 = vsel %vm545_vm0, %v3009_v34, %v3010_v33  ;;  %v9608_v34 = vld [vmem:[#allocation9 + $0x48] sm:$0xff]   ;;  %v13209_v33 = vrot.slane %v10741_v50, 1  ;;  %v3029_v50 = vrot.slane %v11029_v4, 1 }
 0x246   : > { %v3121_v3 = vpack.c.bf16 %v3013_v35, %v3011_v23  ;;  %v3030_v23 = vrot.slane %v11031_v0, 1  ;;  %v9600_v35 = vld [vmem:[#allocation7 + $0x208] sm:$0xff]   ;;  %v9601_v0 = vld [vmem:[#allocation7 + $0x210] sm:$0xff]  }
 0x247   : > { %v3018_v12 = vsel %vm545_vm0, %v3015_v45, %v13209_v33  ;;  %v13211_v45 = vrot.slane %v10764_v55, 1  ;;  %v3039_v55 = vrot.slane %v11065_v53, 1  ;;  %v13213_v33 = vrot.slane %v10780_v46, 1  ;;  %v9603_v53 = vld [vmem:[#allocation7 + $0x220] sm:$0xff]  }
 0x248   : > { %v3122_v47 = vpack.c.bf16 %v3018_v12, %v3016_v49  ;;  %v9602_v49 = vld [vmem:[#allocation7 + $0x218] sm:$0xff]   ;;  %v3049_v46 = vrot.slane %v11101_v41, 1  ;;  %v9605_v41 = vld [vmem:[#allocation7 + $0x230] sm:$0xff]  }
 0x24c   : > { %8414 = vmatmul.mubr.bf16.gmra.mrb[24].mxu0 %v2700_v61  ;;  %v9607_v61 = vld [vmem:[#allocation9 + $0x40] sm:$0xff]  }
 0x24d   : > { %8417 = vmatprep.mubr.bf16.mxu0 %v10746_v20  ;;  %v3020_v20 = vrot.slane %v10995_v51, 1  ;;  %8517 = vmatprep.subr.bf16.mxu1 %v9607_v61  ;;  %v9609_v51 = vld [vmem:[#allocation9 + $0x50] sm:$0xff]  }
 0x24e   : > { %8518 = vmatpush3.bf16.msra.mxu1 %v9607_v61 }
 0x24f   : > { %v3021_v9 = vsel %vm545_vm0, %v3019_v6, %v3020_v20  ;;  %v3023_v21 = vsel %vm545_vm0, %v3020_v20, %v13210_v24  ;;  %8519 = vmatprep.subr.bf16.mxu1 %v9608_v34  ;;  %v3034_v20 = vrot.slane %v11039_v48, 1 }
 0x250   : > { %v3123_v8 = vpack.c.bf16 %v3023_v21, %v3021_v9  ;;  %v13212_v9 = vrot.slane %v10778_v28, 1  ;;  %v3044_v21 = vrot.slane %v11075_v54, 1 }
 0x252   : > { %8520 = vmatpush3.bf16.msra.mxu1 %v9608_v34  ;;  %v3033_v4 = vsel %vm545_vm0, %v3030_v23, %v13212_v9  ;;  %v3040_v34 = vrot.slane %v11067_v52, 1  ;;  %v13217_v9 = vrot.slane %v10812_v26, 1  ;;  %v3070_v26 = vrot.slane %v11178_v11, 1 }
 0x253   : > { %8521 = vmatprep.subr.bf16.mxu1 %v9609_v51 }
 0x254   : > { %8418 = vmatmul.mubr.bf16.gmra.mrb[28].mxu0 %v2702_v2  ;;  %v3024_v2 = vrot.slane %v11003_v22, 1  ;;  %v3041_v48 = vsel %vm545_vm0, %v3039_v55, %v3040_v34 }
 0x255   : > { %8437 = vmatprep.mubr.bf16.mxu0 %v3121_v3  ;;  %v3025_v3 = vrot.slane %v11005_v57, 1  ;;  %v3031_v57 = vsel %vm545_vm0, %v3029_v50, %v3030_v23 }
 0x256   : > { %8522 = vmatpush3.bf16.msra.mxu1 %v9609_v51  ;;  %v3125_v61 = vpack.c.bf16 %v3033_v4, %v3031_v57  ;;  %v9606_v57 = vld [vmem:[#allocation7 + $0x238] sm:$0xff]  }
 0x257   : > { %v3026_v15 = vsel %vm545_vm0, %v3024_v2, %v3025_v3  ;;  %v3028_v22 = vsel %vm545_vm0, %v3025_v3, %v13211_v45  ;;  %v3050_v2 = vrot.slane %v11103_v36, 1  ;;  %v9604_v3 = vld [vmem:[#allocation7 + $0x228] sm:$0xff]  }
 0x258   : > { %v3124_v6 = vpack.c.bf16 %v3028_v22, %v3026_v15  ;;  %v3055_v15 = vrot.slane %v11113_v10, 1  ;;  %v3060_v22 = vrot.slane %v11139_v31, 1  ;;  %v13218_v10 = vrot.slane %v10826_v16, 1 }
 0x259   : > { %v3051_v54 = vsel %vm545_vm0, %v3049_v46, %v3050_v2  ;;  %v3064_v31 = vrot.slane %v11149_v63, 1  ;;  %v13219_v16 = vrot.slane %v10828_v25, 1  ;;  %v13220_v63 = vrot.slane %v10842_v27, 1  ;;  %v13239_v46 = vld [vmem:[#allocation22_spill] sm:$0xff] }
 0x25a   : > { %v3058_v4 = vsel %vm545_vm0, %v3055_v15, %v13217_v9  ;;  %v13221_v25 = vrot.slane %v10844_v18, 1  ;;  %v13222_v27 = vpack.c.bf16 %v10981_v43, %v10976_v1  ;;  %v13226_v18 = vld [vmem:[#allocation17_spill] sm:$0xff]  ;;  %v13235_v43 = vld [vmem:[#allocation23_spill] sm:$0xff] }
 0x25b   : > { %v13258_v9 = vld [vmem:[#allocation43_spill] sm:$0xff] }
 0x25c   : > { %8438 = vmatmul.mubr.bf16.vlgmr.msra.gmra.mrb[0].mxu0 %v3122_v47  ;;  %v3045_v47 = vrot.slane %v11077_v13, 1  ;;  %v13216_v13 = vrot.slane %v10810_v60, 1 }
 0x25d   : > { %8470 = vmatpush3.bf16.msra.mxu0 %v11141_v32  ;;  %8441 = vmatprep.mubr.bf16.mxu0 %v3123_v8  ;;  %v3035_v32 = vrot.slane %v11041_v62, 1  ;;  %v13214_v62 = vrot.slane %v10794_v14, 1  ;;  %v13215_v8 = vrot.slane %v10796_v30, 1  ;;  %v3059_v30 = vrot.slane %v11137_v40, 1 }
 0x25e   : > { %8471 = vmatprep.subr.bf16.mxu0 %v9600_v35  ;;  %v3046_v14 = vsel %vm545_vm0, %v3044_v21, %v3045_v47  ;;  %v3053_v23 = vsel %vm545_vm0, %v3050_v2, %v13216_v13  ;;  %v13241_v2 = vld [vmem:[#allocation26_spill] sm:$0xff] }
 0x25f   : > { %v3036_v28 = vsel %vm545_vm0, %v3034_v20, %v3035_v32  ;;  %v3038_v12 = vsel %vm545_vm0, %v3035_v32, %v13213_v33  ;;  %v3043_v24 = vsel %vm545_vm0, %v3040_v34, %v13214_v62  ;;  %v3048_v50 = vsel %vm545_vm0, %v3045_v47, %v13215_v8  ;;  %v13233_v47 = vld [vmem:[#allocation18_spill] sm:$0xff]  ;;  %v13244_v8 = vld [vmem:[#allocation29_spill] sm:$0xff] }
 0x260   : > { %v3126_v52 = vpack.c.bf16 %v3038_v12, %v3036_v28  ;;  %v3127_v51 = vpack.c.bf16 %v3043_v24, %v3041_v48  ;;  %v3128_v36 = vpack.c.bf16 %v3048_v50, %v3046_v14  ;;  %v3129_v45 = vpack.c.bf16 %v3053_v23, %v3051_v54  ;;  %v13227_v24 = vld [vmem:[#allocation14_spill] sm:$0xff]  ;;  %v13245_v50 = vld [vmem:[#allocation28_spill] sm:$0xff]  ;;  %v13248_v23 = vld [vmem:[#allocation27_spill] sm:$0xff] }
 0x261   : > { %8472 = vmatpush3.bf16.msra.mxu0 %v9600_v35  ;;  %v3054_v35 = vrot.slane %v11111_v56, 1  ;;  %v3061_v56 = vsel %vm545_vm0, %v3059_v30, %v3060_v22  ;;  %v3069_v32 = vrot.slane %v11176_v59, 1  ;;  %v3074_v28 = vrot.slane %v11186_v42, 1  ;;  %v13247_v13 = vld [vmem:[#allocation30_spill] sm:$0xff] }
 0x262   : > { %8473 = vmatprep.subr.bf16.mxu0 %v9601_v0  ;;  %v3075_v59 = vrot.slane %v11188_v17, 1  ;;  %v13223_v42 = vpack.c.bf16 %v10991_v44, %v10986_v39  ;;  %v13224_v17 = vld [vmem:[#allocation15_spill] sm:$0xff]  ;;  %v13238_v44 = vld [vmem:[#allocation25_spill] sm:$0xff]  ;;  %v13246_v54 = vpack.c.bf16 %v13244_v8, %v13245_v50  ;;  %v11348_v30 = vrot.slane %v11223_v37, 2 }
 0x263   : > { %v3056_v60 = vsel %vm545_vm0, %v3054_v35, %v3055_v15  ;;  %v3071_v34 = vsel %vm545_vm0, %v3069_v32, %v3070_v26  ;;  %v13225_v62 = vpack.c.bf16 %v11017_v7, %v13224_v17  ;;  %v13240_v7 = vpack.c.bf16 %v13238_v44, %v13239_v46  ;;  %v13251_v35 = vld [vmem:[#allocation32_spill] sm:$0xff]  ;;  %v9614_v37 = vld [vmem:[#allocation9 + $0x78] sm:$0xff]  }
 0x264   : > { %8442 = vmatmul.mubr.bf16.gmra.mrb[4].mxu0 %v3124_v6  ;;  %v3130_v40 = vpack.c.bf16 %v3058_v4, %v3056_v60  ;;  %v3065_v6 = vrot.slane %v11151_v38, 1  ;;  %v3073_v38 = vsel %vm545_vm0, %v3070_v26, %v13220_v63  ;;  %v3076_v33 = vsel %vm545_vm0, %v3074_v28, %v3075_v59  ;;  %13254 = vst [vmem:[#allocation35_spill] sm:$0xff] %v11348_v30 }
 0x265   : > { %8445 = vmatprep.mubr.bf16.mxu0 %v3125_v61  ;;  %8474 = vmatpush3.bf16.msra.mxu0 %v9601_v0  ;;  %v3063_v0 = vsel %vm545_vm0, %v3060_v22, %v13218_v10  ;;  %v3133_v11 = vpack.c.bf16 %v3073_v38, %v3071_v34  ;;  %v3078_v12 = vsel %vm545_vm0, %v3075_v59, %v13221_v25  ;;  %v13255_v22 = vld [vmem:[#allocation34_spill] sm:$0xff] }
 0x266   : > { %8475 = vmatprep.subr.bf16.mxu0 %v9602_v49  ;;  %v3131_v20 = vpack.c.bf16 %v3063_v0, %v3061_v56  ;;  %v3066_v61 = vsel %vm545_vm0, %v3064_v31, %v3065_v6  ;;  %v3068_v55 = vsel %vm545_vm0, %v3065_v6, %v13219_v16  ;;  %v3134_v48 = vpack.c.bf16 %v3078_v12, %v3076_v33  ;;  %v9610_v56 = vld [vmem:[#allocation9 + $0x58] sm:$0xff]   ;;  %v9611_v10 = vld [vmem:[#allocation9 + $0x60] sm:$0xff]  }
 0x267   : > { %v3522_v4 = vpack.c.bf16 %v11348_v30, %v11348_v30  ;;  %8523 = vmatprep.subr.bf16.mxu1 %v9610_v56  ;;  %v11356_v0 = vld [vmem:[#allocation9] sm:$0xff]  }
 0x268   : > { %8524 = vmatpush3.bf16.msra.mxu1 %v9610_v56 }
 0x269   : > { %8476 = vmatpush3.bf16.msra.mxu0 %v9602_v49  ;;  %v3132_v49 = vpack.c.bf16 %v3068_v55, %v3066_v61  ;;  %8525 = vmatprep.subr.bf16.mxu1 %v9611_v10 }
 0x26a   : > { %8477 = vmatprep.subr.bf16.mxu0 %v9603_v53 }
 0x26c   : > { %8446 = vmatmul.mubr.bf16.gmra.mrb[8].mxu0 %v3126_v52  ;;  %v13229_v52 = vld [vmem:[#allocation19_spill] sm:$0xff]  ;;  %8526 = vmatpush3.bf16.msra.mxu1 %v9611_v10 }
 0x26d   : > { %8449 = vmatprep.mubr.bf16.mxu0 %v3127_v51  ;;  %8478 = vmatpush3.bf16.msra.mxu0 %v9603_v53  ;;  %v13228_v53 = vpack.c.bf16 %v13226_v18, %v13227_v24  ;;  %v13236_v51 = vld [vmem:[#allocation20_spill] sm:$0xff] }
 0x26e   : > { %8479 = vmatprep.subr.bf16.mxu0 %v9604_v3  ;;  %v13237_v39 = vpack.c.bf16 %v13235_v43, %v13236_v51 }
 0x271   : > { %8480 = vmatpush3.bf16.msra.mxu0 %v9604_v3  ;;  %v13242_v3 = vld [vmem:[#allocation24_spill] sm:$0xff] }
 0x272   : > { %8481 = vmatprep.subr.bf16.mxu0 %v9605_v41  ;;  %v13243_v14 = vpack.c.bf16 %v13241_v2, %v13242_v3 }
 0x274   : > { %8450 = vmatmul.mubr.bf16.gmra.mrb[12].mxu0 %v3128_v36  ;;  %v13250_v36 = vld [vmem:[#allocation33_spill] sm:$0xff] }
 0x275   : > { %8453 = vmatprep.mubr.bf16.mxu0 %v3129_v45  ;;  %8482 = vmatpush3.bf16.msra.mxu0 %v9605_v41  ;;  %v13249_v41 = vpack.c.bf16 %v13247_v13, %v13248_v23  ;;  %v13252_v15 = vpack.c.bf16 %v13250_v36, %v13251_v35  ;;  %v13253_v45 = vpack.c.bf16 %v11200_v58, %v11195_v29  ;;  %v9612_v58 = vld [vmem:[#allocation9 + $0x68] sm:$0xff]   ;;  %v9613_v29 = vld [vmem:[#allocation9 + $0x70] sm:$0xff]  }
 0x276   : > { %8483 = vmatprep.subr.bf16.mxu0 %v9606_v57  ;;  %8527 = vmatprep.subr.bf16.mxu1 %v9612_v58 }
 0x277   : > { %8528 = vmatpush3.bf16.msra.mxu1 %v9612_v58 }
 0x278   : > { %8529 = vmatprep.subr.bf16.mxu1 %v9613_v29 }
 0x279   : > { %8484 = vmatpush3.bf16.msra.mxu0 %v9606_v57  ;;  %v13256_v57 = vld [vmem:[#allocation31_spill] sm:$0xff] }
 0x27a   : > { %v13257_v60 = vpack.c.bf16 %v13255_v22, %v13256_v57  ;;  %v9616_v22 = vld [vmem:[#allocation9 + $0x8] sm:$0xff]  }
 0x27b   : > { %8530 = vmatpush3.bf16.msra.mxu1 %v9613_v29 }
 0x27c   : > { %8454 = vmatmul.mubr.bf16.gmra.mrb[16].mxu0 %v3130_v40  ;;  %8531 = vmatprep.subr.bf16.mxu1 %v9614_v37  ;;  %v11362_v40 = vld [vmem:[%s12841_s2] ss:$0 sm:$0xff] }
 0x27d   : > { %8457 = vmatprep.mubr.bf16.mxu0 %v3131_v20 }
 0x27f   : > { %8532 = vmatpush3.bf16.msra.mxu1 %v9614_v37 }
 0x280   : > { %8565 = vmatprep.subr.bf16.mxu1 %v11356_v0 }
 0x284   : > { %8458 = vmatmul.mubr.bf16.gmra.mrb[20].mxu0 %v3132_v49 }
 0x285   : > { %8461 = vmatprep.mubr.bf16.mxu0 %v3133_v11 }
 0x28c   : > { %8462 = vmatmul.mubr.bf16.gmra.mrb[24].mxu0 %v3134_v48 }
 0x28d   : > { %8465 = vmatprep.mubr.bf16.mxu0 %v10868_v19  ;;  %v13230_v19 = vld [vmem:[#allocation16_spill] sm:$0xff] }
 0x28e   : > { %v13231_v21 = vpack.c.bf16 %v13229_v52, %v13230_v19 }
 0x294   : > { %8466 = vmatmul.mubr.bf16.gmra.mrb[28].mxu0 %v10961_v5  ;;  %v13232_v5 = vld [vmem:[#allocation21_spill] sm:$0xff] }
 0x295   : > { %8485 = vmatprep.mubr.bf16.mxu0 %v13222_v27  ;;  %v13234_v1 = vpack.c.bf16 %v13232_v5, %v13233_v47 }
 0x29c   : > { %8486 = vmatmul.mubr.bf16.vlgmr.msra.gmra.mrb[0].mxu0 %v13223_v42 }
 0x29d   : > { %8489 = vmatprep.mubr.bf16.mxu0 %v13225_v62 }
 0x2a4   : > { %8490 = vmatmul.mubr.bf16.gmra.mrb[4].mxu0 %v13228_v53 }
 0x2a5   : > { %8493 = vmatprep.mubr.bf16.mxu0 %v13231_v21 }
 0x2ac   : > { %8494 = vmatmul.mubr.bf16.gmra.mrb[8].mxu0 %v13234_v1 }
 0x2ad   : > { %8497 = vmatprep.mubr.bf16.mxu0 %v13237_v39 }
 0x2b4   : > { %8498 = vmatmul.mubr.bf16.gmra.mrb[12].mxu0 %v13240_v7 }
 0x2b5   : > { %8501 = vmatprep.mubr.bf16.mxu0 %v13243_v14 }
 0x2bc   : > { %8502 = vmatmul.mubr.bf16.gmra.mrb[16].mxu0 %v13246_v54 }
 0x2bd   : > { %8505 = vmatprep.mubr.bf16.mxu0 %v13249_v41 }
 0x2c4   : > { %8506 = vmatmul.mubr.bf16.gmra.mrb[20].mxu0 %v13252_v15 }
 0x2c5   : > { %8509 = vmatprep.mubr.bf16.mxu0 %v13253_v45 }
 0x2cc   : > { %8510 = vmatmul.mubr.bf16.gmra.mrb[24].mxu0 %v13257_v60 }
 0x2cd   : > { %8513 = vmatprep.mubr.bf16.mxu0 %v13258_v9 }
 0x2d4   : > { %8514 = vmatmul.mubr.bf16.gmra.mrb[28].mxu0 %v3522_v4 }
 0x36f   : > { %v8487_v31 = vpop.f32.mrb[0].mxu0 }
 0x370   : > { %v3790_v6 = vadd.f32 %v8487_v31, %v11362_v40  ;;  %v3622_v20 = vpop.f32.mrb[1].mxu0 }
 0x371   : > { %v3788_v32 = vadd.f32 %v11362_v40, %v3622_v20  ;;  %v8488_v26 = vpop.f32.mrb[2].mxu0 }
 0x372   : > { %v3822_v61 = vmax.f32 %v3790_v6, 0.0  ;;  %v3791_v16 = vadd.f32 %v8488_v26, %v11362_v40  ;;  %v3625_v55 = vpop.f32.mrb[3].mxu0 }
 0x373   : > { %v3820_v34 = vmax.f32 %v3788_v32, 0.0  ;;  %v3789_v63 = vadd.f32 %v11362_v40, %v3625_v55 }
 0x374   : > { %3854 = vst [vmem:[#allocation3 + $0x31] sm:$0xff] %v3822_v61  ;;  %v3823_v38 = vmax.f32 %v3791_v16, 0.0  ;;  %v9617_v61 = vld [vmem:[#allocation9 + $0x10] sm:$0xff]  }
 0x375   : > { %3852 = vst [vmem:[#allocation3 + $0x19] sm:$0xff] %v3820_v34  ;;  %v3821_v49 = vmax.f32 %v3789_v63, 0.0 }
 0x376   : > { %3855 = vst [vmem:[#allocation3 + $0x39] sm:$0xff] %v3823_v38 }
 0x377   : > { %3853 = vst [vmem:[#allocation3 + $0x21] sm:$0xff] %v3821_v49  ;;  %v8491_v28 = vpop.f32.mrb[4].mxu0 }
 0x378   : > { %v3794_v59 = vadd.f32 %v8491_v28, %v11362_v40  ;;  %v3638_v11 = vpop.f32.mrb[5].mxu0 }
 0x379   : > { %v3792_v33 = vadd.f32 %v11362_v40, %v3638_v11  ;;  %v8492_v25 = vpop.f32.mrb[6].mxu0 }
 0x37a   : > { %v3826_v12 = vmax.f32 %v3794_v59, 0.0  ;;  %v3795_v48 = vadd.f32 %v8492_v25, %v11362_v40  ;;  %v3641_v27 = vpop.f32.mrb[7].mxu0 }
 0x37b   : > { %v3824_v42 = vmax.f32 %v3792_v33, 0.0  ;;  %v3793_v17 = vadd.f32 %v11362_v40, %v3641_v27  ;;  %v3890_v62 = vld [vmem:[#allocation3 + $0x30] sm:$0xff] }
 0x37c   : > { %3858 = vst [vmem:[#allocation3 + $0x61] sm:$0xff] %v3826_v12  ;;  %v3827_v18 = vmax.f32 %v3795_v48, 0.0  ;;  %v3887_v24 = vld [vmem:[#allocation3 + $0x18] sm:$0xff]  ;;  %v4022_v47 = vrot.slane %v3890_v62, 1 }
 0x37d   : > { %3856 = vst [vmem:[#allocation3 + $0x49] sm:$0xff] %v3824_v42  ;;  %v3825_v53 = vmax.f32 %v3793_v17, 0.0  ;;  %v3891_v52 = vld [vmem:[#allocation3 + $0x38] sm:$0xff]  ;;  %v3892_v19 = vld [vmem:[#allocation3 + $0x40] sm:$0xff]  ;;  %v4017_v44 = vrot.slane %v3887_v24, 1 }
 0x37e   : > { %3859 = vst [vmem:[#allocation3 + $0x69] sm:$0xff] %v3827_v18  ;;  %v3888_v21 = vld [vmem:[#allocation3 + $0x20] sm:$0xff]  ;;  %v3889_v5 = vld [vmem:[#allocation3 + $0x28] sm:$0xff]  ;;  %v11372_v1 = vrot.slane %v3891_v52, 1  ;;  %v4025_v43 = vrot.slane %v3892_v19, 1  ;;  %v11374_v51 = vpack.c.bf16 %v3891_v52, %v3890_v62 }
 0x37f   : > { %3857 = vst [vmem:[#allocation3 + $0x51] sm:$0xff] %v3825_v53  ;;  %v8495_v39 = vpop.f32.mrb[8].mxu0  ;;  %v11376_v46 = vrot.slane %v3888_v21, 1  ;;  %v4020_v7 = vrot.slane %v3889_v5, 1  ;;  %v11385_v50 = vpack.c.bf16 %v3888_v21, %v3887_v24  ;;  %v9618_v18 = vld [vmem:[#allocation9 + $0x18] sm:$0xff]  }
 0x380   : > { %13259 = vst [vmem:[#allocation36_spill] sm:$0xff] %v11374_v51  ;;  %v3798_v2 = vadd.f32 %v8495_v39, %v11362_v40  ;;  %v3654_v3 = vpop.f32.mrb[9].mxu0  ;;  %v11381_v14 = vsel %vm545_vm0, %v4022_v47, %v11372_v1  ;;  %v4026_v8 = vsel %vm545_vm0, %v11372_v1, %v4025_v43 }
 0x381   : > { %13260 = vst [vmem:[#allocation38_spill] sm:$0xff] %v11381_v14  ;;  %13261 = vst [vmem:[#allocation39_spill] sm:$0xff] %v11385_v50  ;;  %v3796_v54 = vadd.f32 %v11362_v40, %v3654_v3  ;;  %v8496_v13 = vpop.f32.mrb[10].mxu0  ;;  %v11390_v23 = vsel %vm545_vm0, %v4017_v44, %v11376_v46  ;;  %v4021_v41 = vsel %vm545_vm0, %v11376_v46, %v4020_v7 }
 0x382   : > { %13262 = vst [vmem:[#allocation40_spill] sm:$0xff] %v11390_v23  ;;  %v3830_v36 = vmax.f32 %v3798_v2, 0.0  ;;  %v3799_v35 = vadd.f32 %v8496_v13, %v11362_v40  ;;  %v3657_v15 = vpop.f32.mrb[11].mxu0  ;;  %v4125_v45 = vpack.c.bf16 %v4021_v41, %v11390_v23  ;;  %v4126_v9 = vpack.c.bf16 %v4026_v8, %v11381_v14  ;;  %v9624_v23 = vld [vmem:[#allocation9 + $0x88] sm:$0xff]  }
 0x383   : > { %v3828_v57 = vmax.f32 %v3796_v54, 0.0  ;;  %v3797_v60 = vadd.f32 %v11362_v40, %v3657_v15  ;;  %v11398_v4 = vld [vmem:[#allocation3 + $0x60] sm:$0xff] }
 0x384   : > { %3862 = vst [vmem:[#allocation3 + $0x91] sm:$0xff] %v3830_v36  ;;  %v3831_v56 = vmax.f32 %v3799_v35, 0.0  ;;  %8534 = vmatmul.mubr.bf16.vlgmr.msra.gmra.mrb[0].mxu1 %v4125_v45  ;;  %v3893_v10 = vld [vmem:[#allocation3 + $0x48] sm:$0xff]  ;;  %v4032_v20 = vrot.slane %v11398_v4, 1  ;;  %v4595_v2 = vrot.slane %v11398_v4, 2  ;;  %v9619_v36 = vld [vmem:[#allocation9 + $0x20] sm:$0xff]  }
 0x385   : > { %3860 = vst [vmem:[#allocation3 + $0x79] sm:$0xff] %v3828_v57  ;;  %v3829_v58 = vmax.f32 %v3797_v60, 0.0  ;;  %8537 = vmatprep.mubr.bf16.mxu1 %v4126_v9  ;;  %8566 = vmatpush3.bf16.msra.mxu1 %v11356_v0  ;;  %v3897_v29 = vld [vmem:[#allocation3 + $0x68] sm:$0xff]  ;;  %v11401_v37 = vld [vmem:[#allocation3 + $0x70] sm:$0xff]  ;;  %v4027_v0 = vrot.slane %v3893_v10, 1 }
 0x386   : > { %3863 = vst [vmem:[#allocation3 + $0x99] sm:$0xff] %v3831_v56  ;;  %v3894_v31 = vld [vmem:[#allocation3 + $0x50] sm:$0xff]  ;;  %v3895_v6 = vld [vmem:[#allocation3 + $0x58] sm:$0xff]  ;;  %8567 = vmatprep.subr.bf16.mxu1 %v9616_v22  ;;  %v11404_v32 = vrot.slane %v3897_v29, 1  ;;  %v4035_v26 = vrot.slane %v11401_v37, 1  ;;  %v11408_v16 = vpack.c.bf16 %v3897_v29, %v11398_v4  ;;  %v11436_v47 = vrot.slane %v3897_v29, 2 }
 0x387   : > { %3861 = vst [vmem:[#allocation3 + $0x81] sm:$0xff] %v3829_v58  ;;  %v8499_v55 = vpop.f32.mrb[12].mxu0  ;;  %v11410_v34 = vrot.slane %v3894_v31, 1  ;;  %v4030_v63 = vrot.slane %v3895_v6, 1  ;;  %v11412_v38 = vpack.c.bf16 %v3894_v31, %v3893_v10  ;;  %v4598_v58 = vrot.slane %v11401_v37, 2  ;;  %v9620_v37 = vld [vmem:[#allocation9 + $0x28] sm:$0xff]  }
 0x388   : > { %13263 = vst [vmem:[#allocation41_spill] sm:$0xff] %v11408_v16  ;;  %v3802_v49 = vadd.f32 %v8499_v55, %v11362_v40  ;;  %v3670_v28 = vpop.f32.mrb[13].mxu0  ;;  %v11417_v59 = vsel %vm545_vm0, %v4032_v20, %v11404_v32  ;;  %v4036_v11 = vsel %vm545_vm0, %v11404_v32, %v4035_v26  ;;  %v11459_v60 = vsel %vm1109_vm1, %v4595_v2, %v11436_v47 }
 0x389   : > { %13264 = vst [vmem:[#allocation42_spill] sm:$0xff] %v11412_v38  ;;  %13265 = vst [vmem:[#allocation37_spill] sm:$0xff] %v11417_v59  ;;  %v3800_v33 = vadd.f32 %v11362_v40, %v3670_v28  ;;  %v8500_v25 = vpop.f32.mrb[14].mxu0  ;;  %v11424_v12 = vsel %vm545_vm0, %v4027_v0, %v11410_v34  ;;  %v4031_v48 = vsel %vm545_vm0, %v11410_v34, %v4030_v63  ;;  %8568 = vmatpush3.bf16.msra.mxu1 %v9616_v22 }
 0x38a   : > { %13266 = vst [vmem:[#allocation15_spill] sm:$0xff] %v11424_v12  ;;  %v3834_v27 = vmax.f32 %v3802_v49, 0.0  ;;  %v3803_v42 = vadd.f32 %v8500_v25, %v11362_v40  ;;  %v3673_v17 = vpop.f32.mrb[15].mxu0  ;;  %v4127_v62 = vpack.c.bf16 %v4031_v48, %v11424_v12  ;;  %8569 = vmatprep.subr.bf16.mxu1 %v9617_v61  ;;  %v4128_v52 = vpack.c.bf16 %v4036_v11, %v11417_v59 }
 0x38b   : > { %v3832_v24 = vmax.f32 %v3800_v33, 0.0  ;;  %v3801_v53 = vadd.f32 %v11362_v40, %v3673_v17  ;;  %v11432_v19 = vld [vmem:[#allocation3 + $0x90] sm:$0xff]  ;;  %v11481_v49 = vsel %vm1109_vm1, %v11436_v47, %v4598_v58 }
 0x38c   : > { %3866 = vst [vmem:[#allocation3 + $0xc1] sm:$0xff] %v3834_v27  ;;  %v3835_v21 = vmax.f32 %v3803_v42, 0.0  ;;  %8538 = vmatmul.mubr.bf16.gmra.mrb[4].mxu1 %v4127_v62  ;;  %v11434_v5 = vld [vmem:[#allocation3 + $0x78] sm:$0xff]  ;;  %v4042_v7 = vrot.slane %v11432_v19, 1  ;;  %13271 = vst [vmem:[#allocation21_spill] sm:$0xff] %v11481_v49 }
 0x38d   : > { %3864 = vst [vmem:[#allocation3 + $0xa9] sm:$0xff] %v3832_v24  ;;  %v3833_v43 = vmax.f32 %v3801_v53, 0.0  ;;  %8541 = vmatprep.mubr.bf16.mxu1 %v4128_v52  ;;  %v3903_v39 = vld [vmem:[#allocation3 + $0x98] sm:$0xff]  ;;  %v11438_v44 = vld [vmem:[#allocation3 + $0xa0] sm:$0xff]  ;;  %8570 = vmatpush3.bf16.msra.mxu1 %v9617_v61  ;;  %v4037_v54 = vrot.slane %v11434_v5, 1  ;;  %v4600_v48 = vrot.slane %v11434_v5, 2 }
 0x38e   : > { %3867 = vst [vmem:[#allocation3 + $0xc9] sm:$0xff] %v3835_v21  ;;  %v3900_v3 = vld [vmem:[#allocation3 + $0x80] sm:$0xff]  ;;  %v11442_v8 = vld [vmem:[#allocation3 + $0x88] sm:$0xff]  ;;  %v11445_v13 = vrot.slane %v3903_v39, 1  ;;  %v4045_v41 = vrot.slane %v11438_v44, 1  ;;  %8571 = vmatprep.subr.bf16.mxu1 %v9618_v18  ;;  %v11449_v35 = vpack.c.bf16 %v3903_v39, %v11432_v19 }
 0x38f   : > { %3865 = vst [vmem:[#allocation3 + $0xb1] sm:$0xff] %v3833_v43  ;;  %v8503_v15 = vpop.f32.mrb[16].mxu0  ;;  %v11451_v45 = vrot.slane %v3900_v3, 1  ;;  %v4040_v22 = vrot.slane %v11442_v8, 1  ;;  %v11455_v57 = vpack.c.bf16 %v3900_v3, %v11434_v5  ;;  %v11492_v62 = vrot.slane %v3900_v3, 2 }
 0x390   : > { %13267 = vst [vmem:[#allocation17_spill] sm:$0xff] %v11449_v35  ;;  %v3806_v9 = vadd.f32 %v8503_v15, %v11362_v40  ;;  %v3686_v4 = vpop.f32.mrb[17].mxu0  ;;  %v11464_v56 = vsel %vm545_vm0, %v4042_v7, %v11445_v13  ;;  %v4046_v10 = vsel %vm545_vm0, %v11445_v13, %v4045_v41  ;;  %v4605_v5 = vrot.slane %v11432_v19, 2 }
 0x391   : > { %13268 = vst [vmem:[#allocation14_spill] sm:$0xff] %v11455_v57  ;;  %13269 = vst [vmem:[#allocation19_spill] sm:$0xff] %v11464_v56  ;;  %v3804_v29 = vadd.f32 %v11362_v40, %v3686_v4  ;;  %v8504_v31 = vpop.f32.mrb[18].mxu0  ;;  %v11472_v6 = vsel %vm545_vm0, %v4037_v54, %v11451_v45  ;;  %v4041_v20 = vsel %vm545_vm0, %v11451_v45, %v4040_v22  ;;  %8572 = vmatpush3.bf16.msra.mxu1 %v9618_v18  ;;  %v9621_v54 = vld [vmem:[#allocation9 + $0x30] sm:$0xff]  }
 0x392   : > { %13270 = vst [vmem:[#allocation16_spill] sm:$0xff] %v11472_v6  ;;  %v4130_v26 = vpack.c.bf16 %v4046_v10, %v11464_v56  ;;  %v3838_v61 = vmax.f32 %v3806_v9, 0.0  ;;  %v3807_v55 = vadd.f32 %v8504_v31, %v11362_v40  ;;  %v3689_v0 = vpop.f32.mrb[19].mxu0  ;;  %v4129_v63 = vpack.c.bf16 %v4041_v20, %v11472_v6  ;;  %8573 = vmatprep.subr.bf16.mxu1 %v9619_v36  ;;  %v9710_v56 = vld [vmem:[#allocation3 + $0x38] sm:$0xff] }
 0x393   : > { %v3836_v28 = vmax.f32 %v3804_v29, 0.0  ;;  %v3805_v11 = vadd.f32 %v11362_v40, %v3689_v0  ;;  %v11484_v33 = vld [vmem:[#allocation3 + $0xc0] sm:$0xff]  ;;  %v4603_v18 = vrot.slane %v11442_v8, 2  ;;  %v11501_v43 = vrot.slane %v3903_v39, 2 }
 0x394   : > { %3870 = vst [vmem:[#allocation3 + $0xf1] sm:$0xff] %v3838_v61  ;;  %v3839_v27 = vmax.f32 %v3807_v55, 0.0  ;;  %8542 = vmatmul.mubr.bf16.gmra.mrb[8].mxu1 %v4129_v63  ;;  %v11489_v42 = vld [vmem:[#allocation3 + $0xa8] sm:$0xff]  ;;  %v4052_v17 = vrot.slane %v11484_v33, 1  ;;  %v11515_v19 = vsel %vm1109_vm1, %v4600_v48, %v11492_v62  ;;  %v12149_v12 = vld [vmem:[#allocation3 + $0xc0] sm:$0xff] }
 0x395   : > { %3868 = vst [vmem:[#allocation3 + $0xd9] sm:$0xff] %v3836_v28  ;;  %v3837_v24 = vmax.f32 %v3805_v11, 0.0  ;;  %8545 = vmatprep.mubr.bf16.mxu1 %v4130_v26  ;;  %v4047_v53 = vrot.slane %v11489_v42, 1  ;;  %v11496_v52 = vld [vmem:[#allocation3 + $0xc8] sm:$0xff]  ;;  %v11498_v21 = vld [vmem:[#allocation3 + $0xd0] sm:$0xff]  ;;  %8574 = vmatpush3.bf16.msra.mxu1 %v9619_v36  ;;  %v11525_v9 = vsel %vm1109_vm1, %v11492_v62, %v4603_v18  ;;  %13388 = vst [vmem:[#allocation107_spill] sm:$0xff] %v12149_v12 }
 0x396   : > { %3871 = vst [vmem:[#allocation3 + $0xf9] sm:$0xff] %v3839_v27  ;;  %v3906_v7 = vld [vmem:[#allocation3 + $0xb0] sm:$0xff]  ;;  %v11503_v2 = vld [vmem:[#allocation3 + $0xb8] sm:$0xff]  ;;  %v11506_v3 = vrot.slane %v11496_v52, 1  ;;  %v4055_v8 = vrot.slane %v11498_v21, 1  ;;  %8575 = vmatprep.subr.bf16.mxu1 %v9620_v37  ;;  %v11511_v41 = vpack.c.bf16 %v11496_v52, %v11484_v33  ;;  %13274 = vst [vmem:[#allocation20_spill] sm:$0xff] %v11525_v9 }
 0x397   : > { %3869 = vst [vmem:[#allocation3 + $0xe1] sm:$0xff] %v3837_v24  ;;  %v8507_v39 = vpop.f32.mrb[20].mxu0  ;;  %v11517_v36 = vrot.slane %v3906_v7, 1  ;;  %v4050_v15 = vrot.slane %v11503_v2, 1  ;;  %v11521_v22 = vpack.c.bf16 %v3906_v7, %v11489_v42  ;;  %v9622_v27 = vld [vmem:[#allocation9 + $0x38] sm:$0xff]  }
 0x398   : > { %13272 = vst [vmem:[#allocation18_spill] sm:$0xff] %v11511_v41  ;;  %v3810_v4 = vadd.f32 %v8507_v39, %v11362_v40  ;;  %v3702_v10 = vpop.f32.mrb[21].mxu0  ;;  %v11530_v58 = vsel %vm545_vm0, %v4052_v17, %v11506_v3  ;;  %v4056_v29 = vsel %vm545_vm0, %v11506_v3, %v4055_v8  ;;  %v11548_v17 = vsel %vm1109_vm1, %v4605_v5, %v11501_v43 }
 0x399   : > { %13273 = vst [vmem:[#allocation23_spill] sm:$0xff] %v11521_v22  ;;  %13275 = vst [vmem:[#allocation25_spill] sm:$0xff] %v11530_v58  ;;  %v3808_v20 = vadd.f32 %v11362_v40, %v3702_v10  ;;  %v8508_v26 = vpop.f32.mrb[22].mxu0  ;;  %v11539_v61 = vsel %vm545_vm0, %v4047_v53, %v11517_v36  ;;  %v4051_v55 = vsel %vm545_vm0, %v11517_v36, %v4050_v15  ;;  %8576 = vmatpush3.bf16.msra.mxu1 %v9620_v37 }
 0x39a   : > { %13276 = vst [vmem:[#allocation22_spill] sm:$0xff] %v11539_v61  ;;  %v4132_v0 = vpack.c.bf16 %v4056_v29, %v11530_v58  ;;  %v3842_v63 = vmax.f32 %v3810_v4, 0.0  ;;  %v3811_v28 = vadd.f32 %v8508_v26, %v11362_v40  ;;  %v3705_v11 = vpop.f32.mrb[23].mxu0  ;;  %v4131_v48 = vpack.c.bf16 %v4051_v55, %v11539_v61  ;;  %8577 = vmatprep.subr.bf16.mxu1 %v9621_v54  ;;  %v9625_v61 = vld [vmem:[#allocation9 + $0x90] sm:$0xff]  }
 0x39b   : > { %v3840_v18 = vmax.f32 %v3808_v20, 0.0  ;;  %v3809_v24 = vadd.f32 %v11362_v40, %v3705_v11  ;;  %v11551_v53 = vld [vmem:[#allocation3 + $0xf0] sm:$0xff]  ;;  %v4608_v8 = vrot.slane %v11438_v44, 2  ;;  %v4610_v37 = vrot.slane %v11489_v42, 2 }
 0x39c   : > { %3874 = vst [vmem:[#allocation3 + $0x121] sm:$0xff] %v3842_v63  ;;  %v3843_v39 = vmax.f32 %v3811_v28, 0.0  ;;  %8546 = vmatmul.mubr.bf16.gmra.mrb[12].mxu1 %v4131_v48  ;;  %v11555_v15 = vld [vmem:[#allocation3 + $0xd8] sm:$0xff]  ;;  %v4062_v4 = vrot.slane %v11551_v53, 1  ;;  %v11558_v10 = vrot.slane %v3906_v7, 2  ;;  %v4613_v5 = vrot.slane %v11503_v2, 2 }
 0x39d   : > { %3872 = vst [vmem:[#allocation3 + $0x109] sm:$0xff] %v3840_v18  ;;  %v3841_v29 = vmax.f32 %v3809_v24, 0.0  ;;  %8549 = vmatprep.mubr.bf16.mxu1 %v4132_v0  ;;  %v4057_v20 = vrot.slane %v11555_v15, 1  ;;  %v11562_v26 = vld [vmem:[#allocation3 + $0xf8] sm:$0xff]  ;;  %v11564_v44 = vld [vmem:[#allocation3 + $0x100] sm:$0xff]  ;;  %8578 = vmatpush3.bf16.msra.mxu1 %v9621_v54  ;;  %v11568_v42 = vsel %vm1109_vm1, %v11501_v43, %v4608_v8  ;;  %v4615_v55 = vrot.slane %v11484_v33, 2 }
 0x39e   : > { %13277 = vst [vmem:[#allocation26_spill] sm:$0xff] %v11558_v10  ;;  %13278 = vst [vmem:[#allocation24_spill] sm:$0xff] %v11568_v42  ;;  %v3912_v7 = vld [vmem:[#allocation3 + $0xe0] sm:$0xff]  ;;  %v11571_v63 = vld [vmem:[#allocation3 + $0xe8] sm:$0xff]  ;;  %v11574_v2 = vrot.slane %v11562_v26, 1  ;;  %v4065_v0 = vrot.slane %v11564_v44, 1  ;;  %8579 = vmatprep.subr.bf16.mxu1 %v9622_v27  ;;  %v11581_v54 = vpack.c.bf16 %v11562_v26, %v11551_v53  ;;  %v11593_v8 = vsel %vm1109_vm1, %v4610_v37, %v11558_v10 }
 0x39f   : > { %3875 = vst [vmem:[#allocation3 + $0x129] sm:$0xff] %v3843_v39  ;;  %v11577_v28 = vld [vmem:[#allocation9 + $0x80] sm:$0xff]   ;;  %3873 = vst [vmem:[#allocation3 + $0x111] sm:$0xff] %v3841_v29  ;;  %v8511_v33 = vpop.f32.mrb[24].mxu0  ;;  %v11585_v48 = vrot.slane %v3912_v7, 1  ;;  %v4060_v18 = vrot.slane %v11571_v63, 1  ;;  %v11589_v24 = vpack.c.bf16 %v3912_v7, %v11555_v15  ;;  %v11604_v11 = vsel %vm1109_vm1, %v11558_v10, %v4613_v5 }
 0x3a0   : > { %13279 = vst [vmem:[#allocation29_spill] sm:$0xff] %v11581_v54  ;;  %13281 = vst [vmem:[#allocation30_spill] sm:$0xff] %v11593_v8  ;;  %v3814_v39 = vadd.f32 %v8511_v33, %v11362_v40  ;;  %v3718_v31 = vpop.f32.mrb[25].mxu0  ;;  %v11598_v25 = vsel %vm545_vm0, %v4062_v4, %v11574_v2  ;;  %v4066_v29 = vsel %vm545_vm0, %v11574_v2, %v4065_v0  ;;  %v11697_v10 = vrot.slane %v11562_v26, 2 }
 0x3a1   : > { %13280 = vst [vmem:[#allocation28_spill] sm:$0xff] %v11589_v24  ;;  %13282 = vst [vmem:[#allocation27_spill] sm:$0xff] %v11598_v25  ;;  %v3812_v42 = vadd.f32 %v11362_v40, %v3718_v31  ;;  %v8512_v9 = vpop.f32.mrb[26].mxu0  ;;  %v11609_v37 = vsel %vm545_vm0, %v4057_v20, %v11585_v48  ;;  %v4061_v33 = vsel %vm545_vm0, %v11585_v48, %v4060_v18  ;;  %8580 = vmatpush3.bf16.msra.mxu1 %v9622_v27 }
 0x3a2   : > { %13283 = vst [vmem:[#allocation33_spill] sm:$0xff] %v11604_v11  ;;  %13284 = vst [vmem:[#allocation32_spill] sm:$0xff] %v11609_v37  ;;  %v4134_v4 = vpack.c.bf16 %v4066_v29, %v11598_v25  ;;  %v3846_v49 = vmax.f32 %v3814_v39, 0.0  ;;  %v3815_v0 = vadd.f32 %v8512_v9, %v11362_v40  ;;  %v3721_v30 = vpop.f32.mrb[27].mxu0  ;;  %v4133_v5 = vpack.c.bf16 %v4061_v33, %v11609_v37 }
 0x3a3   : > { %8613 = vmatprep.subr.bf16.mxu1 %v11577_v28  ;;  %v3844_v54 = vmax.f32 %v3812_v42, 0.0  ;;  %v3813_v20 = vadd.f32 %v11362_v40, %v3721_v30  ;;  %v11620_v24 = vld [vmem:[#allocation3 + $0x120] sm:$0xff]  ;;  %v11623_v18 = vrot.slane %v11496_v52, 2  ;;  %v4618_v27 = vrot.slane %v11498_v21, 2 }
 0x3a4   : > { %3878 = vst [vmem:[#allocation3 + $0x151] sm:$0xff] %v3846_v49  ;;  %v3847_v9 = vmax.f32 %v3815_v0, 0.0  ;;  %8550 = vmatmul.mubr.bf16.gmra.mrb[16].mxu1 %v4133_v5  ;;  %v11626_v39 = vld [vmem:[#allocation3 + $0x108] sm:$0xff]  ;;  %v4072_v29 = vrot.slane %v11620_v24, 1  ;;  %v4620_v33 = vrot.slane %v11555_v15, 2  ;;  %v11630_v31 = vrot.slane %v3912_v7, 2 }
 0x3a5   : > { %13285 = vst [vmem:[#allocation34_spill] sm:$0xff] %v11623_v18  ;;  %3876 = vst [vmem:[#allocation3 + $0x139] sm:$0xff] %v3844_v54  ;;  %v3845_v30 = vmax.f32 %v3813_v20, 0.0  ;;  %8553 = vmatprep.mubr.bf16.mxu1 %v4134_v4  ;;  %v4067_v42 = vrot.slane %v11626_v39, 1  ;;  %v11639_v49 = vsel %vm1109_vm1, %v4615_v55, %v11623_v18  ;;  %v11643_v21 = vsel %vm1109_vm1, %v11623_v18, %v4618_v27 }
 0x3a6   : > { %13286 = vst [vmem:[#allocation31_spill] sm:$0xff] %v11630_v31  ;;  %v11633_v52 = vld [vmem:[#allocation3 + $0x128] sm:$0xff]  ;;  %v11635_v11 = vld [vmem:[#allocation3 + $0x130] sm:$0xff]  ;;  %13287 = vst [vmem:[#allocation43_spill] sm:$0xff] %v11639_v49  ;;  %v11665_v41 = vsel %vm1109_vm1, %v4620_v33, %v11630_v31  ;;  %v4623_v55 = vrot.slane %v11571_v63, 2 }
 0x3a7   : > { %13288 = vst [vmem:[#allocation44_spill] sm:$0xff] %v11643_v21  ;;  %3879 = vst [vmem:[#allocation3 + $0x159] sm:$0xff] %v3847_v9  ;;  %v3918_v15 = vld [vmem:[#allocation3 + $0x110] sm:$0xff]  ;;  %v11645_v7 = vld [vmem:[#allocation3 + $0x118] sm:$0xff]  ;;  %v11648_v54 = vrot.slane %v11633_v52, 1  ;;  %v4075_v4 = vrot.slane %v11635_v11, 1  ;;  %v11653_v0 = vpack.c.bf16 %v11633_v52, %v11620_v24 }
 0x3a8   : > { %3877 = vst [vmem:[#allocation3 + $0x141] sm:$0xff] %v3845_v30  ;;  %v8515_v5 = vpop.f32.mrb[28].mxu0  ;;  %v11657_v20 = vrot.slane %v3918_v15, 1  ;;  %v4070_v27 = vrot.slane %v11645_v7, 1  ;;  %v11661_v9 = vpack.c.bf16 %v3918_v15, %v11626_v39  ;;  %13291 = vst [vmem:[#allocation47_spill] sm:$0xff] %v11665_v41  ;;  %v11687_v63 = vsel %vm1109_vm1, %v11630_v31, %v4623_v55 }
 0x3a9   : > { %13289 = vst [vmem:[#allocation45_spill] sm:$0xff] %v11653_v0  ;;  %v3818_v22 = vadd.f32 %v8515_v5, %v11362_v40  ;;  %v3734_v35 = vpop.f32.mrb[29].mxu0  ;;  %v11670_v0 = vsel %vm545_vm0, %v4072_v29, %v11648_v54  ;;  %v4076_v30 = vsel %vm545_vm0, %v11648_v54, %v4075_v4  ;;  %13294 = vst [vmem:[#allocation50_spill] sm:$0xff] %v11687_v63  ;;  %v4635_v41 = vrot.slane %v11620_v24, 2 }
 0x3aa   : > { %13290 = vst [vmem:[#allocation46_spill] sm:$0xff] %v11661_v9  ;;  %13292 = vst [vmem:[#allocation48_spill] sm:$0xff] %v11670_v0  ;;  %v3816_v21 = vadd.f32 %v11362_v40, %v3734_v35  ;;  %v8516_v57 = vpop.f32.mrb[30].mxu0  ;;  %v11678_v9 = vsel %vm545_vm0, %v4067_v42, %v11657_v20  ;;  %v4071_v33 = vsel %vm545_vm0, %v11657_v20, %v4070_v27  ;;  %v4630_v27 = vrot.slane %v11626_v39, 2 }
 0x3ab   : > { %13293 = vst [vmem:[#allocation49_spill] sm:$0xff] %v11678_v9  ;;  %v4136_v5 = vpack.c.bf16 %v4076_v30, %v11670_v0  ;;  %v3850_v49 = vmax.f32 %v3818_v22, 0.0  ;;  %v3819_v29 = vadd.f32 %v8516_v57, %v11362_v40  ;;  %v3737_v18 = vpop.f32.mrb[31].mxu0  ;;  %v4135_v4 = vpack.c.bf16 %v4071_v33, %v11678_v9  ;;  %v11690_v42 = vld [vmem:[#allocation3 + $0x150] sm:$0xff] }
 0x3ac   : > { %v3848_v35 = vmax.f32 %v3816_v21, 0.0  ;;  %v3817_v8 = vadd.f32 %v11362_v40, %v3737_v18  ;;  %v4625_v30 = vrot.slane %v11551_v53, 2  ;;  %v3923_v57 = vld [vmem:[#allocation3 + $0x138] sm:$0xff]  ;;  %v4082_v33 = vrot.slane %v11690_v42, 1  ;;  %v12147_v9 = vld [vmem:[#allocation3 + $0xb0] sm:$0xff] }
 0x3ad   : > { %3882 = vst [vmem:[#allocation3 + $0x181] sm:$0xff] %v3850_v49  ;;  %v3851_v22 = vmax.f32 %v3819_v29, 0.0  ;;  %8554 = vmatmul.mubr.bf16.gmra.mrb[20].mxu1 %v4135_v4  ;;  %v4628_v21 = vrot.slane %v11564_v44, 2  ;;  %v4077_v18 = vrot.slane %v3923_v57, 1  ;;  %v11701_v53 = vrot.slane %v3918_v15, 2  ;;  %13387 = vst [vmem:[#allocation106_spill] sm:$0xff] %v12147_v9 }
 0x3ae   : > { %3880 = vst [vmem:[#allocation3 + $0x169] sm:$0xff] %v3848_v35  ;;  %v3849_v40 = vmax.f32 %v3817_v8, 0.0  ;;  %8557 = vmatprep.mubr.bf16.mxu1 %v4136_v5  ;;  %v3927_v55 = vld [vmem:[#allocation3 + $0x158] sm:$0xff]  ;;  %v3928_v31 = vld [vmem:[#allocation3 + $0x160] sm:$0xff]  ;;  %v11710_v44 = vsel %vm1109_vm1, %v4625_v30, %v11697_v10  ;;  %v11743_v30 = vrot.slane %v11633_v52, 2  ;;  %v4645_v52 = vrot.slane %v11690_v42, 2 }
 0x3af   : > { %3883 = vst [vmem:[#allocation3 + $0x189] sm:$0xff] %v3851_v22  ;;  %v3924_v49 = vld [vmem:[#allocation3 + $0x140] sm:$0xff]  ;;  %v3925_v29 = vld [vmem:[#allocation3 + $0x148] sm:$0xff]  ;;  %v11703_v4 = vrot.slane %v3927_v55, 1  ;;  %v4085_v63 = vrot.slane %v3928_v31, 1  ;;  %v11706_v26 = vpack.c.bf16 %v3927_v55, %v11690_v42  ;;  %13296 = vst [vmem:[#allocation52_spill] sm:$0xff] %v11710_v44  ;;  %v11718_v15 = vsel %vm1109_vm1, %v11697_v10, %v4628_v21 }
 0x3b0   : > { %3881 = vst [vmem:[#allocation3 + $0x171] sm:$0xff] %v3849_v40  ;;  %v11712_v8 = vrot.slane %v3924_v49, 1  ;;  %v4080_v5 = vrot.slane %v3925_v29, 1  ;;  %v11714_v39 = vpack.c.bf16 %v3924_v49, %v3923_v57  ;;  %13298 = vst [vmem:[#allocation54_spill] sm:$0xff] %v11718_v15  ;;  %v11730_v40 = vsel %vm1109_vm1, %v4630_v27, %v11701_v53  ;;  %v11917_v59 = vld [vmem:[#allocation3 + $0x160] sm:$0xff] }
 0x3b1   : > { %13295 = vst [vmem:[#allocation51_spill] sm:$0xff] %v11706_v26  ;;  %v11722_v35 = vsel %vm545_vm0, %v4082_v33, %v11703_v4  ;;  %v4086_v22 = vsel %vm545_vm0, %v11703_v4, %v4085_v63  ;;  %13300 = vst [vmem:[#allocation56_spill] sm:$0xff] %v11730_v40  ;;  %v4638_v27 = vrot.slane %v11635_v11, 2  ;;  %v4640_v15 = vrot.slane %v3923_v57, 2 }
 0x3b2   : > { %13297 = vst [vmem:[#allocation53_spill] sm:$0xff] %v11714_v39  ;;  %13299 = vst [vmem:[#allocation55_spill] sm:$0xff] %v11722_v35  ;;  %v11734_v26 = vsel %vm545_vm0, %v4077_v18, %v11712_v8  ;;  %v4081_v21 = vsel %vm545_vm0, %v11712_v8, %v4080_v5  ;;  %v4138_v33 = vpack.c.bf16 %v4086_v22, %v11722_v35  ;;  %v4633_v39 = vrot.slane %v11645_v7, 2 }
 0x3b3   : > { %13301 = vst [vmem:[#allocation57_spill] sm:$0xff] %v11734_v26  ;;  %v4137_v63 = vpack.c.bf16 %v4081_v21, %v11734_v26  ;;  %v11750_v44 = vrot.slane %v3924_v49, 2  ;;  %v4643_v5 = vrot.slane %v3925_v29, 2  ;;  %v11756_v24 = vsel %vm1109_vm1, %v4635_v41, %v11743_v30 }
 0x3b4   : > { %v11748_v18 = vsel %vm1109_vm1, %v11701_v53, %v4633_v39  ;;  %13304 = vst [vmem:[#allocation60_spill] sm:$0xff] %v11756_v24  ;;  %v11760_v11 = vsel %vm1109_vm1, %v11743_v30, %v4638_v27  ;;  %v11775_v27 = vrot.slane %v3927_v55, 2  ;;  %v4648_v42 = vrot.slane %v3928_v31, 2 }
 0x3b5   : > { %13302 = vst [vmem:[#allocation58_spill] sm:$0xff] %v11748_v18  ;;  %13303 = vst [vmem:[#allocation59_spill] sm:$0xff] %v11750_v44  ;;  %8558 = vmatmul.mubr.bf16.gmra.mrb[24].mxu1 %v4137_v63  ;;  %v3929_v22 = vld [vmem:[#allocation3 + $0x168] sm:$0xff]  ;;  %v11767_v29 = vsel %vm1109_vm1, %v4640_v15, %v11750_v44  ;;  %v11771_v39 = vsel %vm1109_vm1, %v11750_v44, %v4643_v5  ;;  %v11783_v18 = vld [vmem:[#allocation2] sm:$0xff] }
 0x3b6   : > { %13305 = vst [vmem:[#allocation61_spill] sm:$0xff] %v11760_v11  ;;  %8561 = vmatprep.mubr.bf16.mxu1 %v4138_v33  ;;  %v4087_v57 = vrot.slane %v3929_v22, 1  ;;  %13306 = vst [vmem:[#allocation62_spill] sm:$0xff] %v11767_v29  ;;  %v4650_v33 = vrot.slane %v3929_v22, 2  ;;  %v3932_v5 = vpack.c.bf16 %v11783_v18, %v11783_v18  ;;  %v11789_v44 = vsel %vm1109_vm1, %v4645_v52, %v11775_v27  ;;  %v11807_v52 = vld [vmem:[#allocation3 + $0x28] sm:$0xff]  ;;  %v12200_v29 = vld [vmem:[#allocation3 + $0x158] sm:$0xff] }
 0x3b7   : > { %13307 = vst [vmem:[#allocation63_spill] sm:$0xff] %v11771_v39  ;;  %v3930_v41 = vld [vmem:[#allocation3 + $0x170] sm:$0xff]  ;;  %v3931_v21 = vld [vmem:[#allocation3 + $0x178] sm:$0xff]  ;;  %13310 = vst [vmem:[#allocation66_spill] sm:$0xff] %v11783_v18  ;;  %v11793_v31 = vsel %vm1109_vm1, %v11775_v27, %v4648_v42 }
 0x3b8   : > { %v11777_v7 = vrot.slane %v3930_v41, 1  ;;  %v4090_v49 = vrot.slane %v3931_v21, 1  ;;  %v11779_v11 = vpack.c.bf16 %v3930_v41, %v3929_v22  ;;  %v11781_v15 = vrot.slane %v3930_v41, 2  ;;  %13311 = vst [vmem:[#allocation67_spill] sm:$0xff] %v11789_v44  ;;  %13312 = vst [vmem:[#allocation68_spill] sm:$0xff] %v11793_v31  ;;  %v11816_v42 = vld [vmem:[#allocation3 + $0x58] sm:$0xff] }
 0x3b9   : > { %v4653_v55 = vrot.slane %v3931_v21, 2  ;;  %13315 = vst [vmem:[#allocation71_spill] sm:$0xff] %v11807_v52  ;;  %v11822_v31 = vld [vmem:[#allocation3 + $0x88] sm:$0xff]  ;;  %13403 = vst [vmem:[#allocation120_spill] sm:$0xff] %v12200_v29  ;;  %v12208_v40 = vld [vmem:[#allocation3 + $0x170] sm:$0xff] }
 0x3ba   : > { %13308 = vst [vmem:[#allocation64_spill] sm:$0xff] %v11779_v11  ;;  %13309 = vst [vmem:[#allocation65_spill] sm:$0xff] %v11781_v15  ;;  %v11797_v22 = vsel %vm545_vm0, %v4087_v57, %v11777_v7  ;;  %v4091_v41 = vsel %vm545_vm0, %v11777_v7, %v4090_v49  ;;  %v11805_v39 = vsel %vm1109_vm1, %v4650_v33, %v11781_v15  ;;  %v11809_v11 = vld [vmem:[#allocation3 + $0x40] sm:$0xff]  ;;  %v11818_v49 = vld [vmem:[#allocation3 + $0x70] sm:$0xff]  ;;  %v5334_v33 = vrot.slane %v11807_v52, 1 }
 0x3bb   : > { %13313 = vst [vmem:[#allocation69_spill] sm:$0xff] %v11797_v22  ;;  %13314 = vst [vmem:[#allocation70_spill] sm:$0xff] %v11805_v39  ;;  %v4139_v21 = vpack.c.bf16 %v4091_v41, %v11797_v22  ;;  %v11814_v57 = vsel %vm1109_vm1, %v11781_v15, %v4653_v55  ;;  %v12959_v18 = vrot.slane %v11809_v11, 1  ;;  %v12961_v41 = vrot.slane %v11816_v42, 1  ;;  %v11828_v15 = vld [vmem:[#allocation3 + $0xa0] sm:$0xff]  ;;  %v11841_v52 = vld [vmem:[#allocation3 + $0xb8] sm:$0xff] }
 0x3bc   : > { %13316 = vst [vmem:[#allocation72_spill] sm:$0xff] %v11814_v57  ;;  %v11832_v44 = vsel %vm545_vm0, %v11376_v46, %v5334_v33  ;;  %v13320_v33 = vrot.slane %v11818_v49, 1  ;;  %v11861_v63 = vld [vmem:[#allocation3 + $0xe8] sm:$0xff]  ;;  %v13322_v14 = vrot.slane %v11822_v31, 1  ;;  %v6886_v39 = vrot.slane %v12147_v9, 2  ;;  %v12192_v57 = vld [vmem:[#allocation3 + $0x138] sm:$0xff] }
 0x3bd   : > { %8562 = vmatmul.mubr.bf16.gmra.mrb[28].mxu1 %v4139_v21  ;;  %13317 = vst [vmem:[#allocation73_spill] sm:$0xff] %v11832_v44  ;;  %v11838_v21 = vsel %vm545_vm0, %v11372_v1, %v12959_v18  ;;  %v11851_v46 = vsel %vm545_vm0, %v11410_v34, %v12961_v41  ;;  %v11859_v18 = vld [vmem:[#allocation3 + $0xd0] sm:$0xff]  ;;  %v12967_v41 = vrot.slane %v11828_v15, 1  ;;  %13401 = vst [vmem:[#allocation118_spill] sm:$0xff] %v12192_v57 }
 0x3be   : > { %8581 = vmatprep.mubr.bf16.mxu1 %v3932_v5  ;;  %13318 = vst [vmem:[#allocation74_spill] sm:$0xff] %v11838_v21  ;;  %13319 = vst [vmem:[#allocation75_spill] sm:$0xff] %v11851_v46  ;;  %v11857_v1 = vsel %vm545_vm0, %v11404_v32, %v13320_v33  ;;  %v11871_v34 = vsel %vm545_vm0, %v11451_v45, %v13322_v14  ;;  %v11874_v32 = vld [vmem:[#allocation3 + $0x100] sm:$0xff]  ;;  %v12968_v21 = vrot.slane %v11841_v52, 1  ;;  %v12970_v5 = vrot.slane %v11859_v18, 1  ;;  %v11887_v45 = vld [vmem:[#allocation3 + $0x118] sm:$0xff] }
 0x3bf   : > { %13321 = vst [vmem:[#allocation76_spill] sm:$0xff] %v11857_v1  ;;  %13323 = vst [vmem:[#allocation77_spill] sm:$0xff] %v11871_v34  ;;  %v11883_v55 = vsel %vm545_vm0, %v11445_v13, %v12967_v41  ;;  %v12969_v14 = vrot.slane %v11861_v63, 1  ;;  %v12972_v6 = vrot.slane %v11874_v32, 1  ;;  %v11898_v34 = vld [vmem:[#allocation3 + $0x130] sm:$0xff]  ;;  %v12145_v1 = vld [vmem:[#allocation3 + $0xa8] sm:$0xff] }
 0x3c0   : > { %13324 = vst [vmem:[#allocation78_spill] sm:$0xff] %v11883_v55  ;;  %v11895_v33 = vsel %vm545_vm0, %v11517_v36, %v12968_v21  ;;  %v11907_v41 = vsel %vm545_vm0, %v11506_v3, %v12970_v5  ;;  %v11915_v21 = vld [vmem:[#allocation3 + $0x148] sm:$0xff]  ;;  %v11932_v5 = vld [vmem:[#allocation3 + $0x178] sm:$0xff]  ;;  %v12976_v13 = vrot.slane %v11898_v34, 1  ;;  %v12143_v55 = vrot.slane %v9710_v56, 2  ;;  %13386 = vst [vmem:[#allocation105_spill] sm:$0xff] %v12145_v1 }
 0x3c1   : > { %13325 = vst [vmem:[#allocation79_spill] sm:$0xff] %v11895_v33  ;;  %13326 = vst [vmem:[#allocation80_spill] sm:$0xff] %v11907_v41  ;;  %v11913_v36 = vsel %vm545_vm0, %v11585_v48, %v12969_v14  ;;  %v11929_v48 = vsel %vm545_vm0, %v11574_v2, %v12972_v6  ;;  %v12975_v14 = vrot.slane %v11887_v45, 1  ;;  %v12977_v2 = vrot.slane %v11915_v21, 1  ;;  %v12140_v41 = vld [vmem:[#allocation3 + $0x28] sm:$0xff]  ;;  %v13390_v44 = vld [vmem:[#allocation46_spill] sm:$0xff] }
 0x3c2   : > { %13327 = vst [vmem:[#allocation81_spill] sm:$0xff] %v11913_v36  ;;  %13328 = vst [vmem:[#allocation82_spill] sm:$0xff] %v11929_v48  ;;  %v12978_v6 = vrot.slane %v11917_v59, 1  ;;  %v12979_v25 = vrot.slane %v11932_v5, 1  ;;  %v12134_v48 = vld [vmem:[#allocation3 + $0x90] sm:$0xff]  ;;  %v12136_v36 = vld [vmem:[#allocation3 + $0x98] sm:$0xff] }
 0x3c3   : > { %v11941_v3 = vsel %vm545_vm0, %v11657_v20, %v12975_v14  ;;  %v11960_v14 = vsel %vm545_vm0, %v11712_v8, %v12977_v2  ;;  %v11978_v2 = vld [vmem:[#allocation3 + $0x180] sm:$0xff]  ;;  %v12986_v20 = vrot.slane %v11822_v31, 2  ;;  %13384 = vst [vmem:[#allocation103_spill] sm:$0xff] %v12134_v48  ;;  %13385 = vst [vmem:[#allocation104_spill] sm:$0xff] %v12136_v36  ;;  %v12151_v46 = vld [vmem:[#allocation3 + $0xc8] sm:$0xff] }
 0x3c4   : > { %13329 = vst [vmem:[#allocation83_spill] sm:$0xff] %v11941_v3  ;;  %13331 = vst [vmem:[#allocation85_spill] sm:$0xff] %v11960_v14  ;;  %v11966_v37 = vsel %vm545_vm0, %v11703_v4, %v12978_v6  ;;  %v11976_v8 = vsel %vm545_vm0, %v11777_v7, %v12979_v25  ;;  %v11983_v6 = vld [vmem:[#allocation3 + $0x188] sm:$0xff]  ;;  %v9627_v25 = vld [vmem:[#allocation9 + $0xa0] sm:$0xff]   ;;  %v5792_v35 = vrot.slane %v11978_v2, 2  ;;  %v13338_v7 = vrot.slane %v11828_v15, 2 }
 0x3c5   : > { %8582 = vmatmul.mubr.bf16.vlgmr.msra.gmra.mrb[0].mxu1 %v11385_v50  ;;  %13332 = vst [vmem:[#allocation86_spill] sm:$0xff] %v11966_v37  ;;  %13333 = vst [vmem:[#allocation87_spill] sm:$0xff] %v11976_v8  ;;  %v5793_v22 = vrot.slane %v11983_v6, 2  ;;  %v12132_v3 = vld [vmem:[#allocation3 + $0x80] sm:$0xff]  ;;  %v12176_v56 = vld [vmem:[#allocation3 + $0x110] sm:$0xff]  ;;  %v6885_v50 = vrot.slane %v12145_v1, 2 }
 0x3c6   : > { %8585 = vmatprep.mubr.bf16.mxu1 %v11374_v51  ;;  %8614 = vmatpush3.bf16.msra.mxu1 %v11577_v28  ;;  %v11951_v28 = vsel %vm545_vm0, %v11648_v54, %v12976_v13  ;;  %v9626_v54 = vld [vmem:[#allocation9 + $0x98] sm:$0xff]   ;;  %13334 = vst [vmem:[#allocation88_spill] sm:$0xff] %v11978_v2  ;;  %13335 = vst [vmem:[#allocation89_spill] sm:$0xff] %v11983_v6  ;;  %v12010_v8 = vsel %vm1109_vm1, %v11501_v43, %v13338_v7  ;;  %v13340_v13 = vrot.slane %v11841_v52, 2  ;;  %v13347_v43 = vld [vmem:[#allocation43_spill] sm:$0xff] }
 0x3c7   : > { %8615 = vmatprep.subr.bf16.mxu1 %v9624_v23  ;;  %13330 = vst [vmem:[#allocation84_spill] sm:$0xff] %v11951_v28  ;;  %13339 = vst [vmem:[#allocation92_spill] sm:$0xff] %v12010_v8  ;;  %v13344_v8 = vld [vmem:[#allocation34_spill] sm:$0xff]  ;;  %v13360_v28 = vld [vmem:[#allocation17_spill] sm:$0xff]  ;;  %v6906_v24 = vrot.slane %v12176_v56, 2  ;;  %v6926_v7 = vrot.slane %v12208_v40, 2 }
 0x3c8   : > { %13383 = vst [vmem:[#allocation102_spill] sm:$0xff] %v12132_v3  ;;  %13389 = vst [vmem:[#allocation108_spill] sm:$0xff] %v12151_v46  ;;  %v12184_v51 = vld [vmem:[#allocation3 + $0x128] sm:$0xff] }
 0x3c9   : > { %13397 = vst [vmem:[#allocation114_spill] sm:$0xff] %v12176_v56  ;;  %13399 = vst [vmem:[#allocation116_spill] sm:$0xff] %v12184_v51  ;;  %v13406_v56 = vld [vmem:[#allocation53_spill] sm:$0xff] }
 0x3ca   : > { %8616 = vmatpush3.bf16.msra.mxu1 %v9624_v23  ;;  %v12983_v23 = vrot.slane %v11818_v49, 2  ;;  %13405 = vst [vmem:[#allocation122_spill] sm:$0xff] %v12208_v40 }
 0x3cb   : > { %8617 = vmatprep.subr.bf16.mxu1 %v9625_v61 }
 0x3cc   : > { %v11995_v4 = vsel %vm1109_vm1, %v11436_v47, %v12983_v23  ;;  %v9628_v23 = vld [vmem:[#allocation9 + $0xa8] sm:$0xff]   ;;  %v13348_v47 = vrot.slane %v11861_v63, 2 }
 0x3cd   : > { %8586 = vmatmul.mubr.bf16.gmra.mrb[4].mxu1 %v11412_v38  ;;  %13336 = vst [vmem:[#allocation90_spill] sm:$0xff] %v11995_v4  ;;  %v13341_v4 = vld [vmem:[#allocation26_spill] sm:$0xff] }
 0x3ce   : > { %8589 = vmatprep.mubr.bf16.mxu1 %v11408_v16  ;;  %8618 = vmatpush3.bf16.msra.mxu1 %v9625_v61  ;;  %v12004_v61 = vsel %vm1109_vm1, %v11492_v62, %v12986_v20  ;;  %v12020_v37 = vsel %vm1109_vm1, %v13341_v4, %v13340_v13  ;;  %v12992_v62 = vrot.slane %v11859_v18, 2  ;;  %v13343_v20 = vld [vmem:[#allocation30_spill] sm:$0xff] }
 0x3cf   : > { %8619 = vmatprep.subr.bf16.mxu1 %v9626_v54  ;;  %13337 = vst [vmem:[#allocation91_spill] sm:$0xff] %v12004_v61  ;;  %13342 = vst [vmem:[#allocation26_spill] sm:$0xff] %v12020_v37  ;;  %v12037_v37 = vld [vmem:[#allocation3 + $0x190] sm:$0xff]  ;;  %v13349_v61 = vld [vmem:[#allocation31_spill] sm:$0xff] }
 0x3d0   : > { %v12032_v13 = vsel %vm1109_vm1, %v13344_v8, %v12992_v62  ;;  %13346 = vst [vmem:[#allocation34_spill] sm:$0xff] %v12037_v37  ;;  %v12045_v14 = vsel %vm1109_vm1, %v13349_v61, %v13348_v47  ;;  %v13351_v8 = vrot.slane %v11874_v32, 2  ;;  %v13355_v4 = vld [vmem:[#allocation14_spill] sm:$0xff]  ;;  %v13364_v47 = vrot.slane %v11917_v59, 2 }
 0x3d1   : > { %13345 = vst [vmem:[#allocation30_spill] sm:$0xff] %v12032_v13  ;;  %13350 = vst [vmem:[#allocation43_spill] sm:$0xff] %v12045_v14  ;;  %v13362_v13 = vld [vmem:[#allocation59_spill] sm:$0xff] }
 0x3d2   : > { %8620 = vmatpush3.bf16.msra.mxu1 %v9626_v54  ;;  %v12051_v62 = vsel %vm1109_vm1, %v11697_v10, %v13351_v8  ;;  %v13353_v54 = vrot.slane %v11887_v45, 2  ;;  %v13358_v10 = vrot.slane %v11898_v34, 2 }
 0x3d3   : > { %8621 = vmatprep.subr.bf16.mxu1 %v9627_v25  ;;  %13352 = vst [vmem:[#allocation31_spill] sm:$0xff] %v12051_v62  ;;  %v5794_v62 = vsel %vm1109_vm1, %v5792_v35, %v5793_v22  ;;  %v13371_v35 = vld [vmem:[#allocation18_spill] sm:$0xff] }
 0x3d4   : > { %v12057_v26 = vsel %vm1109_vm1, %v11701_v53, %v13353_v54  ;;  %v12070_v8 = vsel %vm1109_vm1, %v11743_v30, %v13358_v10  ;;  %v13361_v54 = vrot.slane %v11915_v21, 2  ;;  %v13002_v30 = vrot.slane %v11932_v5, 2  ;;  %v9629_v10 = vld [vmem:[#allocation9 + $0xb0] sm:$0xff]  }
 0x3d5   : > { %13354 = vst [vmem:[#allocation93_spill] sm:$0xff] %v12057_v26  ;;  %8590 = vmatmul.mubr.bf16.gmra.mrb[8].mxu1 %v13355_v4  ;;  %13359 = vst [vmem:[#allocation94_spill] sm:$0xff] %v12070_v8  ;;  %v12085_v26 = vsel %vm1109_vm1, %v11775_v27, %v13364_v47  ;;  %v9630_v8 = vld [vmem:[#allocation9 + $0xb8] sm:$0xff]   ;;  %v12178_v4 = vld [vmem:[#allocation3 + $0x120] sm:$0xff] }
 0x3d6   : > { %8593 = vmatprep.mubr.bf16.mxu1 %v13360_v28  ;;  %8622 = vmatpush3.bf16.msra.mxu1 %v9627_v25  ;;  %v12079_v61 = vsel %vm1109_vm1, %v13362_v13, %v13361_v54  ;;  %13365 = vst [vmem:[#allocation95_spill] sm:$0xff] %v12085_v26  ;;  %v5795_v13 = vrot.slane %v12037_v37, 2  ;;  %v13367_v54 = vld [vmem:[#allocation65_spill] sm:$0xff]  ;;  %v13370_v26 = vld [vmem:[#allocation23_spill] sm:$0xff]  ;;  %13398 = vst [vmem:[#allocation115_spill] sm:$0xff] %v12178_v4 }
 0x3d7   : > { %13363 = vst [vmem:[#allocation59_spill] sm:$0xff] %v12079_v61  ;;  %8623 = vmatprep.subr.bf16.mxu1 %v9628_v23  ;;  %v12098_v27 = vsel %vm1109_vm1, %v13367_v54, %v13002_v30  ;;  %v12107_v61 = vld [vmem:[#allocation9 + $0xc0] sm:$0xff]   ;;  %v13372_v54 = vld [vmem:[#allocation28_spill] sm:$0xff]  ;;  %v13373_v47 = vld [vmem:[#allocation29_spill] sm:$0xff] }
 0x3d8   : > { %13368 = vst [vmem:[#allocation65_spill] sm:$0xff] %v12098_v27  ;;  %v5796_v14 = vsel %vm1109_vm1, %v5793_v22, %v5795_v13  ;;  %v13374_v22 = vld [vmem:[#allocation66_spill] sm:$0xff]  ;;  %v13377_v13 = vld [vmem:[#allocation35_spill] sm:$0xff]  ;;  %v12125_v27 = vld [vmem:[#allocation3 + $0x68] sm:$0xff] }
 0x3d9   : > { %v12103_v25 = vpack.c.bf16 %v5796_v14, %v5794_v62  ;;  %v4575_v14 = vrot.slane %v13374_v22, 2  ;;  %v12115_v62 = vld [vmem:[#allocation3 + $0x38] sm:$0xff]  ;;  %13381 = vst [vmem:[#allocation100_spill] sm:$0xff] %v12125_v27  ;;  %v13395_v28 = vld [vmem:[#allocation45_spill] sm:$0xff]  ;;  %v6871_v38 = vrot.slane %v12125_v27, 2 }
 0x3da   : > { %8624 = vmatpush3.bf16.msra.mxu1 %v9628_v23  ;;  %v12113_v23 = vld [vmem:[#allocation3 + $0x30] sm:$0xff]  ;;  %13376 = vst [vmem:[#allocation97_spill] sm:$0xff] %v12115_v62  ;;  %v12127_v37 = vld [vmem:[#allocation3 + $0x18] sm:$0xff] }
 0x3db   : > { %13369 = vst [vmem:[#allocation96_spill] sm:$0xff] %v12103_v25  ;;  %8625 = vmatprep.subr.bf16.mxu1 %v9629_v10  ;;  %13375 = vst [vmem:[#allocation66_spill] sm:$0xff] %v12113_v23  ;;  %v4579_v30 = vsel %vm1109_vm1, %v4575_v14, %v13377_v13  ;;  %v12121_v25 = vld [vmem:[#allocation3 + $0x50] sm:$0xff]  ;;  %v12130_v22 = vld [vmem:[#allocation3 + $0x78] sm:$0xff] }
 0x3dc   : > { %13379 = vst [vmem:[#allocation98_spill] sm:$0xff] %v12121_v25  ;;  %13382 = vst [vmem:[#allocation101_spill] sm:$0xff] %v12130_v22  ;;  %v9708_v13 = vld [vmem:[#allocation3 + $0x20] sm:$0xff]  ;;  %v12154_v6 = vpack.c.bf16 %v4579_v30, %v4575_v14  ;;  %v6860_v30 = vrot.slane %v12113_v23, 2  ;;  %v6861_v14 = vrot.slane %v12115_v62, 2  ;;  %v6866_v33 = vrot.slane %v12121_v25, 2 }
 0x3dd   : > { %8594 = vmatmul.mubr.bf16.gmra.mrb[12].mxu1 %v13370_v26  ;;  %v12138_v58 = vrot.slane %v9708_v13, 2  ;;  %v12156_v13 = vld [vmem:[#allocation3 + $0x40] sm:$0xff]  ;;  %v12167_v26 = vld [vmem:[#allocation3 + $0xf8] sm:$0xff]  ;;  %v6876_v23 = vrot.slane %v12132_v3, 2  ;;  %v12186_v62 = vld [vmem:[#allocation3 + $0x150] sm:$0xff]  ;;  %v6880_v25 = vrot.slane %v12134_v48, 2 }
 0x3de   : > { %8597 = vmatprep.mubr.bf16.mxu1 %v13371_v35  ;;  %8626 = vmatpush3.bf16.msra.mxu1 %v9629_v10  ;;  %v12119_v10 = vld [vmem:[#allocation3 + $0x48] sm:$0xff]  ;;  %v12165_v35 = vld [vmem:[#allocation3 + $0xf0] sm:$0xff]  ;;  %13394 = vst [vmem:[#allocation112_spill] sm:$0xff] %v12167_v26  ;;  %13400 = vst [vmem:[#allocation117_spill] sm:$0xff] %v12186_v62  ;;  %v6891_v3 = vrot.slane %v12151_v46, 2  ;;  %v6901_v9 = vrot.slane %v12167_v26, 2 }
 0x3df   : > { %8627 = vmatprep.subr.bf16.mxu1 %v9630_v8  ;;  %13378 = vst [vmem:[#allocation35_spill] sm:$0xff] %v12119_v10  ;;  %13393 = vst [vmem:[#allocation111_spill] sm:$0xff] %v12165_v35  ;;  %v6865_v2 = vrot.slane %v12119_v10, 2  ;;  %v6881_v10 = vrot.slane %v12136_v36, 2  ;;  %v12202_v48 = vld [vmem:[#allocation3 + $0x168] sm:$0xff]  ;;  %v6900_v1 = vrot.slane %v12165_v35, 2 }
 0x3e0   : > { %13404 = vst [vmem:[#allocation121_spill] sm:$0xff] %v12202_v48  ;;  %v6910_v46 = vrot.slane %v12178_v4, 2  ;;  %v6920_v0 = vrot.slane %v12186_v62, 2  ;;  %v6921_v35 = vrot.slane %v12200_v29, 2  ;;  %v6925_v26 = vrot.slane %v12202_v48, 2  ;;  %v13409_v48 = vld [vmem:[#allocation51_spill] sm:$0xff] }
 0x3e1   : > { %v13407_v4 = vrot.slane %v11809_v11, 2  ;;  %v13408_v62 = vrot.slane %v11816_v42, 2  ;;  %v12259_v40 = vsel %vm1109_vm1, %v6880_v25, %v6881_v10 }
 0x3e2   : > { %8628 = vmatpush3.bf16.msra.mxu1 %v9630_v8  ;;  %v12123_v8 = vld [vmem:[#allocation3 + $0x60] sm:$0xff]  ;;  %13413 = vst [vmem:[#allocation51_spill] sm:$0xff] %v12259_v40  ;;  %v13594_v40 = vrot.slane %v11816_v42, 1 }
 0x3e3   : > { %8661 = vmatprep.subr.bf16.mxu1 %v12107_v61  ;;  %13380 = vst [vmem:[#allocation99_spill] sm:$0xff] %v12123_v8  ;;  %v6870_v16 = vrot.slane %v12123_v8, 2  ;;  %v12194_v8 = vld [vmem:[#allocation3 + $0x140] sm:$0xff]  ;;  %v12233_v29 = vsel %vm1109_vm1, %v6866_v33, %v13408_v62 }
 0x3e4   : > { %13402 = vst [vmem:[#allocation119_spill] sm:$0xff] %v12194_v8 }
 0x3e5   : > { %8598 = vmatmul.mubr.bf16.gmra.mrb[16].mxu1 %v13372_v54  ;;  %v12163_v54 = vld [vmem:[#allocation3 + $0xe0] sm:$0xff] }
 0x3e6   : > { %8601 = vmatprep.mubr.bf16.mxu1 %v13373_v47  ;;  %v12161_v47 = vld [vmem:[#allocation3 + $0xd8] sm:$0xff]  ;;  %13392 = vst [vmem:[#allocation110_spill] sm:$0xff] %v12163_v54  ;;  %v6896_v53 = vrot.slane %v12163_v54, 2  ;;  %v6915_v54 = vrot.slane %v12192_v57, 2  ;;  %v12241_v57 = vsel %vm1109_vm1, %v6870_v16, %v6871_v38 }
 0x3e7   : > { %13391 = vst [vmem:[#allocation109_spill] sm:$0xff] %v12161_v47  ;;  %v6895_v27 = vrot.slane %v12161_v47, 2  ;;  %v6911_v47 = vrot.slane %v12184_v51, 2  ;;  %v12225_v51 = vsel %vm1109_vm1, %v6861_v14, %v13407_v4  ;;  %13410 = vst [vmem:[#allocation53_spill] sm:$0xff] %v12241_v57  ;;  %v13411_v4 = vrot.slane %v11818_v49, 2 }
 0x3ed   : > { %8602 = vmatmul.mubr.bf16.gmra.mrb[20].mxu1 %v13390_v44  ;;  %v12174_v44 = vld [vmem:[#allocation3 + $0x108] sm:$0xff] }
 0x3ee   : > { %8605 = vmatprep.mubr.bf16.mxu1 %v13395_v28  ;;  %13396 = vst [vmem:[#allocation113_spill] sm:$0xff] %v12174_v44  ;;  %v6875_v28 = vrot.slane %v12130_v22, 2  ;;  %v6890_v22 = vrot.slane %v12149_v12, 2  ;;  %v6905_v36 = vrot.slane %v12174_v44, 2  ;;  %v6916_v12 = vrot.slane %v12194_v8, 2 }
 0x3ef   : > { %v12218_v44 = vsel %vm1109_vm1, %v6860_v30, %v6861_v14  ;;  %v12228_v8 = vsel %vm1109_vm1, %v6865_v2, %v6866_v33  ;;  %v12246_v2 = vsel %vm1109_vm1, %v6871_v38, %v13411_v4  ;;  %v13412_v14 = vrot.slane %v11822_v31, 2 }
 0x3f0   : > { %v12251_v62 = vsel %vm1109_vm1, %v6875_v28, %v6876_v23  ;;  %v13414_v38 = vrot.slane %v11828_v15, 2  ;;  %v12269_v33 = vsel %vm1109_vm1, %v6885_v50, %v6886_v39  ;;  %v13416_v28 = vrot.slane %v11841_v52, 2 }
 0x3f1   : > { %v12256_v30 = vsel %vm1109_vm1, %v6876_v23, %v13412_v14  ;;  %13415 = vst [vmem:[#allocation123_spill] sm:$0xff] %v12269_v33  ;;  %v12281_v14 = vsel %vm1109_vm1, %v6890_v22, %v6891_v3  ;;  %v12299_v23 = vsel %vm1109_vm1, %v6900_v1, %v6901_v9  ;;  %v12309_v50 = vsel %vm1109_vm1, %v6905_v36, %v6906_v24  ;;  %v13433_v36 = vld [vmem:[#allocation64_spill] sm:$0xff] }
 0x3f2   : > { %v12266_v4 = vsel %vm1109_vm1, %v6881_v10, %v13414_v38  ;;  %v12274_v57 = vsel %vm1109_vm1, %v6886_v39, %v13416_v28  ;;  %13418 = vst [vmem:[#allocation125_spill] sm:$0xff] %v12281_v14  ;;  %v13419_v10 = vrot.slane %v11859_v18, 2  ;;  %v12291_v39 = vsel %vm1109_vm1, %v6895_v27, %v6896_v53  ;;  %13424 = vst [vmem:[#allocation129_spill] sm:$0xff] %v12299_v23  ;;  %v13479_v23 = vld [vmem:[#allocation42_spill] sm:$0xff] }
 0x3f3   : > { %13417 = vst [vmem:[#allocation124_spill] sm:$0xff] %v12274_v57  ;;  %13421 = vst [vmem:[#allocation127_spill] sm:$0xff] %v12291_v39  ;;  %v13422_v28 = vrot.slane %v11861_v63, 2  ;;  %v13428_v27 = vrot.slane %v11887_v45, 2  ;;  %v13435_v1 = vrot.slane %v11915_v21, 2  ;;  %v13441_v22 = vrot.slane %v11932_v5, 2 }
 0x3f4   : > { %v12286_v38 = vsel %vm1109_vm1, %v6891_v3, %v13419_v10  ;;  %v13425_v3 = vrot.slane %v11874_v32, 2  ;;  %13427 = vst [vmem:[#allocation131_spill] sm:$0xff] %v12309_v50  ;;  %v13472_v50 = vld [vmem:[#allocation67_spill] sm:$0xff]  ;;  %v13501_v39 = vld [vmem:[#allocation37_spill] sm:$0xff]  ;;  %v13531_v14 = vld [vmem:[#allocation86_spill] sm:$0xff] }
 0x3f5   : > { %8606 = vmatmul.mubr.bf16.gmra.mrb[24].mxu1 %v13406_v56  ;;  %13420 = vst [vmem:[#allocation126_spill] sm:$0xff] %v12286_v38  ;;  %v12296_v25 = vsel %vm1109_vm1, %v6896_v53, %v13422_v28  ;;  %v12314_v16 = vsel %vm1109_vm1, %v6906_v24, %v13428_v27  ;;  %v12321_v28 = vsel %vm1109_vm1, %v6910_v46, %v6911_v47  ;;  %v13532_v38 = vld [vmem:[#allocation55_spill] sm:$0xff] }
 0x3f6   : > { %8609 = vmatprep.mubr.bf16.mxu1 %v13409_v48  ;;  %13423 = vst [vmem:[#allocation128_spill] sm:$0xff] %v12296_v25  ;;  %v12306_v10 = vsel %vm1109_vm1, %v6901_v9, %v13425_v3  ;;  %13429 = vst [vmem:[#allocation132_spill] sm:$0xff] %v12314_v16  ;;  %v13431_v9 = vrot.slane %v11898_v34, 2  ;;  %v12332_v27 = vsel %vm1109_vm1, %v6915_v54, %v6916_v12  ;;  %v13475_v16 = vld [vmem:[#allocation70_spill] sm:$0xff] }
 0x3f7   : > { %13426 = vst [vmem:[#allocation130_spill] sm:$0xff] %v12306_v10  ;;  %13430 = vst [vmem:[#allocation133_spill] sm:$0xff] %v12321_v28  ;;  %v12337_v53 = vsel %vm1109_vm1, %v6916_v12, %v13435_v1  ;;  %v12340_v46 = vsel %vm1109_vm1, %v6920_v0, %v6921_v35  ;;  %v12351_v54 = vsel %vm1109_vm1, %v6925_v26, %v6926_v7  ;;  %v9712_v0 = vld [vmem:[#allocation3 + $0x30] sm:$0xff]  ;;  %v13444_v26 = vrot.slane %v12140_v41, 2  ;;  %v9714_v41 = vld [vmem:[#allocation3 + $0x58] sm:$0xff] }
 0x3f8   : > { %v12326_v3 = vsel %vm1109_vm1, %v6911_v47, %v13431_v9  ;;  %13434 = vst [vmem:[#allocation64_spill] sm:$0xff] %v12332_v27  ;;  %13436 = vst [vmem:[#allocation135_spill] sm:$0xff] %v12337_v53  ;;  %v13438_v9 = vrot.slane %v11917_v59, 2  ;;  %v12356_v12 = vsel %vm1109_vm1, %v6926_v7, %v13441_v22  ;;  %v4585_v1 = vrot.slane %v9712_v0, 2  ;;  %v13462_v27 = vld [vmem:[#allocation58_spill] sm:$0xff]  ;;  %v13465_v53 = vld [vmem:[#allocation61_spill] sm:$0xff] }
 0x3f9   : > { %13432 = vst [vmem:[#allocation134_spill] sm:$0xff] %v12326_v3  ;;  %13437 = vst [vmem:[#allocation136_spill] sm:$0xff] %v12340_v46  ;;  %v4584_v7 = vsel %vm1109_vm1, %v12138_v58, %v13444_v26  ;;  %v13445_v0 = vrot.slane %v12156_v13, 2  ;;  %v4593_v46 = vrot.slane %v9714_v41, 2  ;;  %v9633_v13 = vld [vmem:[#allocation9 + $0xd0] sm:$0xff]   ;;  %v9636_v41 = vld [vmem:[#allocation9 + $0xe8] sm:$0xff]  }
 0x3fa   : > { %v12348_v24 = vsel %vm1109_vm1, %v6921_v35, %v13438_v9  ;;  %13440 = vst [vmem:[#allocation138_spill] sm:$0xff] %v12351_v54  ;;  %13442 = vst [vmem:[#allocation139_spill] sm:$0xff] %v12356_v12  ;;  %v13443_v35 = vrot.slane %v12127_v37, 2  ;;  %v12374_v22 = vsel %vm1109_vm1, %v4585_v1, %v12143_v55  ;;  %v9632_v37 = vld [vmem:[#allocation9 + $0xc8] sm:$0xff]   ;;  %v9713_v54 = vld [vmem:[#allocation3 + $0x50] sm:$0xff] }
 0x3fb   : > { %13439 = vst [vmem:[#allocation137_spill] sm:$0xff] %v12348_v24  ;;  %v4589_v47 = vsel %vm1109_vm1, %v12143_v55, %v13445_v0  ;;  %v12382_v12 = vrot.slane %v9713_v54, 2  ;;  %v9715_v1 = vld [vmem:[#allocation3 + $0x48] sm:$0xff]  ;;  %v13469_v28 = vld [vmem:[#allocation62_spill] sm:$0xff]  ;;  %v13471_v3 = vld [vmem:[#allocation68_spill] sm:$0xff] }
 0x3fc   : > { %v12366_v9 = vsel %vm1109_vm1, %v13443_v35, %v12138_v58  ;;  %v4689_v35 = vpack.c.bf16 %v4589_v47, %v12374_v22  ;;  %v4590_v26 = vrot.slane %v9715_v1, 2  ;;  %v13448_v1 = vld [vmem:[#allocation20_spill] sm:$0xff] }
 0x3fd   : > { %8610 = vmatmul.mubr.bf16.gmra.mrb[28].mxu1 %v13433_v36  ;;  %v4594_v47 = vsel %vm1109_vm1, %v12382_v12, %v4593_v46  ;;  %v13450_v46 = vld [vmem:[#allocation24_spill] sm:$0xff] }
 0x3fe   : > { %8629 = vmatprep.mubr.bf16.mxu1 %v12154_v6  ;;  %v4688_v6 = vpack.c.bf16 %v4584_v7, %v12366_v9  ;;  %v12387_v0 = vsel %vm1109_vm1, %v4590_v26, %v12382_v12  ;;  %v9634_v7 = vld [vmem:[#allocation9 + $0xd8] sm:$0xff]   ;;  %v13449_v26 = vpack.c.bf16 %v13448_v1, %v11515_v19  ;;  %v9639_v1 = vld [vmem:[#allocation9 + $0x100] sm:$0xff]   ;;  %v13500_v10 = vld [vmem:[#allocation76_spill] sm:$0xff] }
 0x3ff   : > { %v4690_v54 = vpack.c.bf16 %v4594_v47, %v12387_v0  ;;  %v9637_v47 = vld [vmem:[#allocation9 + $0xf0] sm:$0xff]   ;;  %v13502_v25 = vpack.c.bf16 %v13500_v10, %v13501_v39  ;;  %v9654_v39 = vld [vmem:[#allocation9 + $0x178] sm:$0xff]  }
 0x400   : > { %v13512_v10 = vld [vmem:[#allocation80_spill] sm:$0xff] }
 0x405   : > { %8630 = vmatmul.mubr.bf16.vlgmr.msra.gmra.mrb[0].mxu1 %v4688_v6  ;;  %v13446_v6 = vld [vmem:[#allocation21_spill] sm:$0xff] }
 0x406   : > { %8633 = vmatprep.mubr.bf16.mxu1 %v4689_v35  ;;  %8662 = vmatpush3.bf16.msra.mxu1 %v12107_v61  ;;  %v13447_v61 = vpack.c.bf16 %v13446_v6, %v11459_v60  ;;  %v9635_v35 = vld [vmem:[#allocation9 + $0xe0] sm:$0xff]  }
 0x407   : > { %8663 = vmatprep.subr.bf16.mxu1 %v9632_v37 }
 0x40a   : > { %8664 = vmatpush3.bf16.msra.mxu1 %v9632_v37  ;;  %v13451_v37 = vpack.c.bf16 %v13450_v46, %v11548_v17 }
 0x40b   : > { %8665 = vmatprep.subr.bf16.mxu1 %v9633_v13 }
 0x40d   : > { %8634 = vmatmul.mubr.bf16.gmra.mrb[4].mxu1 %v4690_v54  ;;  %v9638_v54 = vld [vmem:[#allocation9 + $0xf8] sm:$0xff]  }
 0x40e   : > { %8637 = vmatprep.mubr.bf16.mxu1 %v13447_v61  ;;  %8666 = vmatpush3.bf16.msra.mxu1 %v9633_v13  ;;  %v13452_v13 = vld [vmem:[#allocation33_spill] sm:$0xff] }
 0x40f   : > { %8667 = vmatprep.subr.bf16.mxu1 %v9634_v7  ;;  %v13453_v6 = vpack.c.bf16 %v13452_v13, %v13343_v20  ;;  %v13463_v13 = vld [vmem:[#allocation56_spill] sm:$0xff] }
 0x412   : > { %8668 = vmatpush3.bf16.msra.mxu1 %v9634_v7  ;;  %v13454_v7 = vld [vmem:[#allocation44_spill] sm:$0xff] }
 0x413   : > { %8669 = vmatprep.subr.bf16.mxu1 %v9635_v35  ;;  %v13455_v61 = vpack.c.bf16 %v13454_v7, %v13347_v43  ;;  %v13466_v7 = vld [vmem:[#allocation60_spill] sm:$0xff] }
 0x415   : > { %8638 = vmatmul.mubr.bf16.gmra.mrb[8].mxu1 %v13449_v26  ;;  %v13456_v26 = vld [vmem:[#allocation50_spill] sm:$0xff] }
 0x416   : > { %8641 = vmatprep.mubr.bf16.mxu1 %v13451_v37  ;;  %8670 = vmatpush3.bf16.msra.mxu1 %v9635_v35  ;;  %v13457_v35 = vld [vmem:[#allocation47_spill] sm:$0xff]  ;;  %v13460_v37 = vld [vmem:[#allocation52_spill] sm:$0xff] }
 0x417   : > { %8671 = vmatprep.subr.bf16.mxu1 %v9636_v41  ;;  %v13458_v46 = vpack.c.bf16 %v13456_v26, %v13457_v35  ;;  %v13473_v26 = vpack.c.bf16 %v13471_v3, %v13472_v50  ;;  %v13481_v3 = vld [vmem:[#allocation14_spill] sm:$0xff] }
 0x41a   : > { %8672 = vmatpush3.bf16.msra.mxu1 %v9636_v41  ;;  %v13459_v41 = vld [vmem:[#allocation54_spill] sm:$0xff] }
 0x41b   : > { %8673 = vmatprep.subr.bf16.mxu1 %v9637_v47  ;;  %v13461_v24 = vpack.c.bf16 %v13459_v41, %v13460_v37 }
 0x41d   : > { %8642 = vmatmul.mubr.bf16.gmra.mrb[12].mxu1 %v13453_v6  ;;  %v13464_v6 = vpack.c.bf16 %v13462_v27, %v13463_v13  ;;  %v9640_v27 = vld [vmem:[#allocation9 + $0x108] sm:$0xff]  }
 0x41e   : > { %8645 = vmatprep.mubr.bf16.mxu1 %v13455_v61  ;;  %8674 = vmatpush3.bf16.msra.mxu1 %v9637_v47  ;;  %v13467_v61 = vpack.c.bf16 %v13465_v53, %v13466_v7  ;;  %v13468_v47 = vld [vmem:[#allocation63_spill] sm:$0xff]  ;;  %v9641_v53 = vld [vmem:[#allocation9 + $0x110] sm:$0xff]  }
 0x41f   : > { %8675 = vmatprep.subr.bf16.mxu1 %v9638_v54 }
 0x422   : > { %8676 = vmatpush3.bf16.msra.mxu1 %v9638_v54  ;;  %v13470_v54 = vpack.c.bf16 %v13468_v47, %v13469_v28  ;;  %v13480_v47 = vld [vmem:[#allocation41_spill] sm:$0xff] }
 0x423   : > { %8709 = vmatprep.subr.bf16.mxu1 %v9639_v1 }
 0x425   : > { %8646 = vmatmul.mubr.bf16.gmra.mrb[16].mxu1 %v13458_v46  ;;  %v13474_v46 = vld [vmem:[#allocation72_spill] sm:$0xff] }
 0x426   : > { %8649 = vmatprep.mubr.bf16.mxu1 %v13461_v24  ;;  %v13476_v41 = vpack.c.bf16 %v13474_v46, %v13475_v16  ;;  %v13477_v24 = vld [vmem:[#allocation39_spill] sm:$0xff]  ;;  %v13482_v46 = vld [vmem:[#allocation17_spill] sm:$0xff] }
 0x42d   : > { %8650 = vmatmul.mubr.bf16.gmra.mrb[20].mxu1 %v13464_v6  ;;  %v13478_v6 = vld [vmem:[#allocation36_spill] sm:$0xff] }
 0x42e   : > { %8653 = vmatprep.mubr.bf16.mxu1 %v13467_v61  ;;  %v9642_v61 = vld [vmem:[#allocation9 + $0x118] sm:$0xff]  }
 0x435   : > { %8654 = vmatmul.mubr.bf16.gmra.mrb[24].mxu1 %v13470_v54  ;;  %v9643_v54 = vld [vmem:[#allocation9 + $0x120] sm:$0xff]  }
 0x436   : > { %8657 = vmatprep.mubr.bf16.mxu1 %v13473_v26  ;;  %v9644_v26 = vld [vmem:[#allocation9 + $0x128] sm:$0xff]  }
 0x43d   : > { %8658 = vmatmul.mubr.bf16.gmra.mrb[28].mxu1 %v13476_v41  ;;  %v13483_v41 = vld [vmem:[#allocation23_spill] sm:$0xff] }
 0x43e   : > { %8677 = vmatprep.mubr.bf16.mxu1 %v13477_v24  ;;  %v13484_v24 = vld [vmem:[#allocation18_spill] sm:$0xff] }
 0x445   : > { %8678 = vmatmul.mubr.bf16.vlgmr.msra.gmra.mrb[0].mxu1 %v13478_v6  ;;  %v9647_v6 = vld [vmem:[#allocation9 + $0x140] sm:$0xff]  }
 0x446   : > { %8681 = vmatprep.mubr.bf16.mxu1 %v13479_v23  ;;  %8710 = vmatpush3.bf16.msra.mxu1 %v9639_v1  ;;  %v9645_v23 = vld [vmem:[#allocation9 + $0x130] sm:$0xff]   ;;  %v9646_v1 = vld [vmem:[#allocation9 + $0x138] sm:$0xff]  }
 0x447   : > { %8711 = vmatprep.subr.bf16.mxu1 %v9640_v27 }
 0x44a   : > { %8712 = vmatpush3.bf16.msra.mxu1 %v9640_v27  ;;  %v13485_v27 = vld [vmem:[#allocation28_spill] sm:$0xff] }
 0x44b   : > { %8713 = vmatprep.subr.bf16.mxu1 %v9641_v53 }
 0x44d   : > { %8682 = vmatmul.mubr.bf16.gmra.mrb[4].mxu1 %v13480_v47  ;;  %v13488_v47 = vld [vmem:[#allocation45_spill] sm:$0xff] }
 0x44e   : > { %8685 = vmatprep.mubr.bf16.mxu1 %v13481_v3  ;;  %8714 = vmatpush3.bf16.msra.mxu1 %v9641_v53  ;;  %v13486_v53 = vld [vmem:[#allocation29_spill] sm:$0xff]  ;;  %v13489_v3 = vld [vmem:[#allocation88_spill] sm:$0xff] }
 0x44f   : > { %8715 = vmatprep.subr.bf16.mxu1 %v9642_v61 }
 0x452   : > { %8716 = vmatpush3.bf16.msra.mxu1 %v9642_v61  ;;  %v13487_v61 = vld [vmem:[#allocation46_spill] sm:$0xff] }
 0x453   : > { %8717 = vmatprep.subr.bf16.mxu1 %v9643_v54 }
 0x455   : > { %8686 = vmatmul.mubr.bf16.gmra.mrb[8].mxu1 %v13482_v46  ;;  %v13491_v46 = vld [vmem:[#allocation73_spill] sm:$0xff] }
 0x456   : > { %8689 = vmatprep.mubr.bf16.mxu1 %v13483_v41  ;;  %8718 = vmatpush3.bf16.msra.mxu1 %v9643_v54  ;;  %v13490_v54 = vld [vmem:[#allocation89_spill] sm:$0xff]  ;;  %v13492_v41 = vld [vmem:[#allocation40_spill] sm:$0xff] }
 0x457   : > { %8719 = vmatprep.subr.bf16.mxu1 %v9644_v26 }
 0x45a   : > { %8720 = vmatpush3.bf16.msra.mxu1 %v9644_v26  ;;  %v12445_v26 = vpack.c.bf16 %v13490_v54, %v13489_v3 }
 0x45b   : > { %8721 = vmatprep.subr.bf16.mxu1 %v9645_v23 }
 0x45d   : > { %8690 = vmatmul.mubr.bf16.gmra.mrb[12].mxu1 %v13484_v24  ;;  %v13494_v24 = vld [vmem:[#allocation74_spill] sm:$0xff] }
 0x45e   : > { %8693 = vmatprep.mubr.bf16.mxu1 %v13485_v27  ;;  %8722 = vmatpush3.bf16.msra.mxu1 %v9645_v23  ;;  %v13493_v23 = vpack.c.bf16 %v13491_v46, %v13492_v41  ;;  %v13495_v27 = vld [vmem:[#allocation38_spill] sm:$0xff]  ;;  %v13503_v46 = vld [vmem:[#allocation77_spill] sm:$0xff]  ;;  %v13504_v41 = vld [vmem:[#allocation16_spill] sm:$0xff] }
 0x45f   : > { %8723 = vmatprep.subr.bf16.mxu1 %v9646_v1 }
 0x462   : > { %8724 = vmatpush3.bf16.msra.mxu1 %v9646_v1  ;;  %v9648_v1 = vld [vmem:[#allocation9 + $0x148] sm:$0xff]  }
 0x463   : > { %8757 = vmatprep.subr.bf16.mxu1 %v9647_v6 }
 0x465   : > { %8694 = vmatmul.mubr.bf16.gmra.mrb[16].mxu1 %v13486_v53  ;;  %v13496_v53 = vpack.c.bf16 %v13494_v24, %v13495_v27  ;;  %v9651_v24 = vld [vmem:[#allocation9 + $0x160] sm:$0xff]   ;;  %v9652_v27 = vld [vmem:[#allocation9 + $0x168] sm:$0xff]  }
 0x466   : > { %8697 = vmatprep.mubr.bf16.mxu1 %v13487_v61  ;;  %v13498_v61 = vld [vmem:[#allocation15_spill] sm:$0xff] }
 0x46d   : > { %8698 = vmatmul.mubr.bf16.gmra.mrb[20].mxu1 %v13488_v47  ;;  %v9650_v47 = vld [vmem:[#allocation9 + $0x158] sm:$0xff]  }
 0x46e   : > { %8701 = vmatprep.mubr.bf16.mxu1 %v13406_v56  ;;  %v13497_v56 = vld [vmem:[#allocation75_spill] sm:$0xff] }
 0x475   : > { %8702 = vmatmul.mubr.bf16.gmra.mrb[24].mxu1 %v13409_v48  ;;  %v13499_v48 = vpack.c.bf16 %v13497_v56, %v13498_v61  ;;  %v13510_v61 = vld [vmem:[#allocation22_spill] sm:$0xff] }
 0x476   : > { %8705 = vmatprep.mubr.bf16.mxu1 %v13433_v36  ;;  %v9649_v36 = vld [vmem:[#allocation9 + $0x150] sm:$0xff]  }
 0x47d   : > { %8706 = vmatmul.mubr.bf16.gmra.mrb[28].mxu1 %v12445_v26 }
 0x47e   : > { %8725 = vmatprep.mubr.bf16.mxu1 %v13493_v23  ;;  %v13505_v23 = vpack.c.bf16 %v13503_v46, %v13504_v41  ;;  %v13516_v41 = vld [vmem:[#allocation32_spill] sm:$0xff] }
 0x485   : > { %8726 = vmatmul.mubr.bf16.vlgmr.msra.gmra.mrb[0].mxu1 %v13496_v53  ;;  %v13507_v53 = vld [vmem:[#allocation19_spill] sm:$0xff] }
 0x486   : > { %8729 = vmatprep.mubr.bf16.mxu1 %v13499_v48  ;;  %8758 = vmatpush3.bf16.msra.mxu1 %v9647_v6  ;;  %v13506_v6 = vld [vmem:[#allocation78_spill] sm:$0xff] }
 0x487   : > { %8759 = vmatprep.subr.bf16.mxu1 %v9648_v1  ;;  %v13508_v56 = vpack.c.bf16 %v13506_v6, %v13507_v53  ;;  %v9655_v6 = vld [vmem:[#allocation9 + $0x180] sm:$0xff]  }
 0x488   : > { %v13518_v53 = vld [vmem:[#allocation82_spill] sm:$0xff] }
 0x48a   : > { %8760 = vmatpush3.bf16.msra.mxu1 %v9648_v1  ;;  %v13509_v1 = vld [vmem:[#allocation79_spill] sm:$0xff] }
 0x48b   : > { %8761 = vmatprep.subr.bf16.mxu1 %v9649_v36  ;;  %v13511_v48 = vpack.c.bf16 %v13509_v1, %v13510_v61  ;;  %v13522_v1 = vld [vmem:[#allocation49_spill] sm:$0xff] }
 0x48d   : > { %8730 = vmatmul.mubr.bf16.gmra.mrb[4].mxu1 %v13502_v25  ;;  %v9653_v25 = vld [vmem:[#allocation9 + $0x170] sm:$0xff]  }
 0x48e   : > { %8733 = vmatprep.mubr.bf16.mxu1 %v13505_v23  ;;  %8762 = vmatpush3.bf16.msra.mxu1 %v9649_v36  ;;  %v13513_v36 = vld [vmem:[#allocation25_spill] sm:$0xff] }
 0x48f   : > { %8763 = vmatprep.subr.bf16.mxu1 %v9650_v47  ;;  %v13514_v46 = vpack.c.bf16 %v13512_v10, %v13513_v36  ;;  %v13525_v10 = vld [vmem:[#allocation48_spill] sm:$0xff] }
 0x492   : > { %8764 = vmatpush3.bf16.msra.mxu1 %v9650_v47  ;;  %v13515_v47 = vld [vmem:[#allocation81_spill] sm:$0xff] }
 0x493   : > { %8765 = vmatprep.subr.bf16.mxu1 %v9651_v24  ;;  %v13517_v23 = vpack.c.bf16 %v13515_v47, %v13516_v41  ;;  %v13528_v47 = vld [vmem:[#allocation57_spill] sm:$0xff] }
 0x495   : > { %8734 = vmatmul.mubr.bf16.gmra.mrb[8].mxu1 %v13508_v56 }
 0x496   : > { %8737 = vmatprep.mubr.bf16.mxu1 %v13511_v48  ;;  %8766 = vmatpush3.bf16.msra.mxu1 %v9651_v24  ;;  %v13519_v24 = vld [vmem:[#allocation27_spill] sm:$0xff]  ;;  %v13524_v48 = vld [vmem:[#allocation84_spill] sm:$0xff] }
 0x497   : > { %8767 = vmatprep.subr.bf16.mxu1 %v9652_v27  ;;  %v13520_v56 = vpack.c.bf16 %v13518_v53, %v13519_v24  ;;  %v13526_v36 = vpack.c.bf16 %v13524_v48, %v13525_v10  ;;  %v13533_v53 = vpack.c.bf16 %v13531_v14, %v13532_v38  ;;  %v13534_v24 = vld [vmem:[#allocation71_spill] sm:$0xff]  ;;  %v13538_v38 = vrot.slane %v11809_v11, 2 }
 0x49a   : > { %8768 = vmatpush3.bf16.msra.mxu1 %v9652_v27  ;;  %v13521_v27 = vld [vmem:[#allocation83_spill] sm:$0xff] }
 0x49b   : > { %8769 = vmatprep.subr.bf16.mxu1 %v9653_v25  ;;  %v13523_v61 = vpack.c.bf16 %v13521_v27, %v13522_v1  ;;  %v5406_v27 = vrot.slane %v13489_v3, 1  ;;  %v13535_v1 = vld [vmem:[#allocation87_spill] sm:$0xff]  ;;  %v5726_v3 = vsel %vm1109_vm1, %v12143_v55, %v13538_v38 }
 0x49d   : > { %8738 = vmatmul.mubr.bf16.gmra.mrb[12].mxu1 %v13514_v46  ;;  %v13527_v46 = vld [vmem:[#allocation85_spill] sm:$0xff] }
 0x49e   : > { %8741 = vmatprep.mubr.bf16.mxu1 %v13517_v23  ;;  %8770 = vmatpush3.bf16.msra.mxu1 %v9653_v25  ;;  %v13529_v41 = vpack.c.bf16 %v13527_v46, %v13528_v47  ;;  %v5407_v25 = vrot.slane %v13490_v54, 1  ;;  %v13539_v47 = vrot.slane %v11816_v42, 2  ;;  %v9673_v42 = vld [vmem:[#allocation9 + $0x210] sm:$0xff]  }
 0x49f   : > { %8771 = vmatprep.subr.bf16.mxu1 %v9654_v39 }
 0x4a0   : > { %v5408_v10 = vsel %vm545_vm0, %v5406_v27, %v5407_v25  ;;  %v13546_v27 = vld [vmem:[#allocation26_spill] sm:$0xff] }
 0x4a2   : > { %8772 = vmatpush3.bf16.msra.mxu1 %v9654_v39  ;;  %v13530_v39 = vld [vmem:[#allocation34_spill] sm:$0xff] }
 0x4a3   : > { %8805 = vmatprep.subr.bf16.mxu1 %v9655_v6  ;;  %v5409_v23 = vrot.slane %v13530_v39, 1 }
 0x4a5   : > { %8742 = vmatmul.mubr.bf16.gmra.mrb[16].mxu1 %v13520_v56  ;;  %v5720_v56 = vrot.slane %v13534_v24, 2  ;;  %v13542_v24 = vld [vmem:[#allocation91_spill] sm:$0xff] }
 0x4a6   : > { %8745 = vmatprep.mubr.bf16.mxu1 %v13523_v61  ;;  %v13536_v61 = vld [vmem:[#allocation69_spill] sm:$0xff] }
 0x4a7   : > { %v13537_v48 = vpack.c.bf16 %v13535_v1, %v13536_v61  ;;  %v5721_v54 = vsel %vm1109_vm1, %v12138_v58, %v5720_v56  ;;  %v9656_v58 = vld [vmem:[#allocation9 + $0x188] sm:$0xff]   ;;  %v13547_v1 = vpack.c.bf16 %v13546_v27, %v13343_v20  ;;  %v13548_v61 = vld [vmem:[#allocation30_spill] sm:$0xff] }
 0x4a8   : > { %v5829_v14 = vpack.c.bf16 %v5721_v54, %v12366_v9  ;;  %v9657_v9 = vld [vmem:[#allocation9 + $0x190] sm:$0xff]   ;;  %v13552_v20 = vld [vmem:[#allocation31_spill] sm:$0xff] }
 0x4a9   : > { %v13553_v54 = vpack.c.bf16 %v13552_v20, %v13460_v37  ;;  %v13573_v27 = vld [vmem:[#allocation103_spill] sm:$0xff]  ;;  %v13578_v20 = vld [vmem:[#allocation108_spill] sm:$0xff] }
 0x4ad   : > { %8746 = vmatmul.mubr.bf16.gmra.mrb[20].mxu1 %v13526_v36  ;;  %v5410_v36 = vsel %vm545_vm0, %v5407_v25, %v5409_v23  ;;  %v5830_v25 = vpack.c.bf16 %v5726_v3, %v12374_v22  ;;  %v9658_v23 = vld [vmem:[#allocation9 + $0x198] sm:$0xff]   ;;  %v9659_v22 = vld [vmem:[#allocation9 + $0x1a0] sm:$0xff]  }
 0x4ae   : > { %8749 = vmatprep.mubr.bf16.mxu1 %v13529_v41  ;;  %v12501_v46 = vpack.c.bf16 %v5410_v36, %v5408_v10  ;;  %v5731_v41 = vsel %vm1109_vm1, %v12382_v12, %v13539_v47  ;;  %v13543_v12 = vpack.c.bf16 %v13542_v24, %v11515_v19  ;;  %v9662_v19 = vld [vmem:[#allocation9 + $0x1b8] sm:$0xff]   ;;  %v13550_v10 = vld [vmem:[#allocation43_spill] sm:$0xff]  ;;  %v13556_v3 = vld [vmem:[#allocation94_spill] sm:$0xff] }
 0x4af   : > { %v5831_v39 = vpack.c.bf16 %v5731_v41, %v12387_v0  ;;  %v9660_v0 = vld [vmem:[#allocation9 + $0x1a8] sm:$0xff]   ;;  %v13551_v36 = vpack.c.bf16 %v13550_v10, %v13457_v35 }
 0x4b0   : > { %v13558_v47 = vld [vmem:[#allocation59_spill] sm:$0xff] }
 0x4b1   : > { %v13559_v35 = vpack.c.bf16 %v13558_v47, %v13469_v28  ;;  %v13560_v41 = vld [vmem:[#allocation95_spill] sm:$0xff]  ;;  %v9670_v47 = vld [vmem:[#allocation9 + $0x1f8] sm:$0xff]  }
 0x4b2   : > { %v9664_v24 = vld [vmem:[#allocation9 + $0x1c8] sm:$0xff]  }
 0x4b3   : > { %v13569_v28 = vld [vmem:[#allocation99_spill] sm:$0xff] }
 0x4b5   : > { %8750 = vmatmul.mubr.bf16.gmra.mrb[24].mxu1 %v13533_v53  ;;  %v13540_v53 = vld [vmem:[#allocation90_spill] sm:$0xff] }
 0x4b6   : > { %8753 = vmatprep.mubr.bf16.mxu1 %v13537_v48  ;;  %v13541_v55 = vpack.c.bf16 %v13540_v53, %v11459_v60  ;;  %v9661_v60 = vld [vmem:[#allocation9 + $0x1b0] sm:$0xff]   ;;  %v13549_v48 = vpack.c.bf16 %v13548_v61, %v13347_v43  ;;  %v13557_v43 = vpack.c.bf16 %v13556_v3, %v13466_v7  ;;  %v13567_v7 = vld [vmem:[#allocation35_spill] sm:$0xff]  ;;  %v13568_v53 = vld [vmem:[#allocation98_spill] sm:$0xff] }
 0x4b7   : > { %v13575_v61 = vld [vmem:[#allocation105_spill] sm:$0xff]  ;;  %v13580_v3 = vld [vmem:[#allocation110_spill] sm:$0xff]  ;;  %v6480_v33 = vrot.slane %v13568_v53, 1 }
 0x4bd   : > { %8754 = vmatmul.mubr.bf16.gmra.mrb[28].mxu1 %v12501_v46 }
 0x4be   : > { %8773 = vmatprep.mubr.bf16.mxu1 %v5829_v14  ;;  %v13554_v14 = vld [vmem:[#allocation93_spill] sm:$0xff] }
 0x4bf   : > { %v13555_v38 = vpack.c.bf16 %v13554_v14, %v13463_v13  ;;  %v9669_v14 = vld [vmem:[#allocation9 + $0x1f0] sm:$0xff]  }
 0x4c5   : > { %8774 = vmatmul.mubr.bf16.vlgmr.msra.gmra.mrb[0].mxu1 %v5830_v25  ;;  %v13561_v25 = vpack.c.bf16 %v13560_v41, %v13472_v50  ;;  %v9665_v50 = vld [vmem:[#allocation9 + $0x1d0] sm:$0xff]  }
 0x4c6   : > { %8777 = vmatprep.mubr.bf16.mxu1 %v5831_v39  ;;  %8806 = vmatpush3.bf16.msra.mxu1 %v9655_v6  ;;  %v13544_v6 = vld [vmem:[#allocation92_spill] sm:$0xff]  ;;  %v13564_v39 = vld [vmem:[#allocation66_spill] sm:$0xff] }
 0x4c7   : > { %8807 = vmatprep.subr.bf16.mxu1 %v9656_v58  ;;  %v13545_v56 = vpack.c.bf16 %v13544_v6, %v11548_v17  ;;  %v9663_v17 = vld [vmem:[#allocation9 + $0x1c0] sm:$0xff]   ;;  %v13582_v41 = vld [vmem:[#allocation112_spill] sm:$0xff] }
 0x4ca   : > { %8808 = vmatpush3.bf16.msra.mxu1 %v9656_v58  ;;  %v13562_v58 = vld [vmem:[#allocation65_spill] sm:$0xff] }
 0x4cb   : > { %8809 = vmatprep.subr.bf16.mxu1 %v9657_v9  ;;  %v13563_v37 = vpack.c.bf16 %v13562_v58, %v13475_v16  ;;  %v13571_v16 = vld [vmem:[#allocation101_spill] sm:$0xff]  ;;  %v9671_v58 = vld [vmem:[#allocation9 + $0x200] sm:$0xff]  }
 0x4cd   : > { %8778 = vmatmul.mubr.bf16.gmra.mrb[4].mxu1 %v13541_v55  ;;  %v6153_v55 = vpack.c.bf16 %v13568_v53, %v13567_v7 }
 0x4ce   : > { %8781 = vmatprep.mubr.bf16.mxu1 %v13543_v12  ;;  %8810 = vmatpush3.bf16.msra.mxu1 %v9657_v9  ;;  %v13565_v9 = vld [vmem:[#allocation97_spill] sm:$0xff]  ;;  %v13570_v12 = vld [vmem:[#allocation100_spill] sm:$0xff] }
 0x4cf   : > { %8811 = vmatprep.subr.bf16.mxu1 %v9658_v23  ;;  %v6152_v13 = vpack.c.bf16 %v13565_v9, %v13564_v39 }
 0x4d2   : > { %8812 = vmatpush3.bf16.msra.mxu1 %v9658_v23  ;;  %v13566_v23 = vld [vmem:[#allocation96_spill] sm:$0xff] }
 0x4d3   : > { %8813 = vmatprep.subr.bf16.mxu1 %v9659_v22 }
 0x4d5   : > { %8782 = vmatmul.mubr.bf16.gmra.mrb[8].mxu1 %v13545_v56  ;;  %v9666_v56 = vld [vmem:[#allocation9 + $0x1d8] sm:$0xff]  }
 0x4d6   : > { %8785 = vmatprep.mubr.bf16.mxu1 %v13547_v1  ;;  %8814 = vmatpush3.bf16.msra.mxu1 %v9659_v22  ;;  %v6154_v22 = vpack.c.bf16 %v13570_v12, %v13569_v28  ;;  %v13574_v1 = vld [vmem:[#allocation104_spill] sm:$0xff] }
 0x4d7   : > { %8815 = vmatprep.subr.bf16.mxu1 %v9660_v0 }
 0x4da   : > { %8816 = vmatpush3.bf16.msra.mxu1 %v9660_v0  ;;  %v13572_v0 = vld [vmem:[#allocation102_spill] sm:$0xff] }
 0x4db   : > { %8817 = vmatprep.subr.bf16.mxu1 %v9661_v60  ;;  %v6155_v6 = vpack.c.bf16 %v13572_v0, %v13571_v16 }
 0x4dd   : > { %8786 = vmatmul.mubr.bf16.gmra.mrb[12].mxu1 %v13549_v48  ;;  %v13576_v48 = vld [vmem:[#allocation106_spill] sm:$0xff] }
 0x4de   : > { %8789 = vmatprep.mubr.bf16.mxu1 %v13551_v36  ;;  %8818 = vmatpush3.bf16.msra.mxu1 %v9661_v60  ;;  %v6156_v60 = vpack.c.bf16 %v13574_v1, %v13573_v27  ;;  %v6157_v10 = vpack.c.bf16 %v13576_v48, %v13575_v61  ;;  %v9668_v36 = vld [vmem:[#allocation9 + $0x1e8] sm:$0xff]  }
 0x4df   : > { %8819 = vmatprep.subr.bf16.mxu1 %v9662_v19 }
 0x4e2   : > { %8820 = vmatpush3.bf16.msra.mxu1 %v9662_v19  ;;  %v9667_v19 = vld [vmem:[#allocation9 + $0x1e0] sm:$0xff]  }
 0x4e3   : > { %8853 = vmatprep.subr.bf16.mxu1 %v9663_v17 }
 0x4e5   : > { %8790 = vmatmul.mubr.bf16.gmra.mrb[16].mxu1 %v13553_v54 }
 0x4e6   : > { %8793 = vmatprep.mubr.bf16.mxu1 %v13555_v38  ;;  %v13579_v38 = vld [vmem:[#allocation109_spill] sm:$0xff] }
 0x4ed   : > { %8794 = vmatmul.mubr.bf16.gmra.mrb[20].mxu1 %v13557_v43  ;;  %v6159_v43 = vpack.c.bf16 %v13580_v3, %v13579_v38 }
 0x4ee   : > { %8797 = vmatprep.mubr.bf16.mxu1 %v13559_v35  ;;  %v13581_v35 = vld [vmem:[#allocation111_spill] sm:$0xff] }
 0x4f5   : > { %8798 = vmatmul.mubr.bf16.gmra.mrb[24].mxu1 %v13561_v25  ;;  %v6160_v25 = vpack.c.bf16 %v13582_v41, %v13581_v35 }
 0x4f6   : > { %8801 = vmatprep.mubr.bf16.mxu1 %v13563_v37  ;;  %v13583_v37 = vld [vmem:[#allocation113_spill] sm:$0xff] }
 0x4fd   : > { %8802 = vmatmul.mubr.bf16.gmra.mrb[28].mxu1 %v13566_v23 }
 0x4fe   : > { %8821 = vmatprep.mubr.bf16.mxu1 %v6152_v13  ;;  %v13584_v13 = vld [vmem:[#allocation114_spill] sm:$0xff] }
 0x505   : > { %8822 = vmatmul.mubr.bf16.vlgmr.msra.gmra.mrb[0].mxu1 %v6153_v55  ;;  %v6161_v55 = vpack.c.bf16 %v13584_v13, %v13583_v37 }
 0x506   : > { %8825 = vmatprep.mubr.bf16.mxu1 %v6154_v22  ;;  %8854 = vmatpush3.bf16.msra.mxu1 %v9663_v17  ;;  %v13577_v17 = vld [vmem:[#allocation107_spill] sm:$0xff]  ;;  %v13586_v22 = vld [vmem:[#allocation116_spill] sm:$0xff] }
 0x507   : > { %8855 = vmatprep.subr.bf16.mxu1 %v9664_v24  ;;  %v6158_v54 = vpack.c.bf16 %v13578_v20, %v13577_v17 }
 0x50a   : > { %8856 = vmatpush3.bf16.msra.mxu1 %v9664_v24  ;;  %v13585_v24 = vld [vmem:[#allocation115_spill] sm:$0xff] }
 0x50b   : > { %8857 = vmatprep.subr.bf16.mxu1 %v9665_v50 }
 0x50d   : > { %8826 = vmatmul.mubr.bf16.gmra.mrb[4].mxu1 %v6155_v6  ;;  %v13587_v6 = vld [vmem:[#allocation118_spill] sm:$0xff] }
 0x50e   : > { %8829 = vmatprep.mubr.bf16.mxu1 %v6156_v60  ;;  %8858 = vmatpush3.bf16.msra.mxu1 %v9665_v50  ;;  %v6162_v50 = vpack.c.bf16 %v13586_v22, %v13585_v24 }
 0x50f   : > { %8859 = vmatprep.subr.bf16.mxu1 %v9666_v56 }
 0x512   : > { %8860 = vmatpush3.bf16.msra.mxu1 %v9666_v56  ;;  %v13588_v56 = vld [vmem:[#allocation119_spill] sm:$0xff] }
 0x513   : > { %8861 = vmatprep.subr.bf16.mxu1 %v9667_v19  ;;  %v6163_v60 = vpack.c.bf16 %v13588_v56, %v13587_v6 }
 0x515   : > { %8830 = vmatmul.mubr.bf16.gmra.mrb[8].mxu1 %v6157_v10  ;;  %v13590_v10 = vld [vmem:[#allocation120_spill] sm:$0xff] }
 0x516   : > { %8833 = vmatprep.mubr.bf16.mxu1 %v6158_v54  ;;  %8862 = vmatpush3.bf16.msra.mxu1 %v9667_v19  ;;  %v13589_v19 = vld [vmem:[#allocation117_spill] sm:$0xff] }
 0x517   : > { %8863 = vmatprep.subr.bf16.mxu1 %v9668_v36  ;;  %v13591_v54 = vld [vmem:[#allocation121_spill] sm:$0xff] }
 0x51a   : > { %8864 = vmatpush3.bf16.msra.mxu1 %v9668_v36  ;;  %v6164_v36 = vpack.c.bf16 %v13590_v10, %v13589_v19 }
 0x51b   : > { %8865 = vmatprep.subr.bf16.mxu1 %v9669_v14 }
 0x51d   : > { %8834 = vmatmul.mubr.bf16.gmra.mrb[12].mxu1 %v6159_v43 }
 0x51e   : > { %8837 = vmatprep.mubr.bf16.mxu1 %v6160_v25  ;;  %8866 = vmatpush3.bf16.msra.mxu1 %v9669_v14  ;;  %v13592_v14 = vld [vmem:[#allocation122_spill] sm:$0xff]  ;;  %v6474_v25 = vrot.slane %v13564_v39, 1  ;;  %v6484_v39 = vrot.slane %v13569_v28, 1  ;;  %v6489_v28 = vrot.slane %v13571_v16, 1 }
 0x51f   : > { %8867 = vmatprep.subr.bf16.mxu1 %v9670_v47  ;;  %v6165_v43 = vpack.c.bf16 %v13592_v14, %v13591_v54 }
 0x522   : > { %8868 = vmatpush3.bf16.msra.mxu1 %v9670_v47  ;;  %v6475_v47 = vrot.slane %v13565_v9, 1  ;;  %v6485_v9 = vrot.slane %v13570_v12, 1  ;;  %v9672_v12 = vld [vmem:[#allocation9 + $0x208] sm:$0xff]  }
 0x523   : > { %8901 = vmatprep.subr.bf16.mxu1 %v9671_v58 }
 0x524   : > { %v6476_v23 = vsel %vm545_vm0, %v6474_v25, %v6475_v47  ;;  %v6483_v25 = vsel %vm545_vm0, %v6480_v33, %v13594_v40  ;;  %v6494_v40 = vrot.slane %v13573_v27, 1  ;;  %v6500_v27 = vrot.slane %v13576_v48, 1 }
 0x525   : > { %8838 = vmatmul.mubr.bf16.gmra.mrb[16].mxu1 %v6161_v55  ;;  %v12583_v55 = vld [vmem:[#allocation2] sm:$0xff] }
 0x526   : > { %8841 = vmatprep.mubr.bf16.mxu1 %v6162_v50  ;;  %v6167_v50 = vpack.c.bf16 %v12583_v55, %v12583_v55 }
 0x52d   : > { %8842 = vmatmul.mubr.bf16.gmra.mrb[20].mxu1 %v6163_v60  ;;  %v13593_v60 = vrot.slane %v11809_v11, 1  ;;  %v6486_v11 = vsel %vm545_vm0, %v6484_v39, %v6485_v9  ;;  %v6504_v39 = vrot.slane %v13577_v17, 1  ;;  %v6510_v17 = vrot.slane %v13580_v3, 1 }
 0x52e   : > { %8845 = vmatprep.mubr.bf16.mxu1 %v6164_v36 }
 0x52f   : > { %v6478_v36 = vsel %vm545_vm0, %v6475_v47, %v13593_v60  ;;  %v13595_v47 = vrot.slane %v11818_v49, 1 }
 0x530   : > { %v6586_v57 = vpack.c.bf16 %v6478_v36, %v6476_v23  ;;  %v13597_v36 = vrot.slane %v11828_v15, 1  ;;  %v9675_v15 = vld [vmem:[#allocation9 + $0x220] sm:$0xff]  }
 0x531   : > { %v6488_v23 = vsel %vm545_vm0, %v6485_v9, %v13595_v47  ;;  %v13599_v47 = vrot.slane %v11859_v18, 1  ;;  %v9677_v18 = vld [vmem:[#allocation9 + $0x230] sm:$0xff]  }
 0x535   : > { %8846 = vmatmul.mubr.bf16.gmra.mrb[24].mxu1 %v6165_v43 }
 0x536   : > { %8849 = vmatprep.mubr.bf16.mxu1 %v12445_v26  ;;  %v6479_v26 = vrot.slane %v13567_v7, 1  ;;  %v6588_v7 = vpack.c.bf16 %v6488_v23, %v6486_v11  ;;  %v9676_v23 = vld [vmem:[#allocation9 + $0x228] sm:$0xff]  }
 0x538   : > { %v6481_v43 = vsel %vm545_vm0, %v6479_v26, %v6480_v33  ;;  %v13596_v33 = vrot.slane %v11822_v31, 1  ;;  %v6505_v26 = vrot.slane %v13578_v20, 1  ;;  %v6499_v31 = vrot.slane %v13575_v61, 1 }
 0x539   : > { %v6587_v53 = vpack.c.bf16 %v6483_v25, %v6481_v43  ;;  %v13598_v25 = vrot.slane %v11841_v52, 1  ;;  %v6509_v52 = vrot.slane %v13579_v38, 1 }
 0x53a   : > { %v6501_v43 = vsel %vm545_vm0, %v6499_v31, %v6500_v27  ;;  %v6506_v48 = vsel %vm545_vm0, %v6504_v39, %v6505_v26  ;;  %v6508_v20 = vsel %vm545_vm0, %v6505_v26, %v13599_v47  ;;  %v13604_v26 = vrot.slane %v11915_v21, 1 }
 0x53b   : > { %v6503_v11 = vsel %vm545_vm0, %v6500_v27, %v13598_v25  ;;  %v6529_v27 = vrot.slane %v13587_v6, 1  ;;  %v13605_v39 = vrot.slane %v11917_v59, 1  ;;  %v6539_v6 = vrot.slane %v13591_v54, 1 }
 0x53c   : > { %v6591_v61 = vpack.c.bf16 %v6503_v11, %v6501_v43  ;;  %v13606_v21 = vrot.slane %v11932_v5, 1  ;;  %v6549_v11 = vrot.slane %v12583_v55, 1  ;;  %v13608_v54 = vpack.c.bf16 %v12233_v29, %v12228_v8  ;;  %v13609_v5 = vld [vmem:[#allocation53_spill] sm:$0xff]  ;;  %v13620_v8 = vld [vmem:[#allocation128_spill] sm:$0xff] }
 0x53d   : > { %8850 = vmatmul.mubr.bf16.gmra.mrb[28].mxu1 %v6167_v50  ;;  %v6490_v50 = vrot.slane %v13572_v0, 1  ;;  %v13610_v47 = vpack.c.bf16 %v12246_v2, %v13609_v5 }
 0x53e   : > { %8869 = vmatprep.mubr.bf16.mxu1 %v6586_v57  ;;  %v6495_v57 = vrot.slane %v13574_v1, 1  ;;  %v6601_v59 = vpack.c.bf16 %v6549_v11, %v6549_v11 }
 0x53f   : > { %v6491_v49 = vsel %vm545_vm0, %v6489_v28, %v6490_v50  ;;  %v6493_v60 = vsel %vm545_vm0, %v6490_v50, %v13596_v33  ;;  %v6514_v50 = vrot.slane %v13581_v35, 1  ;;  %v6520_v35 = vrot.slane %v13584_v13, 1 }
 0x540   : > { %v6496_v0 = vsel %vm545_vm0, %v6494_v40, %v6495_v57  ;;  %v6498_v1 = vsel %vm545_vm0, %v6495_v57, %v13597_v36  ;;  %v6589_v16 = vpack.c.bf16 %v6493_v60, %v6491_v49  ;;  %v13600_v57 = vrot.slane %v11861_v63, 1 }
 0x541   : > { %v6590_v9 = vpack.c.bf16 %v6498_v1, %v6496_v0  ;;  %v13601_v40 = vrot.slane %v11874_v32, 1  ;;  %v6525_v33 = vrot.slane %v13586_v22, 1  ;;  %v6519_v63 = vrot.slane %v13583_v37, 1 }
 0x542   : > { %v6513_v28 = vsel %vm545_vm0, %v6510_v17, %v13600_v57  ;;  %v6524_v60 = vrot.slane %v13585_v24, 1  ;;  %v13602_v0 = vrot.slane %v11887_v45, 1  ;;  %v13603_v13 = vrot.slane %v11898_v34, 1  ;;  %v13630_v57 = vld [vmem:[#allocation133_spill] sm:$0xff] }
 0x543   : > { %v6521_v32 = vsel %vm545_vm0, %v6519_v63, %v6520_v35  ;;  %v6530_v37 = vrot.slane %v13588_v56, 1  ;;  %v6535_v24 = vrot.slane %v13590_v10, 1  ;;  %v6534_v45 = vrot.slane %v13589_v19, 1  ;;  %v13639_v63 = vld [vmem:[#allocation138_spill] sm:$0xff] }
 0x544   : > { %v6523_v36 = vsel %vm545_vm0, %v6520_v35, %v13602_v0  ;;  %v6526_v1 = vsel %vm545_vm0, %v6524_v60, %v6525_v33  ;;  %v6528_v22 = vsel %vm545_vm0, %v6525_v33, %v13603_v13  ;;  %v6540_v10 = vrot.slane %v13592_v14, 1  ;;  %v13638_v33 = vld [vmem:[#allocation139_spill] sm:$0xff] }
 0x545   : > { %8870 = vmatmul.mubr.bf16.vlgmr.msra.gmra.mrb[0].mxu1 %v6587_v53  ;;  %v6592_v53 = vpack.c.bf16 %v6508_v20, %v6506_v48  ;;  %v6533_v34 = vsel %vm545_vm0, %v6530_v37, %v13604_v26  ;;  %v6536_v31 = vsel %vm545_vm0, %v6534_v45, %v6535_v24  ;;  %v6538_v56 = vsel %vm545_vm0, %v6535_v24, %v13605_v39  ;;  %v9718_v45 = vld [vmem:[#allocation2 + $0x19] sm:$0xff] }
 0x546   : > { %8873 = vmatprep.mubr.bf16.mxu1 %v6588_v7  ;;  %8902 = vmatpush3.bf16.msra.mxu1 %v9671_v58  ;;  %v9674_v58 = vld [vmem:[#allocation9 + $0x218] sm:$0xff]   ;;  %v6511_v7 = vsel %vm545_vm0, %v6509_v52, %v6510_v17  ;;  %v6598_v43 = vpack.c.bf16 %v6538_v56, %v6536_v31  ;;  %v6541_v19 = vsel %vm545_vm0, %v6539_v6, %v6540_v10  ;;  %v13615_v17 = vld [vmem:[#allocation123_spill] sm:$0xff]  ;;  %v13623_v52 = vld [vmem:[#allocation130_spill] sm:$0xff] }
 0x547   : > { %8903 = vmatprep.subr.bf16.mxu1 %v9672_v12  ;;  %v6593_v38 = vpack.c.bf16 %v6513_v28, %v6511_v7  ;;  %v6543_v25 = vsel %vm545_vm0, %v6540_v10, %v13606_v21  ;;  %v13607_v14 = vpack.c.bf16 %v12225_v51, %v12218_v44  ;;  %v13611_v20 = vpack.c.bf16 %v12256_v30, %v12251_v62  ;;  %v13617_v44 = vld [vmem:[#allocation126_spill] sm:$0xff]  ;;  %v13626_v62 = vld [vmem:[#allocation132_spill] sm:$0xff] }
 0x548   : > { %v6599_v48 = vpack.c.bf16 %v6543_v25, %v6541_v19  ;;  %v13629_v7 = vld [vmem:[#allocation134_spill] sm:$0xff]  ;;  %v13640_v60 = vpack.c.bf16 %v13638_v33, %v13639_v63 }
 0x549   : > { %v13631_v28 = vpack.c.bf16 %v13629_v7, %v13630_v57  ;;  %v9719_v31 = vld [vmem:[#allocation2 + $0x39] sm:$0xff] }
 0x54a   : > { %8904 = vmatpush3.bf16.msra.mxu1 %v9672_v12  ;;  %v6515_v12 = vrot.slane %v13582_v41, 1  ;;  %v9726_v57 = vld [vmem:[#allocation2 + $0x79] sm:$0xff] }
 0x54b   : > { %8905 = vmatprep.subr.bf16.mxu1 %v9673_v42 }
 0x54c   : > { %v6516_v3 = vsel %vm545_vm0, %v6514_v50, %v6515_v12  ;;  %v6518_v41 = vsel %vm545_vm0, %v6515_v12, %v13601_v40  ;;  %v13621_v12 = vld [vmem:[#allocation127_spill] sm:$0xff]  ;;  %v13624_v50 = vld [vmem:[#allocation129_spill] sm:$0xff]  ;;  %v13633_v40 = vld [vmem:[#allocation64_spill] sm:$0xff] }
 0x54d   : > { %8874 = vmatmul.mubr.bf16.gmra.mrb[4].mxu1 %v6589_v16  ;;  %v6594_v49 = vpack.c.bf16 %v6518_v41, %v6516_v3  ;;  %v6595_v16 = vpack.c.bf16 %v6523_v36, %v6521_v32  ;;  %v13622_v2 = vpack.c.bf16 %v13620_v8, %v13621_v12  ;;  %v13625_v30 = vpack.c.bf16 %v13623_v52, %v13624_v50  ;;  %v13632_v3 = vld [vmem:[#allocation135_spill] sm:$0xff]  ;;  %v13641_v32 = vld [vmem:[#allocation96_spill] sm:$0xff]  ;;  %v12718_v36 = vld [vmem:[%s12843_s4] ss:$0 sm:$0xff] }
 0x54e   : > { %8877 = vmatprep.mubr.bf16.mxu1 %v6590_v9  ;;  %8906 = vmatpush3.bf16.msra.mxu1 %v9673_v42  ;;  %v9678_v42 = vld [vmem:[#allocation9 + $0x238] sm:$0xff]   ;;  %v6531_v9 = vsel %vm545_vm0, %v6529_v27, %v6530_v37  ;;  %v13634_v41 = vpack.c.bf16 %v13632_v3, %v13633_v40 }
 0x54f   : > { %8907 = vmatprep.subr.bf16.mxu1 %v9674_v58  ;;  %v9717_v37 = vld [vmem:[#allocation2 + $0x31] sm:$0xff] }
 0x552   : > { %8908 = vmatpush3.bf16.msra.mxu1 %v9674_v58  ;;  %v6596_v58 = vpack.c.bf16 %v6528_v22, %v6526_v1 }
 0x553   : > { %8909 = vmatprep.subr.bf16.mxu1 %v9675_v15 }
 0x555   : > { %8878 = vmatmul.mubr.bf16.gmra.mrb[8].mxu1 %v6591_v61 }
 0x556   : > { %8881 = vmatprep.mubr.bf16.mxu1 %v6592_v53  ;;  %8910 = vmatpush3.bf16.msra.mxu1 %v9675_v15  ;;  %v6597_v15 = vpack.c.bf16 %v6533_v34, %v6531_v9  ;;  %v13618_v53 = vld [vmem:[#allocation125_spill] sm:$0xff] }
 0x557   : > { %8911 = vmatprep.subr.bf16.mxu1 %v9676_v23  ;;  %v13619_v29 = vpack.c.bf16 %v13617_v44, %v13618_v53  ;;  %v9724_v44 = vld [vmem:[#allocation2 + $0x51] sm:$0xff] }
 0x55a   : > { %8912 = vmatpush3.bf16.msra.mxu1 %v9676_v23  ;;  %v13614_v23 = vld [vmem:[#allocation124_spill] sm:$0xff] }
 0x55b   : > { %8913 = vmatprep.subr.bf16.mxu1 %v9677_v18  ;;  %v13616_v51 = vpack.c.bf16 %v13614_v23, %v13615_v17  ;;  %v9723_v23 = vld [vmem:[#allocation2 + $0x69] sm:$0xff] }
 0x55d   : > { %8882 = vmatmul.mubr.bf16.gmra.mrb[12].mxu1 %v6593_v38  ;;  %v13635_v38 = vld [vmem:[#allocation137_spill] sm:$0xff] }
 0x55e   : > { %8885 = vmatprep.mubr.bf16.mxu1 %v6594_v49  ;;  %8914 = vmatpush3.bf16.msra.mxu1 %v9677_v18  ;;  %v13627_v18 = vld [vmem:[#allocation131_spill] sm:$0xff]  ;;  %v6935_v49 = vrot.slane %v12583_v55, 2 }
 0x55f   : > { %8915 = vmatprep.subr.bf16.mxu1 %v9678_v42 }
 0x560   : > { %v6987_v0 = vpack.c.bf16 %v6935_v49, %v6935_v49 }
 0x562   : > { %8916 = vmatpush3.bf16.msra.mxu1 %v9678_v42  ;;  %v13636_v42 = vld [vmem:[#allocation136_spill] sm:$0xff] }
 0x563   : > { %v13637_v35 = vpack.c.bf16 %v13635_v38, %v13636_v42 }
 0x565   : > { %8886 = vmatmul.mubr.bf16.gmra.mrb[16].mxu1 %v6595_v16 }
 0x566   : > { %8889 = vmatprep.mubr.bf16.mxu1 %v6596_v58 }
 0x56d   : > { %8890 = vmatmul.mubr.bf16.gmra.mrb[20].mxu1 %v6597_v15  ;;  %v9720_v15 = vld [vmem:[#allocation2 + $0x21] sm:$0xff] }
 0x56e   : > { %8893 = vmatprep.mubr.bf16.mxu1 %v6598_v43 }
 0x575   : > { %8894 = vmatmul.mubr.bf16.gmra.mrb[24].mxu1 %v6599_v48 }
 0x576   : > { %8897 = vmatprep.mubr.bf16.mxu1 %v12501_v46  ;;  %v13612_v46 = vld [vmem:[#allocation51_spill] sm:$0xff] }
 0x577   : > { %v13613_v61 = vpack.c.bf16 %v12266_v4, %v13612_v46  ;;  %v13628_v4 = vpack.c.bf16 %v13626_v62, %v13627_v18  ;;  %v9725_v62 = vld [vmem:[#allocation2 + $0x91] sm:$0xff] }
 0x57d   : > { %8898 = vmatmul.mubr.bf16.gmra.mrb[28].mxu1 %v6601_v59  ;;  %v9721_v59 = vld [vmem:[#allocation2 + $0x61] sm:$0xff] }
 0x57e   : > { %8917 = vmatprep.mubr.bf16.mxu1 %v13607_v14 }
 0x585   : > { %8918 = vmatmul.mubr.bf16.vlgmr.msra.gmra.mrb[0].mxu1 %v13608_v54 }
 0x586   : > { %8921 = vmatprep.mubr.bf16.mxu1 %v13610_v47  ;;  %v9722_v47 = vld [vmem:[#allocation2 + $0x49] sm:$0xff] }
 0x58d   : > { %8922 = vmatmul.mubr.bf16.gmra.mrb[4].mxu1 %v13611_v20 }
 0x58e   : > { %8925 = vmatprep.mubr.bf16.mxu1 %v13613_v61 }
 0x595   : > { %8926 = vmatmul.mubr.bf16.gmra.mrb[8].mxu1 %v13616_v51 }
 0x596   : > { %8929 = vmatprep.mubr.bf16.mxu1 %v13619_v29 }
 0x59d   : > { %8930 = vmatmul.mubr.bf16.gmra.mrb[12].mxu1 %v13622_v2 }
 0x59e   : > { %8933 = vmatprep.mubr.bf16.mxu1 %v13625_v30 }
 0x5a5   : > { %8934 = vmatmul.mubr.bf16.gmra.mrb[16].mxu1 %v13628_v4 }
 0x5a6   : > { %8937 = vmatprep.mubr.bf16.mxu1 %v13631_v28 }
 0x5ad   : > { %8938 = vmatmul.mubr.bf16.gmra.mrb[20].mxu1 %v13634_v41  ;;  %v9727_v41 = vld [vmem:[#allocation2 + $0x99] sm:$0xff] }
 0x5ae   : > { %8941 = vmatprep.mubr.bf16.mxu1 %v13637_v35  ;;  %v9728_v35 = vld [vmem:[#allocation2 + $0x81] sm:$0xff] }
 0x5b5   : > { %8942 = vmatmul.mubr.bf16.gmra.mrb[24].mxu1 %v13640_v60 }
 0x5b6   : > { %8945 = vmatprep.mubr.bf16.mxu1 %v13641_v32 }
 0x5bd   : > { %8946 = vmatmul.mubr.bf16.gmra.mrb[28].mxu1 %v6987_v0 }
 0x658   : > { %v8919_v1 = vpop.f32.mrb[0].mxu1 }
 0x659   : > { %v7255_v13 = vadd.f32 %v8919_v1, %v12718_v36  ;;  %v7087_v22 = vpop.f32.mrb[1].mxu1 }
 0x65a   : > { %v7253_v55 = vadd.f32 %v12718_v36, %v7087_v22  ;;  %v8920_v16 = vpop.f32.mrb[2].mxu1  ;;  %v9729_v22 = vld [vmem:[#allocation2 + $0xc1] sm:$0xff] }
 0x65b   : > { %v7287_v58 = vadd.f32 %v9717_v37, %v7255_v13  ;;  %v7256_v24 = vadd.f32 %v8920_v16, %v12718_v36  ;;  %v7090_v27 = vpop.f32.mrb[3].mxu1 }
 0x65c   : > { %v7285_v9 = vadd.f32 %v9718_v45, %v7253_v55  ;;  %v7254_v26 = vadd.f32 %v12718_v36, %v7090_v27 }
 0x65d   : > { %v7319_v34 = vmax.f32 %v7287_v58, 0.0  ;;  %v7288_v39 = vadd.f32 %v9719_v31, %v7256_v24  ;;  %v9730_v58 = vld [vmem:[#allocation2 + $0xa9] sm:$0xff]  ;;  %v9732_v31 = vld [vmem:[#allocation2 + $0xb1] sm:$0xff] }
 0x65e   : > { %v7317_v56 = vmax.f32 %v7285_v9, 0.0  ;;  %v7286_v10 = vadd.f32 %v9720_v15, %v7254_v26  ;;  %v9731_v9 = vld [vmem:[#allocation2 + $0xc9] sm:$0xff] }
 0x65f   : > { %7351 = vst [vmem:[%s12726_s11 + $0x10] sm:$0xff] %v7319_v34  ;;  %v7320_v43 = vmax.f32 %v7288_v39, 0.0 }
 0x660   : > { %7349 = vst [vmem:[%s12726_s11] sm:$0xff] %v7317_v56  ;;  %v7318_v6 = vmax.f32 %v7286_v10, 0.0  ;;  %v8923_v19 = vpop.f32.mrb[4].mxu1 }
 0x661   : > { %7352 = vst [vmem:[%s12726_s11 + $0x18] sm:$0xff] %v7320_v43  ;;  %v7259_v21 = vadd.f32 %v8923_v19, %v12718_v36  ;;  %v7103_v25 = vpop.f32.mrb[5].mxu1 }
 0x662   : > { %7350 = vst [vmem:[%s12726_s11 + $0x8] sm:$0xff] %v7318_v6  ;;  %v7257_v11 = vadd.f32 %v12718_v36, %v7103_v25  ;;  %v8924_v48 = vpop.f32.mrb[6].mxu1  ;;  %v9733_v25 = vld [vmem:[#allocation2 + $0xf1] sm:$0xff] }
 0x663   : > { %v7291_v14 = vadd.f32 %v9721_v59, %v7259_v21  ;;  %v7260_v54 = vadd.f32 %v8924_v48, %v12718_v36  ;;  %v7106_v5 = vpop.f32.mrb[7].mxu1 }
 0x664   : > { %v7289_v20 = vadd.f32 %v9722_v47, %v7257_v11  ;;  %v7258_v46 = vadd.f32 %v12718_v36, %v7106_v5 }
 0x665   : > { %v7323_v61 = vmax.f32 %v7291_v14, 0.0  ;;  %v7292_v17 = vadd.f32 %v9723_v23, %v7260_v54  ;;  %v9734_v14 = vld [vmem:[#allocation2 + $0xd9] sm:$0xff]  ;;  %v9736_v23 = vld [vmem:[#allocation2 + $0xe1] sm:$0xff] }
 0x666   : > { %v7321_v51 = vmax.f32 %v7289_v20, 0.0  ;;  %v7290_v53 = vadd.f32 %v9724_v44, %v7258_v46  ;;  %v9735_v20 = vld [vmem:[#allocation2 + $0xf9] sm:$0xff] }
 0x667   : > { %7355 = vst [vmem:[%s12726_s11 + $0x30] sm:$0xff] %v7323_v61  ;;  %v7324_v29 = vmax.f32 %v7292_v17, 0.0 }
 0x668   : > { %7353 = vst [vmem:[%s12726_s11 + $0x20] sm:$0xff] %v7321_v51  ;;  %v7322_v8 = vmax.f32 %v7290_v53, 0.0  ;;  %v8927_v12 = vpop.f32.mrb[8].mxu1 }
 0x669   : > { %7356 = vst [vmem:[%s12726_s11 + $0x38] sm:$0xff] %v7324_v29  ;;  %v7263_v2 = vadd.f32 %v8927_v12, %v12718_v36  ;;  %v7119_v52 = vpop.f32.mrb[9].mxu1 }
 0x66a   : > { %7354 = vst [vmem:[%s12726_s11 + $0x28] sm:$0xff] %v7322_v8  ;;  %v7261_v50 = vadd.f32 %v12718_v36, %v7119_v52  ;;  %v8928_v30 = vpop.f32.mrb[10].mxu1  ;;  %v9737_v52 = vld [vmem:[#allocation2 + $0x121] sm:$0xff] }
 0x66b   : > { %v7295_v18 = vadd.f32 %v9725_v62, %v7263_v2  ;;  %v7264_v4 = vadd.f32 %v8928_v30, %v12718_v36  ;;  %v7122_v7 = vpop.f32.mrb[11].mxu1 }
 0x66c   : > { %v7293_v28 = vadd.f32 %v9726_v57, %v7261_v50  ;;  %v7262_v3 = vadd.f32 %v12718_v36, %v7122_v7 }
 0x66d   : > { %v7327_v40 = vmax.f32 %v7295_v18, 0.0  ;;  %v7296_v38 = vadd.f32 %v9727_v41, %v7264_v4  ;;  %v9738_v18 = vld [vmem:[#allocation2 + $0x109] sm:$0xff]  ;;  %v9740_v41 = vld [vmem:[#allocation2 + $0x111] sm:$0xff] }
 0x66e   : > { %v7325_v42 = vmax.f32 %v7293_v28, 0.0  ;;  %v7294_v49 = vadd.f32 %v9728_v35, %v7262_v3  ;;  %v9739_v28 = vld [vmem:[#allocation2 + $0x129] sm:$0xff] }
 0x66f   : > { %7359 = vst [vmem:[%s12726_s11 + $0x50] sm:$0xff] %v7327_v40  ;;  %v7328_v33 = vmax.f32 %v7296_v38, 0.0 }
 0x670   : > { %7357 = vst [vmem:[%s12726_s11 + $0x40] sm:$0xff] %v7325_v42  ;;  %v7326_v63 = vmax.f32 %v7294_v49, 0.0  ;;  %v8931_v60 = vpop.f32.mrb[12].mxu1 }
 0x671   : > { %7360 = vst [vmem:[%s12726_s11 + $0x58] sm:$0xff] %v7328_v33  ;;  %v7267_v32 = vadd.f32 %v8931_v60, %v12718_v36  ;;  %v7135_v0 = vpop.f32.mrb[13].mxu1 }
 0x672   : > { %7358 = vst [vmem:[%s12726_s11 + $0x48] sm:$0xff] %v7326_v63  ;;  %v7265_v1 = vadd.f32 %v12718_v36, %v7135_v0  ;;  %v8932_v13 = vpop.f32.mrb[14].mxu1  ;;  %v9741_v0 = vld [vmem:[#allocation2 + $0x151] sm:$0xff] }
 0x673   : > { %v7299_v55 = vadd.f32 %v9729_v22, %v7267_v32  ;;  %v7268_v16 = vadd.f32 %v8932_v13, %v12718_v36  ;;  %v7138_v37 = vpop.f32.mrb[15].mxu1 }
 0x674   : > { %v7297_v24 = vadd.f32 %v9730_v58, %v7265_v1  ;;  %v7266_v27 = vadd.f32 %v12718_v36, %v7138_v37 }
 0x675   : > { %v7331_v45 = vmax.f32 %v7299_v55, 0.0  ;;  %v7300_v26 = vadd.f32 %v9731_v9, %v7268_v16  ;;  %v9742_v55 = vld [vmem:[#allocation2 + $0x139] sm:$0xff]  ;;  %v9744_v9 = vld [vmem:[#allocation2 + $0x141] sm:$0xff] }
 0x676   : > { %v7329_v34 = vmax.f32 %v7297_v24, 0.0  ;;  %v7298_v39 = vadd.f32 %v9732_v31, %v7266_v27  ;;  %v9743_v24 = vld [vmem:[#allocation2 + $0x159] sm:$0xff] }
 0x677   : > { %7363 = vst [vmem:[%s12726_s11 + $0x70] sm:$0xff] %v7331_v45  ;;  %v7332_v56 = vmax.f32 %v7300_v26, 0.0 }
 0x678   : > { %7361 = vst [vmem:[%s12726_s11 + $0x60] sm:$0xff] %v7329_v34  ;;  %v7330_v15 = vmax.f32 %v7298_v39, 0.0  ;;  %v8935_v10 = vpop.f32.mrb[16].mxu1 }
 0x679   : > { %7364 = vst [vmem:[%s12726_s11 + $0x78] sm:$0xff] %v7332_v56  ;;  %v7271_v43 = vadd.f32 %v8935_v10, %v12718_v36  ;;  %v7151_v6 = vpop.f32.mrb[17].mxu1 }
 0x67a   : > { %7362 = vst [vmem:[%s12726_s11 + $0x68] sm:$0xff] %v7330_v15  ;;  %v7269_v19 = vadd.f32 %v12718_v36, %v7151_v6  ;;  %v8936_v21 = vpop.f32.mrb[18].mxu1  ;;  %v9745_v6 = vld [vmem:[#allocation2 + $0x181] sm:$0xff] }
 0x67b   : > { %v7303_v11 = vadd.f32 %v9733_v25, %v7271_v43  ;;  %v7272_v48 = vadd.f32 %v8936_v21, %v12718_v36  ;;  %v7154_v59 = vpop.f32.mrb[19].mxu1 }
 0x67c   : > { %v7301_v54 = vadd.f32 %v9734_v14, %v7269_v19  ;;  %v7270_v5 = vadd.f32 %v12718_v36, %v7154_v59 }
 0x67d   : > { %v7335_v47 = vmax.f32 %v7303_v11, 0.0  ;;  %v7304_v46 = vadd.f32 %v9735_v20, %v7272_v48  ;;  %v9746_v11 = vld [vmem:[#allocation2 + $0x169] sm:$0xff]  ;;  %v9748_v20 = vld [vmem:[#allocation2 + $0x171] sm:$0xff] }
 0x67e   : > { %v7333_v61 = vmax.f32 %v7301_v54, 0.0  ;;  %v7302_v17 = vadd.f32 %v9736_v23, %v7270_v5  ;;  %v9747_v54 = vld [vmem:[#allocation2 + $0x189] sm:$0xff] }
 0x67f   : > { %7367 = vst [vmem:[%s12726_s11 + $0x90] sm:$0xff] %v7335_v47  ;;  %v7336_v51 = vmax.f32 %v7304_v46, 0.0 }
 0x680   : > { %7365 = vst [vmem:[%s12726_s11 + $0x80] sm:$0xff] %v7333_v61  ;;  %v7334_v44 = vmax.f32 %v7302_v17, 0.0  ;;  %v8939_v53 = vpop.f32.mrb[20].mxu1 }
 0x681   : > { %7368 = vst [vmem:[%s12726_s11 + $0x98] sm:$0xff] %v7336_v51  ;;  %v7275_v29 = vadd.f32 %v8939_v53, %v12718_v36  ;;  %v7167_v8 = vpop.f32.mrb[21].mxu1 }
 0x682   : > { %7366 = vst [vmem:[%s12726_s11 + $0x88] sm:$0xff] %v7334_v44  ;;  %v7273_v12 = vadd.f32 %v12718_v36, %v7167_v8  ;;  %v8940_v2 = vpop.f32.mrb[22].mxu1 }
 0x683   : > { %v7307_v50 = vadd.f32 %v9737_v52, %v7275_v29  ;;  %v7276_v30 = vadd.f32 %v8940_v2, %v12718_v36  ;;  %v7170_v62 = vpop.f32.mrb[23].mxu1 }
 0x684   : > { %v7305_v4 = vadd.f32 %v9738_v18, %v7273_v12  ;;  %v7274_v7 = vadd.f32 %v12718_v36, %v7170_v62 }
 0x685   : > { %v7339_v57 = vmax.f32 %v7307_v50, 0.0  ;;  %v7308_v3 = vadd.f32 %v9739_v28, %v7276_v30 }
 0x686   : > { %v7337_v40 = vmax.f32 %v7305_v4, 0.0  ;;  %v7306_v38 = vadd.f32 %v9740_v41, %v7274_v7 }
 0x687   : > { %7371 = vst [vmem:[%s12726_s11 + $0xb0] sm:$0xff] %v7339_v57  ;;  %v7340_v42 = vmax.f32 %v7308_v3, 0.0 }
 0x688   : > { %7369 = vst [vmem:[%s12726_s11 + $0xa0] sm:$0xff] %v7337_v40  ;;  %v7338_v35 = vmax.f32 %v7306_v38, 0.0  ;;  %v8943_v49 = vpop.f32.mrb[24].mxu1 }
 0x689   : > { %7372 = vst [vmem:[%s12726_s11 + $0xb8] sm:$0xff] %v7340_v42  ;;  %v7279_v33 = vadd.f32 %v8943_v49, %v12718_v36  ;;  %v7183_v63 = vpop.f32.mrb[25].mxu1 }
 0x68a   : > { %7370 = vst [vmem:[%s12726_s11 + $0xa8] sm:$0xff] %v7338_v35  ;;  %v7277_v60 = vadd.f32 %v12718_v36, %v7183_v63  ;;  %v8944_v32 = vpop.f32.mrb[26].mxu1 }
 0x68b   : > { %v7311_v1 = vadd.f32 %v9741_v0, %v7279_v33  ;;  %v7280_v13 = vadd.f32 %v8944_v32, %v12718_v36  ;;  %v7186_v22 = vpop.f32.mrb[27].mxu1 }
 0x68c   : > { %v7309_v16 = vadd.f32 %v9742_v55, %v7277_v60  ;;  %v7278_v37 = vadd.f32 %v12718_v36, %v7186_v22 }
 0x68d   : > { %v7343_v58 = vmax.f32 %v7311_v1, 0.0  ;;  %v7312_v27 = vadd.f32 %v9743_v24, %v7280_v13 }
 0x68e   : > { %v7341_v45 = vmax.f32 %v7309_v16, 0.0  ;;  %v7310_v26 = vadd.f32 %v9744_v9, %v7278_v37 }
 0x68f   : > { %7375 = vst [vmem:[%s12726_s11 + $0xd0] sm:$0xff] %v7343_v58  ;;  %v7344_v34 = vmax.f32 %v7312_v27, 0.0 }
 0x690   : > { %7373 = vst [vmem:[%s12726_s11 + $0xc0] sm:$0xff] %v7341_v45  ;;  %v7342_v31 = vmax.f32 %v7310_v26, 0.0  ;;  %v8947_v39 = vpop.f32.mrb[28].mxu1 }
 0x691   : > { %7376 = vst [vmem:[%s12726_s11 + $0xd8] sm:$0xff] %v7344_v34  ;;  %v7283_v56 = vadd.f32 %v8947_v39, %v12718_v36  ;;  %v7199_v15 = vpop.f32.mrb[29].mxu1 }
 0x692   : > { %7374 = vst [vmem:[%s12726_s11 + $0xc8] sm:$0xff] %v7342_v31  ;;  %v7281_v10 = vadd.f32 %v12718_v36, %v7199_v15  ;;  %v8948_v43 = vpop.f32.mrb[30].mxu1 }
 0x693   : > { %v7315_v19 = vadd.f32 %v9745_v6, %v7283_v56  ;;  %v7284_v21 = vadd.f32 %v8948_v43, %v12718_v36  ;;  %v7202_v25 = vpop.f32.mrb[31].mxu1 }
 0x694   : > { %v7313_v48 = vadd.f32 %v9746_v11, %v7281_v10  ;;  %v7282_v59 = vadd.f32 %v12718_v36, %v7202_v25 }
 0x695   : > { %v7347_v14 = vmax.f32 %v7315_v19, 0.0  ;;  %v7316_v5 = vadd.f32 %v9747_v54, %v7284_v21 }
 0x696   : > { %v7345_v47 = vmax.f32 %v7313_v48, 0.0  ;;  %v7314_v46 = vadd.f32 %v9748_v20, %v7282_v59 }
 0x697   : > { %7379 = vst [vmem:[%s12726_s11 + $0xf0] sm:$0xff] %v7347_v14  ;;  %v7348_v61 = vmax.f32 %v7316_v5, 0.0 }
 0x698   : > { %7377 = vst [vmem:[%s12726_s11 + $0xe0] sm:$0xff] %v7345_v47  ;;  %v7346_v36 = vmax.f32 %v7314_v46, 0.0 }
 0x699   : > { %7380 = vst [vmem:[%s12726_s11 + $0xf8] sm:$0xff] %v7348_v61 }
 0x69a   : > { %7378 = vst [vmem:[%s12726_s11 + $0xe8] sm:$0xff] %v7346_v36 }
 0x69b   : > { %9848 = shalt.err (!%p9845_p2)
}
 0x69c   : > { %s9849_s6 = scalar_lea.hbm %s12790_s9, 4096  ;;  %s9853_s8 = scalar_lea.hbm %s12844_s5, 8192 }
 0x69d   : > { %p9850_p13 = scmp.ne.s32.totalorder %s12790_s9, %s9849_s6  ;;  %p9854_p4 = scmp.lt.u32.totalorder %s12790_s9, %s12844_s5 }
 0x69e   : > { %p9855_p5 = scmp.lt.u32.totalorder %s9853_s8, %s9849_s6  ;;  %p9857_p11 = scmp.lt.u32.totalorder %s9849_s6, %s12790_s9 }
 0x69f   : > { %p9851_p6 = pnand %p9850_p13, %p13642_p0 }
 0x6a0   : > { %p9856_p8 = por %p9855_p5, %p9854_p4 }
 0x6a1   : > { %p9852_p10 = pneg %p9851_p6 }
 0x6a2   : > { %p9858_p1 = por %p9857_p11, %p9856_p8 }
 0x6a4   : > { %p9859_p3 = pnand %p9858_p1, %p9852_p10 }
 0x6a6   : > { %9862 = shalt.err (!%p9859_p3)
}
 0x6a7   : > { %s9917_s28 = smov 128   ;;  %s9918_s15 = smov 8  }
 0x6a8   : > { %9471 = dma.vmem_to_hbm [thread:$0]  (%p13642_p0), %s12792_s30, 4096, %s12790_s9, %s7382_s22, %s9917_s28, %s9917_s28, %s9918_s15  }
 0x6a9 PF: > { %s7410_s16 = sand.u32 1, %s9893_s18   ;;  %p13643_p7 = scmp.ne.s32.totalorder %s13113_s25, 0 }
 0x6aa   : > { %p13644_p9 = scmp.ge.s32.totalorder %s9905_s21, 2  ;;  %s7411_s12 = scalar_lea.sflag [#allocation6], %s7410_s16 }
 0x6ac   : > { %p9485_p12 = pnand %p13644_p9, %p13643_p7 }
 0x6ae   : > { %9888 = dma.done.wait (!%p9485_p12), %s7411_s12, 4096  }
 0x6af   : > { %9890 = vsyncadd (!%p9485_p12), %s7411_s12, 4294963200  ;;  %p19_p2 = scmp.ge.s32.totalorder %s10059_s14, 4   ;;  %s13645_s18 = smov %s9897_s19 }
 0x6b0   : > { %s13646_s19 = smov %s9901_s20  ;;  %s13647_s20 = smov %s10075_s27 }
 0x6b1   : > { %s13648_s21 = smov %s10059_s14  ;;  %21 = sbr.rel (!%p19_p2) target bundleno = 6 (0x6), region = 115 }
 0x6b8   :  { %7416 = vsyncpa [#allocation5], 1 }
 0x6b9   :  { %7418 = vsyncpa [#allocation5 + $0x1], 1 }
 0x6ba   :  { %7419 = vsyncpa [#allocation8], 1 }
 0x6bb   :  { %7420 = vsyncpa [#allocation6], 1 }
 0x6bc   :  { %7422 = vsyncpa [#allocation6 + $0x1], 1 }

</bundles_post_ra>
